<compile_context>
chip_gen: v6e
topology: v6e:2x2x1
jax: 0.10.0
libtpu: 0.0.40
codegen_flags: <defaults>
</compile_context>

<pallas_src>
import functools

import numpy as np
import jax
import jax.numpy as jnp
from jax.experimental import pallas as pl
from jax.experimental.pallas import tpu as pltpu

BN_EPS = 1e-5


@functools.lru_cache(maxsize=None)
def _vmem_limit_bytes():
    # Use most of the physical VMEM (128 MiB on v5e/v6e, 64 MiB on v7x); fall back to
    # a conservative 64 MiB if the query is unavailable.
    try:
        cap = int(pltpu.get_tpu_info().vmem_capacity_bytes)
    except Exception:
        cap = 64 * 1024 * 1024
    return int(min(cap * 3 // 4, 100 * 1024 * 1024))


def _cparams(*sem):
    return pltpu.CompilerParams(dimension_semantics=tuple(sem),
                                vmem_limit_bytes=_vmem_limit_bytes())


def _bn_identity(c):
    # Freshly initialized BatchNorm2d in eval mode: gamma=1, beta=0, mean=0, var=1.
    gamma = jnp.ones((c,), jnp.float32)
    beta = jnp.zeros((c,), jnp.float32)
    mean = jnp.zeros((c,), jnp.float32)
    var = jnp.ones((c,), jnp.float32)
    scale = gamma / jnp.sqrt(var + BN_EPS)
    shift = beta - mean * scale
    return scale, shift


def _fold_bn(w, b, bn):
    """Fold eval-mode BatchNorm (scale, shift) into a (Cin, Cout) 1x1-conv weight."""
    scale, shift = bn
    return w * scale[None, :], b * scale + shift


def _interp_matrix(in_size, out_size):
    """1-D row matrix matching F.interpolate(mode='bilinear', align_corners=False)."""
    scale = in_size / out_size
    d = np.arange(out_size, dtype=np.float64)
    src = np.maximum((d + 0.5) * scale - 0.5, 0.0)
    i0 = np.minimum(np.floor(src).astype(np.int64), in_size - 1)
    i1 = np.minimum(i0 + 1, in_size - 1)
    w1 = src - i0
    w0 = 1.0 - w1
    M = np.zeros((out_size, in_size), np.float32)
    M[np.arange(out_size), i0] += w0.astype(np.float32)
    M[np.arange(out_size), i1] += w1.astype(np.float32)
    return M


# --------------------------------------------------------------------------
# K1: depthwise conv + folded BN + Swish (padding built in-kernel, bf16 out)
# --------------------------------------------------------------------------
def _dwconv_kernel(x_ref, w_ref, b_ref, o_ref, xp_ref, *, k):
    H, W, C = x_ref.shape[1], x_ref.shape[2], x_ref.shape[3]
    pad = k // 2
    woff = 8  # sublane-aligned left pad in the scratch (>= pad, multiple of 8)

    # Build the zero-padded tile in VMEM (replaces the wrapper-side jnp.pad, which
    # re-read/re-wrote the whole input in HBM). Zero the whole scratch each step:
    # cheap (VMEM-only) and correct under any grid->core split.
    xp_ref[...] = jnp.zeros_like(xp_ref)
    xp_ref[:, pad:pad + H, woff:woff + W, :] = x_ref[...]

    w = w_ref[...]                                                   # (k, k, C)
    acc = jnp.zeros((1, H, W, C), jnp.float32)
    for dy in range(k):
        for dx in range(k):
            x0 = woff - pad + dx
            tap = xp_ref[:, dy:dy + H, x0:x0 + W, :]
            acc = acc + tap * w[dy, dx].reshape(1, 1, 1, C)
    acc = acc + b_ref[...].reshape(1, 1, 1, C)
    o_ref[...] = (acc * jax.nn.sigmoid(acc)).astype(o_ref.dtype)     # Swish fused


def depthwise_conv_bn_swish(x, w, b):
    """Depthwise conv (k,k,C), SAME padding, stride 1, BN folded, Swish fused -> bf16."""
    N, H, W, C = x.shape
    k = w.shape[0]
    pad = k // 2
    # TODO(synk): H-tile with a (k-1) halo + pltpu.roll taps for production H,W,C.
    return pl.pallas_call(
        functools.partial(_dwconv_kernel, k=k),
        out_shape=jax.ShapeDtypeStruct((N, H, W, C), jnp.bfloat16),
        grid=(N,),
        in_specs=[
            pl.BlockSpec((1, H, W, C), lambda n: (n, 0, 0, 0)),
            pl.BlockSpec((k, k, C), lambda n: (0, 0, 0)),
            pl.BlockSpec((1, C), lambda n: (0, 0)),
        ],
        out_specs=pl.BlockSpec((1, H, W, C), lambda n: (n, 0, 0, 0)),
        scratch_shapes=[pltpu.VMEM((1, H + 2 * pad, W + 16, C), jnp.float32)],
        compiler_params=_cparams("parallel"),
    )(x.astype(jnp.float32), w.astype(jnp.float32),
      b.reshape(1, C).astype(jnp.float32))


# --------------------------------------------------------------------------
# K2: fused attention per batch:
#     downsample -> q conv+BN -> k=per-head transpose -> q*k -> qk conv+BN (low res)
#     -> upsample -> +bias -> sigmoid -> * v        (q/k/v never round-trip HBM)
# --------------------------------------------------------------------------
def _attn_kernel(v_ref, rd_ref, ru_ref, wq_ref, bq_ref, wqk_ref, bqk_ref, eye_ref,
                 o_ref, *, num_heads):
    v_f32 = v_ref[0].astype(jnp.float32)                              # (P, C)
    # bilinear downsample == ONE matmul with the (S2, P) kron interp operator (f32)
    v_small = jnp.dot(rd_ref[...], v_f32, preferred_element_type=jnp.float32)  # (S2, C)
    v_small_bf = v_small.astype(jnp.bfloat16)

    eye = eye_ref[...]                                                # (S2, S2) f32
    s2 = eye.shape[0]
    C = v_ref.shape[2]
    z_small = jnp.zeros((s2, C), jnp.float32)
    for h in range(num_heads):
        # q_h = BN_q(conv1x1_q(v_small)) for this head                  (S2, S2)
        q_h = jnp.dot(v_small_bf, wq_ref[h],
                      preferred_element_type=jnp.float32) + bq_ref[h]
        # k_h = q_h.T (per-head channel<->spatial swap). Done as an MXU "NT" matmul
        # with the identity to avoid an XLU transpose of a non-128-multiple tile.
        k_h = jax.lax.dot_general(eye, q_h, (((1,), (1,)), ((), ())),
                                  preferred_element_type=jnp.float32)
        qk_h = q_h * k_h
        # qk 1x1 conv (+ folded BN scale) applied at LOW res (commutes with resize)
        z_small = z_small + jnp.dot(qk_h.astype(jnp.bfloat16), wqk_ref[h],
                                    preferred_element_type=jnp.float32)
    # bilinear upsample == ONE matmul; bias/BN shift added afterwards (exact commute)
    z = jnp.dot(ru_ref[...], z_small, preferred_element_type=jnp.float32) + bqk_ref[...]
    o_ref[0] = (jax.nn.sigmoid(z) * v_f32).astype(o_ref.dtype)        # * v, bf16 out


def fused_attention(v_flat, r_down, r_up, wq3, bq3, wqk3, bqk, eye, *, num_heads):
    N, P, C = v_flat.shape
    S2 = eye.shape[0]
    # TODO(synk): stack the batch into the lane dim of the resize matmuls for better
    # MXU fill (and >=2 grid steps when N == 1 on v7x).
    return pl.pallas_call(
        functools.partial(_attn_kernel, num_heads=num_heads),
        out_shape=jax.ShapeDtypeStruct((N, P, C), jnp.bfloat16),
        grid=(N,),
        in_specs=[
            pl.BlockSpec((1, P, C), lambda n: (n, 0, 0)),
            pl.BlockSpec((S2, P), lambda n: (0, 0)),
            pl.BlockSpec((P, S2), lambda n: (0, 0)),
            pl.BlockSpec((num_heads, C, S2), lambda n: (0, 0, 0)),
            pl.BlockSpec((num_heads, 1, S2), lambda n: (0, 0, 0)),
            pl.BlockSpec((num_heads, S2, C), lambda n: (0, 0, 0)),
            pl.BlockSpec((1, C), lambda n: (0, 0)),
            pl.BlockSpec((S2, S2), lambda n: (0, 0)),
        ],
        out_specs=pl.BlockSpec((1, P, C), lambda n: (n, 0, 0)),
        compiler_params=_cparams("parallel"),
    )(v_flat, r_down, r_up, wq3, bq3, wqk3,
      bqk.reshape(1, C).astype(jnp.float32), eye)


# --------------------------------------------------------------------------
# K3: qkv 1x1 conv + BN + Swish, mlp 1x1 conv, residual add (row tiled, fused)
# --------------------------------------------------------------------------
def _mlp_res_kernel(x_ref, r_ref, w1_ref, b1_ref, w2_ref, b2_ref, o_ref):
    h = jnp.dot(x_ref[...], w1_ref[...], preferred_element_type=jnp.float32) + b1_ref[...]
    h = h * jax.nn.sigmoid(h)                                        # Swish (EUP)
    y = jnp.dot(h.astype(jnp.bfloat16), w2_ref[...],
                preferred_element_type=jnp.float32) + b2_ref[...]
    o_ref[...] = y + r_ref[...]                                      # residual (f32, exact)


def _pick_tm(M, C, D):
    if M <= 8:
        return M
    # resident bytes / row: double-buffered bf16 x + f32 resid + f32 out blocks,
    # plus the f32 (TM, D) MLP intermediate.
    per_row = 2 * (2 * C + 4 * C + 4 * C) + 4 * D
    fixed = 4 * C * D + 4 * (C + D) + (1 << 20)
    cap = max(128, (int(0.6 * _vmem_limit_bytes()) - fixed) // max(per_row, 1))
    tm = min(M, 1024, cap)
    if M > 128:
        tm = min(tm, pl.cdiv(M, 2))   # >= 2 grid steps so both v7x TensorCores get work
    tm = max(8, (tm // 8) * 8)        # sublane-aligned tile rows (partial last block OK)
    return min(tm, M)


def fused_mlp_residual(x_bf16, resid_f32, w1_bf16, b1, w2_bf16, b2):
    M, C = x_bf16.shape
    D = w1_bf16.shape[1]
    TM = _pick_tm(M, C, D)
    # TODO(synk): inner K-tile loop over D with an f32 accumulator scratch for
    # production dims (keeps the (TM, D) intermediate + weights inside v7x's 64 MiB).
    return pl.pallas_call(
        _mlp_res_kernel,
        out_shape=jax.ShapeDtypeStruct((M, C), jnp.float32),
        grid=(pl.cdiv(M, TM),),
        in_specs=[
            pl.BlockSpec((TM, C), lambda i: (i, 0)),
            pl.BlockSpec((TM, C), lambda i: (i, 0)),
            pl.BlockSpec((C, D), lambda i: (0, 0)),
            pl.BlockSpec((1, D), lambda i: (0, 0)),
            pl.BlockSpec((D, C), lambda i: (0, 0)),
            pl.BlockSpec((1, C), lambda i: (0, 0)),
        ],
        out_specs=pl.BlockSpec((TM, C), lambda i: (i, 0)),
        compiler_params=_cparams("parallel"),
    )(x_bf16, resid_f32, w1_bf16, b1.reshape(1, D).astype(jnp.float32),
      w2_bf16, b2.reshape(1, C).astype(jnp.float32))


# --------------------------------------------------------------------------
# Block_Conv_SelfAttn forward (drop_path = 0, layer_scale_init_value = 0 -> gamma None)
# --------------------------------------------------------------------------
def block_conv_selfattn(x_nchw, p, *, sr_to, num_heads):
    x = jnp.transpose(x_nchw, (0, 2, 3, 1)).astype(jnp.float32)       # NCHW -> NHWC
    N, H, W, C = x.shape
    S2 = sr_to * sr_to                                                 # "HW" in PyTorch
    P = H * W

    # --- K1: v = Swish(BN(depthwise_conv(x))), BN folded into the depthwise taps ---
    sv, tv = p["bn_v"]
    v = depthwise_conv_bn_swish(x, p["v_w"] * sv, p["v_b"] * sv + tv)  # (N,H,W,C) bf16
    v_flat = v.reshape(N, P, C)

    # --- bilinear resize operators: kron of the separable 1-D matrices (kept f32) ---
    r_down = jnp.asarray(np.kron(_interp_matrix(H, sr_to), _interp_matrix(W, sr_to)))
    r_up = jnp.asarray(np.kron(_interp_matrix(sr_to, H), _interp_matrix(sr_to, W)))
    eye = jnp.eye(S2, dtype=jnp.float32)

    # --- fold eval BatchNorms into 1x1-conv weights, then cast to bf16 ---
    wq, bq = _fold_bn(p["q_w"], p["q_b"], p["bn_q"])                   # (C, nh*S2)
    wqk, bqk = _fold_bn(p["qk_w"], p["qk_b"], p["bn_qk"])              # (nh*S2, C)
    w1, b1 = _fold_bn(p["qkv_w"], p["qkv_b"], p["bn_qkv"])
    w2, b2 = p["mlp_w"], p["mlp_b"]

    # per-head weight views so the kernel indexes heads along a major dim
    wq3 = jnp.transpose(wq.reshape(C, num_heads, S2), (1, 0, 2)).astype(jnp.bfloat16)
    bq3 = bq.reshape(num_heads, 1, S2).astype(jnp.float32)
    wqk3 = wqk.reshape(num_heads, S2, C).astype(jnp.bfloat16)

    # --- K2: fused attention (downsample, q, k, q*k, qk conv, upsample, sigmoid, *v) ---
    y_attn = fused_attention(v_flat, r_down, r_up, wq3, bq3, wqk3, bqk, eye,
                             num_heads=num_heads)                      # (N,P,C) bf16

    # --- K3: qkv conv + BN + Swish, mlp conv, residual (fused, row tiled) ---
    out = fused_mlp_residual(y_attn.reshape(N * P, C), x.reshape(N * P, C),
                             w1.astype(jnp.bfloat16), b1,
                             w2.astype(jnp.bfloat16), b2)
    out = out.reshape(N, H, W, C)
    return jnp.transpose(out, (0, 3, 1, 2))                            # back to NCHW


# --------------------------------------------------------------------------
# Deterministic parameter init (shapes mirror the PyTorch __init__)
# --------------------------------------------------------------------------
def _trunc_normal(key, shape, std=0.02):
    return std * jax.random.truncated_normal(key, -2.0, 2.0, shape, jnp.float32)


def init_block_params(key, *, dim, sr_to, num_heads, mlp_ratio, neighbors):
    S2 = sr_to ** 2
    hdim = num_heads * S2
    mdim = mlp_ratio * dim
    ks = jax.random.split(key, 5)
    return {
        "v_w": _trunc_normal(ks[0], (neighbors, neighbors, dim)),   # depthwise (k,k,C)
        "v_b": jnp.zeros((dim,), jnp.float32),
        "bn_v": _bn_identity(dim),
        "q_w": _trunc_normal(ks[1], (dim, hdim)),
        "q_b": jnp.zeros((hdim,), jnp.float32),
        "bn_q": _bn_identity(hdim),
        "qk_w": _trunc_normal(ks[2], (hdim, dim)),
        "qk_b": jnp.zeros((dim,), jnp.float32),
        "bn_qk": _bn_identity(dim),
        "qkv_w": _trunc_normal(ks[3], (dim, mdim)),
        "qkv_b": jnp.zeros((mdim,), jnp.float32),
        "bn_qkv": _bn_identity(mdim),
        "mlp_w": _trunc_normal(ks[4], (mdim, dim)),
        "mlp_b": jnp.zeros((dim,), jnp.float32),
    }


if __name__ == "__main__":
    # Small config consistent with the module; H, W chosen so the bilinear scale
    # factors (sr_to/H, H/sr_to) are exact, as in the original usage.
    cfg = dict(dim=16, sr_to=8, num_heads=2, mlp_ratio=2, neighbors=3)
    key = jax.random.PRNGKey(0)
    k_param, k_x = jax.random.split(key)
    params = init_block_params(k_param, **cfg)
    x = jax.random.normal(k_x, (2, cfg["dim"], 16, 16), jnp.float32)   # NCHW like PyTorch

    fwd = jax.jit(functools.partial(block_conv_selfattn,
                                    sr_to=cfg["sr_to"], num_heads=cfg["num_heads"]))
    out = fwd(x, params)
    out = jax.block_until_ready(out)
    assert out.shape == x.shape, out.shape
    assert bool(jnp.all(jnp.isfinite(out)))
    print("KERNEL_OK")
</pallas_src>

<mosaic_0001>
module attributes {stable_mosaic.version = 11 : i64} {
  func.func @_dwconv_kernel(%arg0: i32, %arg1: memref<1x16x16x16xf32, #tpu.memory_space<vmem>>, %arg2: memref<3x3x16xf32, #tpu.memory_space<vmem>>, %arg3: memref<1x16xf32, #tpu.memory_space<vmem>>, %arg4: memref<1x16x16x16xbf16, #tpu.memory_space<vmem>>, %arg5: memref<1x18x32x16xf32, #tpu.memory_space<vmem>>) attributes {dimension_semantics = [#tpu.dimension_semantics<parallel>], iteration_bounds = array<i64: 2>, scalar_prefetch = 0 : i64, scratch_operands = 1 : i64, tpu.core_type = #tpu.core_type<tc>, window_params = [{transform_indices = @transform_0, window_bounds = array<i64: 1, 16, 16, 16>}, {pipeline_mode = #tpu.pipeline_mode<synchronous>, transform_indices = @transform_1, window_bounds = array<i64: 3, 3, 16>}, {pipeline_mode = #tpu.pipeline_mode<synchronous>, transform_indices = @transform_2, window_bounds = array<i64: 1, 16>}, {transform_indices = @transform_3, window_bounds = array<i64: 1, 16, 16, 16>}]} {
    %cst = arith.constant 0.000000e+00 : f32
    %0 = vector.broadcast %cst : f32 to vector<1x18x32x16xf32>
    %c0 = arith.constant 0 : index
    %c0_0 = arith.constant 0 : index
    %c0_1 = arith.constant 0 : index
    %c0_2 = arith.constant 0 : index
    %1 = vector.load %arg5[%c0, %c0_0, %c0_1, %c0_2] : memref<1x18x32x16xf32, #tpu.memory_space<vmem>>, vector<1x18x32x16xf32>
    tpu.vector_store %arg5[%c0, %c0_0, %c0_1, %c0_2], %0 {strides = array<i32>} : memref<1x18x32x16xf32, #tpu.memory_space<vmem>>, vector<1x18x32x16xf32>,
    %c0_3 = arith.constant 0 : index
    %c0_4 = arith.constant 0 : index
    %c0_5 = arith.constant 0 : index
    %c0_6 = arith.constant 0 : index
    %2 = vector.load %arg1[%c0_3, %c0_4, %c0_5, %c0_6] : memref<1x16x16x16xf32, #tpu.memory_space<vmem>>, vector<1x16x16x16xf32>
    %c0_7 = arith.constant 0 : index
    %c1 = arith.constant 1 : index
    %c8 = arith.constant 8 : index
    %c0_8 = arith.constant 0 : index
    %3 = vector.load %arg5[%c0_7, %c1, %c8, %c0_8] : memref<1x18x32x16xf32, #tpu.memory_space<vmem>>, vector<1x16x16x16xf32>
    tpu.vector_store %arg5[%c0_7, %c1, %c8, %c0_8], %2 {strides = array<i32>} : memref<1x18x32x16xf32, #tpu.memory_space<vmem>>, vector<1x16x16x16xf32>,
    %c0_9 = arith.constant 0 : index
    %c0_10 = arith.constant 0 : index
    %c0_11 = arith.constant 0 : index
    %4 = vector.load %arg2[%c0_9, %c0_10, %c0_11] : memref<3x3x16xf32, #tpu.memory_space<vmem>>, vector<3x3x16xf32>
    %cst_12 = arith.constant 0.000000e+00 : f32
    %5 = vector.broadcast %cst_12 : f32 to vector<1x16x16x16xf32>
    %c0_13 = arith.constant 0 : index
    %c0_14 = arith.constant 0 : index
    %c7 = arith.constant 7 : index
    %c0_15 = arith.constant 0 : index
    %6 = vector.load %arg5[%c0_13, %c0_14, %c7, %c0_15] : memref<1x18x32x16xf32, #tpu.memory_space<vmem>>, vector<1x16x16x16xf32>
    %7 = vector.extract_strided_slice %4 {offsets = [0, 0, 0], sizes = [1, 1, 16], strides = [1, 1, 1]} : vector<3x3x16xf32> to vector<1x1x16xf32>
    %8 = vector.shape_cast %7 : vector<1x1x16xf32> to vector<16xf32>
    %9 = vector.shape_cast %8 : vector<16xf32> to vector<1x1x1x16xf32>
    %10 = vector.broadcast %9 : vector<1x1x1x16xf32> to vector<1x16x16x16xf32>
    %11 = arith.mulf %6, %10 : vector<1x16x16x16xf32>
    %12 = arith.addf %5, %11 : vector<1x16x16x16xf32>
    %c0_16 = arith.constant 0 : index
    %c0_17 = arith.constant 0 : index
    %c8_18 = arith.constant 8 : index
    %c0_19 = arith.constant 0 : index
    %13 = vector.load %arg5[%c0_16, %c0_17, %c8_18, %c0_19] : memref<1x18x32x16xf32, #tpu.memory_space<vmem>>, vector<1x16x16x16xf32>
    %14 = vector.extract_strided_slice %4 {offsets = [0, 1, 0], sizes = [1, 1, 16], strides = [1, 1, 1]} : vector<3x3x16xf32> to vector<1x1x16xf32>
    %15 = vector.shape_cast %14 : vector<1x1x16xf32> to vector<16xf32>
    %16 = vector.shape_cast %15 : vector<16xf32> to vector<1x1x1x16xf32>
    %17 = vector.broadcast %16 : vector<1x1x1x16xf32> to vector<1x16x16x16xf32>
    %18 = arith.mulf %13, %17 : vector<1x16x16x16xf32>
    %19 = arith.addf %12, %18 : vector<1x16x16x16xf32>
    %c0_20 = arith.constant 0 : index
    %c0_21 = arith.constant 0 : index
    %c9 = arith.constant 9 : index
    %c0_22 = arith.constant 0 : index
    %20 = vector.load %arg5[%c0_20, %c0_21, %c9, %c0_22] : memref<1x18x32x16xf32, #tpu.memory_space<vmem>>, vector<1x16x16x16xf32>
    %21 = vector.extract_strided_slice %4 {offsets = [0, 2, 0], sizes = [1, 1, 16], strides = [1, 1, 1]} : vector<3x3x16xf32> to vector<1x1x16xf32>
    %22 = vector.shape_cast %21 : vector<1x1x16xf32> to vector<16xf32>
    %23 = vector.shape_cast %22 : vector<16xf32> to vector<1x1x1x16xf32>
    %24 = vector.broadcast %23 : vector<1x1x1x16xf32> to vector<1x16x16x16xf32>
    %25 = arith.mulf %20, %24 : vector<1x16x16x16xf32>
    %26 = arith.addf %19, %25 : vector<1x16x16x16xf32>
    %c0_23 = arith.constant 0 : index
    %c1_24 = arith.constant 1 : index
    %c7_25 = arith.constant 7 : index
    %c0_26 = arith.constant 0 : index
    %27 = vector.load %arg5[%c0_23, %c1_24, %c7_25, %c0_26] : memref<1x18x32x16xf32, #tpu.memory_space<vmem>>, vector<1x16x16x16xf32>
    %28 = vector.extract_strided_slice %4 {offsets = [1, 0, 0], sizes = [1, 1, 16], strides = [1, 1, 1]} : vector<3x3x16xf32> to vector<1x1x16xf32>
    %29 = vector.shape_cast %28 : vector<1x1x16xf32> to vector<16xf32>
    %30 = vector.shape_cast %29 : vector<16xf32> to vector<1x1x1x16xf32>
    %31 = vector.broadcast %30 : vector<1x1x1x16xf32> to vector<1x16x16x16xf32>
    %32 = arith.mulf %27, %31 : vector<1x16x16x16xf32>
    %33 = arith.addf %26, %32 : vector<1x16x16x16xf32>
    %c0_27 = arith.constant 0 : index
    %c1_28 = arith.constant 1 : index
    %c8_29 = arith.constant 8 : index
    %c0_30 = arith.constant 0 : index
    %34 = vector.load %arg5[%c0_27, %c1_28, %c8_29, %c0_30] : memref<1x18x32x16xf32, #tpu.memory_space<vmem>>, vector<1x16x16x16xf32>
    %35 = vector.extract_strided_slice %4 {offsets = [1, 1, 0], sizes = [1, 1, 16], strides = [1, 1, 1]} : vector<3x3x16xf32> to vector<1x1x16xf32>
    %36 = vector.shape_cast %35 : vector<1x1x16xf32> to vector<16xf32>
    %37 = vector.shape_cast %36 : vector<16xf32> to vector<1x1x1x16xf32>
    %38 = vector.broadcast %37 : vector<1x1x1x16xf32> to vector<1x16x16x16xf32>
    %39 = arith.mulf %34, %38 : vector<1x16x16x16xf32>
    %40 = arith.addf %33, %39 : vector<1x16x16x16xf32>
    %c0_31 = arith.constant 0 : index
    %c1_32 = arith.constant 1 : index
    %c9_33 = arith.constant 9 : index
    %c0_34 = arith.constant 0 : index
    %41 = vector.load %arg5[%c0_31, %c1_32, %c9_33, %c0_34] : memref<1x18x32x16xf32, #tpu.memory_space<vmem>>, vector<1x16x16x16xf32>
    %42 = vector.extract_strided_slice %4 {offsets = [1, 2, 0], sizes = [1, 1, 16], strides = [1, 1, 1]} : vector<3x3x16xf32> to vector<1x1x16xf32>
    %43 = vector.shape_cast %42 : vector<1x1x16xf32> to vector<16xf32>
    %44 = vector.shape_cast %43 : vector<16xf32> to vector<1x1x1x16xf32>
    %45 = vector.broadcast %44 : vector<1x1x1x16xf32> to vector<1x16x16x16xf32>
    %46 = arith.mulf %41, %45 : vector<1x16x16x16xf32>
    %47 = arith.addf %40, %46 : vector<1x16x16x16xf32>
    %c0_35 = arith.constant 0 : index
    %c2 = arith.constant 2 : index
    %c7_36 = arith.constant 7 : index
    %c0_37 = arith.constant 0 : index
    %48 = vector.load %arg5[%c0_35, %c2, %c7_36, %c0_37] : memref<1x18x32x16xf32, #tpu.memory_space<vmem>>, vector<1x16x16x16xf32>
    %49 = vector.extract_strided_slice %4 {offsets = [2, 0, 0], sizes = [1, 1, 16], strides = [1, 1, 1]} : vector<3x3x16xf32> to vector<1x1x16xf32>
    %50 = vector.shape_cast %49 : vector<1x1x16xf32> to vector<16xf32>
    %51 = vector.shape_cast %50 : vector<16xf32> to vector<1x1x1x16xf32>
    %52 = vector.broadcast %51 : vector<1x1x1x16xf32> to vector<1x16x16x16xf32>
    %53 = arith.mulf %48, %52 : vector<1x16x16x16xf32>
    %54 = arith.addf %47, %53 : vector<1x16x16x16xf32>
    %c0_38 = arith.constant 0 : index
    %c2_39 = arith.constant 2 : index
    %c8_40 = arith.constant 8 : index
    %c0_41 = arith.constant 0 : index
    %55 = vector.load %arg5[%c0_38, %c2_39, %c8_40, %c0_41] : memref<1x18x32x16xf32, #tpu.memory_space<vmem>>, vector<1x16x16x16xf32>
    %56 = vector.extract_strided_slice %4 {offsets = [2, 1, 0], sizes = [1, 1, 16], strides = [1, 1, 1]} : vector<3x3x16xf32> to vector<1x1x16xf32>
    %57 = vector.shape_cast %56 : vector<1x1x16xf32> to vector<16xf32>
    %58 = vector.shape_cast %57 : vector<16xf32> to vector<1x1x1x16xf32>
    %59 = vector.broadcast %58 : vector<1x1x1x16xf32> to vector<1x16x16x16xf32>
    %60 = arith.mulf %55, %59 : vector<1x16x16x16xf32>
    %61 = arith.addf %54, %60 : vector<1x16x16x16xf32>
    %c0_42 = arith.constant 0 : index
    %c2_43 = arith.constant 2 : index
    %c9_44 = arith.constant 9 : index
    %c0_45 = arith.constant 0 : index
    %62 = vector.load %arg5[%c0_42, %c2_43, %c9_44, %c0_45] : memref<1x18x32x16xf32, #tpu.memory_space<vmem>>, vector<1x16x16x16xf32>
    %63 = vector.extract_strided_slice %4 {offsets = [2, 2, 0], sizes = [1, 1, 16], strides = [1, 1, 1]} : vector<3x3x16xf32> to vector<1x1x16xf32>
    %64 = vector.shape_cast %63 : vector<1x1x16xf32> to vector<16xf32>
    %65 = vector.shape_cast %64 : vector<16xf32> to vector<1x1x1x16xf32>
    %66 = vector.broadcast %65 : vector<1x1x1x16xf32> to vector<1x16x16x16xf32>
    %67 = arith.mulf %62, %66 : vector<1x16x16x16xf32>
    %68 = arith.addf %61, %67 : vector<1x16x16x16xf32>
    %c0_46 = arith.constant 0 : index
    %c0_47 = arith.constant 0 : index
    %69 = vector.load %arg3[%c0_46, %c0_47] : memref<1x16xf32, #tpu.memory_space<vmem>>, vector<1x16xf32>
    %70 = vector.shape_cast %69 : vector<1x16xf32> to vector<1x1x1x16xf32>
    %71 = vector.broadcast %70 : vector<1x1x1x16xf32> to vector<1x16x16x16xf32>
    %72 = arith.addf %68, %71 : vector<1x16x16x16xf32>
    %73 = arith.negf %72 : vector<1x16x16x16xf32>
    %74 = math.exp %73 : vector<1x16x16x16xf32>
    %cst_48 = arith.constant 1.000000e+00 : f32
    %75 = vector.broadcast %cst_48 : f32 to vector<1x16x16x16xf32>
    %76 = arith.addf %75, %74 : vector<1x16x16x16xf32>
    %77 = arith.divf %75, %76 : vector<1x16x16x16xf32>
    %78 = arith.mulf %72, %77 : vector<1x16x16x16xf32>
    %79 = arith.truncf %78 : vector<1x16x16x16xf32> to vector<1x16x16x16xbf16>
    %c0_49 = arith.constant 0 : index
    %c0_50 = arith.constant 0 : index
    %c0_51 = arith.constant 0 : index
    %c0_52 = arith.constant 0 : index
    %80 = vector.load %arg4[%c0_49, %c0_50, %c0_51, %c0_52] : memref<1x16x16x16xbf16, #tpu.memory_space<vmem>>, vector<1x16x16x16xbf16>
    tpu.vector_store %arg4[%c0_49, %c0_50, %c0_51, %c0_52], %79 {strides = array<i32>} : memref<1x16x16x16xbf16, #tpu.memory_space<vmem>>, vector<1x16x16x16xbf16>,
    return
  }
  func.func @transform_0(%arg0: i32) -> (i32, i32, i32, i32) {
    %c0_i32 = arith.constant 0 : i32
    %c0_i32_0 = arith.constant 0 : i32
    %c0_i32_1 = arith.constant 0 : i32
    %c0_i32_2 = arith.constant 0 : i32
    return %arg0, %c0_i32, %c0_i32_0, %c0_i32_1 : i32, i32, i32, i32
  }
  func.func @transform_1(%arg0: i32) -> (i32, i32, i32) {
    %c0_i32 = arith.constant 0 : i32
    %c0_i32_0 = arith.constant 0 : i32
    %c0_i32_1 = arith.constant 0 : i32
    %c0_i32_2 = arith.constant 0 : i32
    return %c0_i32, %c0_i32_0, %c0_i32_1 : i32, i32, i32
  }
  func.func @transform_2(%arg0: i32) -> (i32, i32) {
    %c0_i32 = arith.constant 0 : i32
    %c0_i32_0 = arith.constant 0 : i32
    %c0_i32_1 = arith.constant 0 : i32
    return %c0_i32, %c0_i32_0 : i32, i32
  }
  func.func @transform_3(%arg0: i32) -> (i32, i32, i32, i32) {
    %c0_i32 = arith.constant 0 : i32
    %c0_i32_0 = arith.constant 0 : i32
    %c0_i32_1 = arith.constant 0 : i32
    %c0_i32_2 = arith.constant 0 : i32
    return %arg0, %c0_i32, %c0_i32_0, %c0_i32_1 : i32, i32, i32, i32
  }
}

module attributes {stable_mosaic.version = 11 : i64} {
  func.func @_attn_kernel(%arg0: i32, %arg1: memref<1x256x16xbf16, #tpu.memory_space<vmem>>, %arg2: memref<64x256xf32, #tpu.memory_space<vmem>>, %arg3: memref<256x64xf32, #tpu.memory_space<vmem>>, %arg4: memref<2x16x64xbf16, #tpu.memory_space<vmem>>, %arg5: memref<2x1x64xf32, #tpu.memory_space<vmem>>, %arg6: memref<2x64x16xbf16, #tpu.memory_space<vmem>>, %arg7: memref<1x16xf32, #tpu.memory_space<vmem>>, %arg8: memref<64x64xf32, #tpu.memory_space<vmem>>, %arg9: memref<1x256x16xbf16, #tpu.memory_space<vmem>>) attributes {dimension_semantics = [#tpu.dimension_semantics<parallel>], iteration_bounds = array<i64: 2>, scalar_prefetch = 0 : i64, scratch_operands = 0 : i64, tpu.core_type = #tpu.core_type<tc>, window_params = [{transform_indices = @transform_0, window_bounds = array<i64: 1, 256, 16>}, {pipeline_mode = #tpu.pipeline_mode<synchronous>, transform_indices = @transform_1, window_bounds = array<i64: 64, 256>}, {pipeline_mode = #tpu.pipeline_mode<synchronous>, transform_indices = @transform_2, window_bounds = array<i64: 256, 64>}, {pipeline_mode = #tpu.pipeline_mode<synchronous>, transform_indices = @transform_3, window_bounds = array<i64: 2, 16, 64>}, {pipeline_mode = #tpu.pipeline_mode<synchronous>, transform_indices = @transform_4, window_bounds = array<i64: 2, 1, 64>}, {pipeline_mode = #tpu.pipeline_mode<synchronous>, transform_indices = @transform_5, window_bounds = array<i64: 2, 64, 16>}, {pipeline_mode = #tpu.pipeline_mode<synchronous>, transform_indices = @transform_6, window_bounds = array<i64: 1, 16>}, {pipeline_mode = #tpu.pipeline_mode<synchronous>, transform_indices = @transform_7, window_bounds = array<i64: 64, 64>}, {transform_indices = @transform_8, window_bounds = array<i64: 1, 256, 16>}]} {
    %c0 = arith.constant 0 : index
    %c0_0 = arith.constant 0 : index
    %c0_1 = arith.constant 0 : index
    %0 = vector.load %arg1[%c0, %c0_0, %c0_1] : memref<1x256x16xbf16, #tpu.memory_space<vmem>>, vector<1x256x16xbf16>
    %1 = vector.shape_cast %0 : vector<1x256x16xbf16> to vector<256x16xbf16>
    %2 = arith.extf %1 : vector<256x16xbf16> to vector<256x16xf32>
    %c0_2 = arith.constant 0 : index
    %c0_3 = arith.constant 0 : index
    %3 = vector.load %arg2[%c0_2, %c0_3] : memref<64x256xf32, #tpu.memory_space<vmem>>, vector<64x256xf32>
    %cst = arith.constant dense<0.000000e+00> : vector<64x16xf32>
    %4 = tpu.matmul %3, %2, %cst {dimension_numbers = #tpu.dot_dimension_numbers<[1], [0], [0], [1], [0, 0, 1, 1], [], []>} : vector<64x256xf32>, vector<256x16xf32>, vector<64x16xf32> -> vector<64x16xf32>
    %5 = arith.truncf %4 : vector<64x16xf32> to vector<64x16xbf16>
    %c0_4 = arith.constant 0 : index
    %c0_5 = arith.constant 0 : index
    %6 = vector.load %arg8[%c0_4, %c0_5] : memref<64x64xf32, #tpu.memory_space<vmem>>, vector<64x64xf32>
    %cst_6 = arith.constant 0.000000e+00 : f32
    %7 = vector.broadcast %cst_6 : f32 to vector<64x16xf32>
    %c0_7 = arith.constant 0 : index
    %c0_8 = arith.constant 0 : index
    %c0_9 = arith.constant 0 : index
    %8 = vector.load %arg4[%c0_7, %c0_8, %c0_9] : memref<2x16x64xbf16, #tpu.memory_space<vmem>>, vector<1x16x64xbf16>
    %9 = vector.shape_cast %8 : vector<1x16x64xbf16> to vector<16x64xbf16>
    %cst_10 = arith.constant dense<0.000000e+00> : vector<64x64xf32>
    %10 = tpu.matmul %5, %9, %cst_10 {dimension_numbers = #tpu.dot_dimension_numbers<[1], [0], [0], [1], [0, 0, 1, 1], [], []>} : vector<64x16xbf16>, vector<16x64xbf16>, vector<64x64xf32> -> vector<64x64xf32>
    %c0_11 = arith.constant 0 : index
    %c0_12 = arith.constant 0 : index
    %c0_13 = arith.constant 0 : index
    %11 = vector.load %arg5[%c0_11, %c0_12, %c0_13] : memref<2x1x64xf32, #tpu.memory_space<vmem>>, vector<1x1x64xf32>
    %12 = vector.shape_cast %11 : vector<1x1x64xf32> to vector<1x64xf32>
    %13 = vector.broadcast %12 : vector<1x64xf32> to vector<64x64xf32>
    %14 = arith.addf %10, %13 : vector<64x64xf32>
    %cst_14 = arith.constant dense<0.000000e+00> : vector<64x64xf32>
    %15 = tpu.matmul %6, %14, %cst_14 {dimension_numbers = #tpu.dot_dimension_numbers<[1], [1], [0], [0], [0, 0, 1, 0], [], []>} : vector<64x64xf32>, vector<64x64xf32>, vector<64x64xf32> -> vector<64x64xf32>
    %16 = arith.mulf %14, %15 : vector<64x64xf32>
    %17 = arith.truncf %16 : vector<64x64xf32> to vector<64x64xbf16>
    %c0_15 = arith.constant 0 : index
    %c0_16 = arith.constant 0 : index
    %c0_17 = arith.constant 0 : index
    %18 = vector.load %arg6[%c0_15, %c0_16, %c0_17] : memref<2x64x16xbf16, #tpu.memory_space<vmem>>, vector<1x64x16xbf16>
    %19 = vector.shape_cast %18 : vector<1x64x16xbf16> to vector<64x16xbf16>
    %cst_18 = arith.constant dense<0.000000e+00> : vector<64x16xf32>
    %20 = tpu.matmul %17, %19, %cst_18 {dimension_numbers = #tpu.dot_dimension_numbers<[1], [0], [0], [1], [0, 0, 1, 1], [], []>} : vector<64x64xbf16>, vector<64x16xbf16>, vector<64x16xf32> -> vector<64x16xf32>
    %21 = arith.addf %7, %20 : vector<64x16xf32>
    %c1 = arith.constant 1 : index
    %c0_19 = arith.constant 0 : index
    %c0_20 = arith.constant 0 : index
    %22 = vector.load %arg4[%c1, %c0_19, %c0_20] : memref<2x16x64xbf16, #tpu.memory_space<vmem>>, vector<1x16x64xbf16>
    %23 = vector.shape_cast %22 : vector<1x16x64xbf16> to vector<16x64xbf16>
    %cst_21 = arith.constant dense<0.000000e+00> : vector<64x64xf32>
    %24 = tpu.matmul %5, %23, %cst_21 {dimension_numbers = #tpu.dot_dimension_numbers<[1], [0], [0], [1], [0, 0, 1, 1], [], []>} : vector<64x16xbf16>, vector<16x64xbf16>, vector<64x64xf32> -> vector<64x64xf32>
    %c1_22 = arith.constant 1 : index
    %c0_23 = arith.constant 0 : index
    %c0_24 = arith.constant 0 : index
    %25 = vector.load %arg5[%c1_22, %c0_23, %c0_24] : memref<2x1x64xf32, #tpu.memory_space<vmem>>, vector<1x1x64xf32>
    %26 = vector.shape_cast %25 : vector<1x1x64xf32> to vector<1x64xf32>
    %27 = vector.broadcast %26 : vector<1x64xf32> to vector<64x64xf32>
    %28 = arith.addf %24, %27 : vector<64x64xf32>
    %cst_25 = arith.constant dense<0.000000e+00> : vector<64x64xf32>
    %29 = tpu.matmul %6, %28, %cst_25 {dimension_numbers = #tpu.dot_dimension_numbers<[1], [1], [0], [0], [0, 0, 1, 0], [], []>} : vector<64x64xf32>, vector<64x64xf32>, vector<64x64xf32> -> vector<64x64xf32>
    %30 = arith.mulf %28, %29 : vector<64x64xf32>
    %31 = arith.truncf %30 : vector<64x64xf32> to vector<64x64xbf16>
    %c1_26 = arith.constant 1 : index
    %c0_27 = arith.constant 0 : index
    %c0_28 = arith.constant 0 : index
    %32 = vector.load %arg6[%c1_26, %c0_27, %c0_28] : memref<2x64x16xbf16, #tpu.memory_space<vmem>>, vector<1x64x16xbf16>
    %33 = vector.shape_cast %32 : vector<1x64x16xbf16> to vector<64x16xbf16>
    %cst_29 = arith.constant dense<0.000000e+00> : vector<64x16xf32>
    %34 = tpu.matmul %31, %33, %cst_29 {dimension_numbers = #tpu.dot_dimension_numbers<[1], [0], [0], [1], [0, 0, 1, 1], [], []>} : vector<64x64xbf16>, vector<64x16xbf16>, vector<64x16xf32> -> vector<64x16xf32>
    %35 = arith.addf %21, %34 : vector<64x16xf32>
    %c0_30 = arith.constant 0 : index
    %c0_31 = arith.constant 0 : index
    %36 = vector.load %arg3[%c0_30, %c0_31] : memref<256x64xf32, #tpu.memory_space<vmem>>, vector<256x64xf32>
    %cst_32 = arith.constant dense<0.000000e+00> : vector<256x16xf32>
    %37 = tpu.matmul %36, %35, %cst_32 {dimension_numbers = #tpu.dot_dimension_numbers<[1], [0], [0], [1], [0, 0, 1, 1], [], []>} : vector<256x64xf32>, vector<64x16xf32>, vector<256x16xf32> -> vector<256x16xf32>
    %c0_33 = arith.constant 0 : index
    %c0_34 = arith.constant 0 : index
    %38 = vector.load %arg7[%c0_33, %c0_34] : memref<1x16xf32, #tpu.memory_space<vmem>>, vector<1x16xf32>
    %39 = vector.broadcast %38 : vector<1x16xf32> to vector<256x16xf32>
    %40 = arith.addf %37, %39 : vector<256x16xf32>
    %41 = arith.negf %40 : vector<256x16xf32>
    %42 = math.exp %41 : vector<256x16xf32>
    %cst_35 = arith.constant 1.000000e+00 : f32
    %43 = vector.broadcast %cst_35 : f32 to vector<256x16xf32>
    %44 = arith.addf %43, %42 : vector<256x16xf32>
    %45 = arith.divf %43, %44 : vector<256x16xf32>
    %46 = arith.mulf %45, %2 : vector<256x16xf32>
    %47 = arith.truncf %46 : vector<256x16xf32> to vector<256x16xbf16>
    %c0_36 = arith.constant 0 : index
    %c0_37 = arith.constant 0 : index
    %c0_38 = arith.constant 0 : index
    %48 = vector.load %arg9[%c0_36, %c0_37, %c0_38] : memref<1x256x16xbf16, #tpu.memory_space<vmem>>, vector<1x256x16xbf16>
    %49 = vector.shape_cast %48 : vector<1x256x16xbf16> to vector<256x16xbf16>
    %50 = vector.shape_cast %47 : vector<256x16xbf16> to vector<1x256x16xbf16>
    tpu.vector_store %arg9[%c0_36, %c0_37, %c0_38], %50 {strides = array<i32>} : memref<1x256x16xbf16, #tpu.memory_space<vmem>>, vector<1x256x16xbf16>,
    return
  }
  func.func @transform_0(%arg0: i32) -> (i32, i32, i32) {
    %c0_i32 = arith.constant 0 : i32
    %c0_i32_0 = arith.constant 0 : i32
    %c0_i32_1 = arith.constant 0 : i32
    return %arg0, %c0_i32, %c0_i32_0 : i32, i32, i32
  }
  func.func @transform_1(%arg0: i32) -> (i32, i32) {
    %c0_i32 = arith.constant 0 : i32
    %c0_i32_0 = arith.constant 0 : i32
    %c0_i32_1 = arith.constant 0 : i32
    return %c0_i32, %c0_i32_0 : i32, i32
  }
  func.func @transform_2(%arg0: i32) -> (i32, i32) {
    %c0_i32 = arith.constant 0 : i32
    %c0_i32_0 = arith.constant 0 : i32
    %c0_i32_1 = arith.constant 0 : i32
    return %c0_i32, %c0_i32_0 : i32, i32
  }
  func.func @transform_3(%arg0: i32) -> (i32, i32, i32) {
    %c0_i32 = arith.constant 0 : i32
    %c0_i32_0 = arith.constant 0 : i32
    %c0_i32_1 = arith.constant 0 : i32
    %c0_i32_2 = arith.constant 0 : i32
    return %c0_i32, %c0_i32_0, %c0_i32_1 : i32, i32, i32
  }
  func.func @transform_4(%arg0: i32) -> (i32, i32, i32) {
    %c0_i32 = arith.constant 0 : i32
    %c0_i32_0 = arith.constant 0 : i32
    %c0_i32_1 = arith.constant 0 : i32
    %c0_i32_2 = arith.constant 0 : i32
    return %c0_i32, %c0_i32_0, %c0_i32_1 : i32, i32, i32
  }
  func.func @transform_5(%arg0: i32) -> (i32, i32, i32) {
    %c0_i32 = arith.constant 0 : i32
    %c0_i32_0 = arith.constant 0 : i32
    %c0_i32_1 = arith.constant 0 : i32
    %c0_i32_2 = arith.constant 0 : i32
    return %c0_i32, %c0_i32_0, %c0_i32_1 : i32, i32, i32
  }
  func.func @transform_6(%arg0: i32) -> (i32, i32) {
    %c0_i32 = arith.constant 0 : i32
    %c0_i32_0 = arith.constant 0 : i32
    %c0_i32_1 = arith.constant 0 : i32
    return %c0_i32, %c0_i32_0 : i32, i32
  }
  func.func @transform_7(%arg0: i32) -> (i32, i32) {
    %c0_i32 = arith.constant 0 : i32
    %c0_i32_0 = arith.constant 0 : i32
    %c0_i32_1 = arith.constant 0 : i32
    return %c0_i32, %c0_i32_0 : i32, i32
  }
  func.func @transform_8(%arg0: i32) -> (i32, i32, i32) {
    %c0_i32 = arith.constant 0 : i32
    %c0_i32_0 = arith.constant 0 : i32
    %c0_i32_1 = arith.constant 0 : i32
    return %arg0, %c0_i32, %c0_i32_0 : i32, i32, i32
  }
}

module attributes {stable_mosaic.version = 11 : i64} {
  func.func @_mlp_res_kernel(%arg0: i32, %arg1: memref<256x16xbf16, #tpu.memory_space<vmem>>, %arg2: memref<256x16xf32, #tpu.memory_space<vmem>>, %arg3: memref<16x32xbf16, #tpu.memory_space<vmem>>, %arg4: memref<1x32xf32, #tpu.memory_space<vmem>>, %arg5: memref<32x16xbf16, #tpu.memory_space<vmem>>, %arg6: memref<1x16xf32, #tpu.memory_space<vmem>>, %arg7: memref<256x16xf32, #tpu.memory_space<vmem>>) attributes {dimension_semantics = [#tpu.dimension_semantics<parallel>], iteration_bounds = array<i64: 2>, scalar_prefetch = 0 : i64, scratch_operands = 0 : i64, tpu.core_type = #tpu.core_type<tc>, window_params = [{transform_indices = @transform_0, window_bounds = array<i64: 256, 16>}, {transform_indices = @transform_1, window_bounds = array<i64: 256, 16>}, {pipeline_mode = #tpu.pipeline_mode<synchronous>, transform_indices = @transform_2, window_bounds = array<i64: 16, 32>}, {pipeline_mode = #tpu.pipeline_mode<synchronous>, transform_indices = @transform_3, window_bounds = array<i64: 1, 32>}, {pipeline_mode = #tpu.pipeline_mode<synchronous>, transform_indices = @transform_4, window_bounds = array<i64: 32, 16>}, {pipeline_mode = #tpu.pipeline_mode<synchronous>, transform_indices = @transform_5, window_bounds = array<i64: 1, 16>}, {transform_indices = @transform_6, window_bounds = array<i64: 256, 16>}]} {
    %c0 = arith.constant 0 : index
    %c0_0 = arith.constant 0 : index
    %0 = vector.load %arg1[%c0, %c0_0] : memref<256x16xbf16, #tpu.memory_space<vmem>>, vector<256x16xbf16>
    %c0_1 = arith.constant 0 : index
    %c0_2 = arith.constant 0 : index
    %1 = vector.load %arg3[%c0_1, %c0_2] : memref<16x32xbf16, #tpu.memory_space<vmem>>, vector<16x32xbf16>
    %cst = arith.constant dense<0.000000e+00> : vector<256x32xf32>
    %2 = tpu.matmul %0, %1, %cst {dimension_numbers = #tpu.dot_dimension_numbers<[1], [0], [0], [1], [0, 0, 1, 1], [], []>} : vector<256x16xbf16>, vector<16x32xbf16>, vector<256x32xf32> -> vector<256x32xf32>
    %c0_3 = arith.constant 0 : index
    %c0_4 = arith.constant 0 : index
    %3 = vector.load %arg4[%c0_3, %c0_4] : memref<1x32xf32, #tpu.memory_space<vmem>>, vector<1x32xf32>
    %4 = vector.broadcast %3 : vector<1x32xf32> to vector<256x32xf32>
    %5 = arith.addf %2, %4 : vector<256x32xf32>
    %6 = arith.negf %5 : vector<256x32xf32>
    %7 = math.exp %6 : vector<256x32xf32>
    %cst_5 = arith.constant 1.000000e+00 : f32
    %8 = vector.broadcast %cst_5 : f32 to vector<256x32xf32>
    %9 = arith.addf %8, %7 : vector<256x32xf32>
    %10 = arith.divf %8, %9 : vector<256x32xf32>
    %11 = arith.mulf %5, %10 : vector<256x32xf32>
    %12 = arith.truncf %11 : vector<256x32xf32> to vector<256x32xbf16>
    %c0_6 = arith.constant 0 : index
    %c0_7 = arith.constant 0 : index
    %13 = vector.load %arg5[%c0_6, %c0_7] : memref<32x16xbf16, #tpu.memory_space<vmem>>, vector<32x16xbf16>
    %cst_8 = arith.constant dense<0.000000e+00> : vector<256x16xf32>
    %14 = tpu.matmul %12, %13, %cst_8 {dimension_numbers = #tpu.dot_dimension_numbers<[1], [0], [0], [1], [0, 0, 1, 1], [], []>} : vector<256x32xbf16>, vector<32x16xbf16>, vector<256x16xf32> -> vector<256x16xf32>
    %c0_9 = arith.constant 0 : index
    %c0_10 = arith.constant 0 : index
    %15 = vector.load %arg6[%c0_9, %c0_10] : memref<1x16xf32, #tpu.memory_space<vmem>>, vector<1x16xf32>
    %16 = vector.broadcast %15 : vector<1x16xf32> to vector<256x16xf32>
    %17 = arith.addf %14, %16 : vector<256x16xf32>
    %c0_11 = arith.constant 0 : index
    %c0_12 = arith.constant 0 : index
    %18 = vector.load %arg2[%c0_11, %c0_12] : memref<256x16xf32, #tpu.memory_space<vmem>>, vector<256x16xf32>
    %19 = arith.addf %17, %18 : vector<256x16xf32>
    %c0_13 = arith.constant 0 : index
    %c0_14 = arith.constant 0 : index
    %20 = vector.load %arg7[%c0_13, %c0_14] : memref<256x16xf32, #tpu.memory_space<vmem>>, vector<256x16xf32>
    tpu.vector_store %arg7[%c0_13, %c0_14], %19 {strides = array<i32>} : memref<256x16xf32, #tpu.memory_space<vmem>>, vector<256x16xf32>,
    return
  }
  func.func @transform_0(%arg0: i32) -> (i32, i32) {
    %c0_i32 = arith.constant 0 : i32
    %c0_i32_0 = arith.constant 0 : i32
    return %arg0, %c0_i32 : i32, i32
  }
  func.func @transform_1(%arg0: i32) -> (i32, i32) {
    %c0_i32 = arith.constant 0 : i32
    %c0_i32_0 = arith.constant 0 : i32
    return %arg0, %c0_i32 : i32, i32
  }
  func.func @transform_2(%arg0: i32) -> (i32, i32) {
    %c0_i32 = arith.constant 0 : i32
    %c0_i32_0 = arith.constant 0 : i32
    %c0_i32_1 = arith.constant 0 : i32
    return %c0_i32, %c0_i32_0 : i32, i32
  }
  func.func @transform_3(%arg0: i32) -> (i32, i32) {
    %c0_i32 = arith.constant 0 : i32
    %c0_i32_0 = arith.constant 0 : i32
    %c0_i32_1 = arith.constant 0 : i32
    return %c0_i32, %c0_i32_0 : i32, i32
  }
  func.func @transform_4(%arg0: i32) -> (i32, i32) {
    %c0_i32 = arith.constant 0 : i32
    %c0_i32_0 = arith.constant 0 : i32
    %c0_i32_1 = arith.constant 0 : i32
    return %c0_i32, %c0_i32_0 : i32, i32
  }
  func.func @transform_5(%arg0: i32) -> (i32, i32) {
    %c0_i32 = arith.constant 0 : i32
    %c0_i32_0 = arith.constant 0 : i32
    %c0_i32_1 = arith.constant 0 : i32
    return %c0_i32, %c0_i32_0 : i32, i32
  }
  func.func @transform_6(%arg0: i32) -> (i32, i32) {
    %c0_i32 = arith.constant 0 : i32
    %c0_i32_0 = arith.constant 0 : i32
    return %arg0, %c0_i32 : i32, i32
  }
}

</mosaic_0001>

<bundles_post_ra>
// kernel: block_conv_selfattn.5
= control target key start
LH: loop header
LB: loop body
LE: loop exit
PB: predicated region body
PF: predicated region fallthrough
CT: control target
= control target key end

     0   :  { %s1653_s21 = smov 0   ;;  %s2038_s0 = inlined_call_operand.vmem [shape: bf16[512,16], index: 0, kind: input, shape index: {}]   ;;  %s2039_s1 = inlined_call_operand.vmem [shape: f32[512,16], index: 1, kind: input, shape index: {}]   ;;  %s2040_s2 = inlined_call_operand.vmem [shape: bf16[16,32], index: 2, kind: input, shape index: {}]   ;;  %s2041_s3 = inlined_call_operand.vmem [shape: f32[1,32], index: 3, kind: input, shape index: {}]   ;;  %s2042_s4 = inlined_call_operand.vmem [shape: bf16[32,16], index: 4, kind: input, shape index: {}]   ;;  %s2043_s5 = inlined_call_operand.vmem [shape: f32[1,16], index: 5, kind: input, shape index: {}]   ;;  %s2044_s6 = inlined_call_operand.vmem [shape: f32[512,16], index: 6, kind: output, shape index: {}]  }
   0x1 LB: > { %s1252_s22 = sadd.s32 4294967295, %s1616_s21   ;;  %p1256_p0 = scmp.ge.s32.totalorder %s1616_s21, 1  ;;  %s1616_s21 = sphi %s1653_s21, %s16_s21  }
   0x2   : > { %p224_p1 = scmp.lt.s32.totalorder %s1616_s21, 3 }
   0x4   : > { %p225_p2 = pnand %p1256_p0, %p224_p1 }
   0x5   : > { %s1257_s25 = sshll.u32 (!%p225_p2), %s1252_s22, 5 }
   0x6   : > { %228 = sbr.rel (%p225_p2) target bundleno = 517 (0x205), region = 44  ;;  %p260_p3 = scmp.lt.s32.totalorder (!%p225_p2), %s1257_s25, 63 }
   0xb   : > { %v1463_v0 = vld [vmem:[%s2040_s2] sm:$0xff]   ;;  %s2046_s25 = smov (!%p260_p3, %s1257_s25), 63  ;;  %vm405_vm0 = vcmask 130048   ;;  %v1480_v17 = vld [vmem:[%s2042_s4 + $0x8] sm:$0xff]   ;;  %vm878_vm1 = vcmask 261120  }
   0xc   : > { %1385 = vmatprep.subr.bf16.mxu0 %v1463_v0  ;;  %s1258_s26 = sshll.u32 %s2046_s25, 2  ;;  %1419 = vmatprep.subr.bf16.mxu1 %v1480_v17  ;;  %v1481_v18 = vld [vmem:[%s2042_s4] sm:$0xff]   ;;  %s1260_s12 = sshll.u32 %s2046_s25, 3 }
   0xd   : > { %1386 = vmatpush3.bf16.msra.mxu0 %v1463_v0  ;;  %s1670_s29 = scalar_lea.vmem %s2038_s0, %s1258_s26  ;;  %1420 = vmatpush3.bf16.msra.mxu1 %v1480_v17  ;;  %v1713_v19 = vld [vmem:[%s2041_s3] ss:$0 sm:$0xff]  ;;  %s1895_s15 = scalar_lea.vmem %s2039_s1, %s1260_s12 }
   0xe   : > { %v1464_v1 = vld [vmem:[%s1670_s29] sm:$0xff]   ;;  %v1465_v2 = vld [vmem:[%s1670_s29 + $0x8] sm:$0xff]   ;;  %v1466_v3 = vld [vmem:[%s1670_s29 + $0x10] sm:$0xff]   ;;  %1421 = vmatprep.subr.bf16.mxu1 %v1481_v18  ;;  %s1907_s20 = scalar_lea.vmem %s2044_s6, %s1260_s12 }
   0xf   : > { %1387 = vmatprep.mubr.msk.bf16.mxu0 %vm405_vm0, %v1464_v1  ;;  %v1467_v4 = vld [vmem:[%s1670_s29 + $0x18] sm:$0xff]   ;;  %v1468_v5 = vld [vmem:[%s1670_s29 + $0x20] sm:$0xff]   ;;  %v1469_v6 = vld [vmem:[%s1670_s29 + $0x28] sm:$0xff]  }
  0x10   : > { %1388 = vmatmul.mubr.msk.bf16.vlgmr.msra.gmra.mxu0 %vm405_vm0, %v1465_v2  ;;  %v1470_v7 = vld [vmem:[%s1670_s29 + $0x30] sm:$0xff]   ;;  %v1471_v8 = vld [vmem:[%s1670_s29 + $0x38] sm:$0xff]   ;;  %v1472_v9 = vld [vmem:[%s1670_s29 + $0x40] sm:$0xff]  }
  0x11   : > { %1391 = vmatprep.mubr.msk.bf16.mxu0 %vm405_vm0, %v1466_v3  ;;  %v1473_v10 = vld [vmem:[%s1670_s29 + $0x48] sm:$0xff]   ;;  %v1474_v11 = vld [vmem:[%s1670_s29 + $0x50] sm:$0xff]   ;;  %v1475_v12 = vld [vmem:[%s1670_s29 + $0x58] sm:$0xff]   ;;  %1422 = vmatpush3.bf16.msra.mxu1 %v1481_v18 }
  0x12   : > { %v1476_v13 = vld [vmem:[%s1670_s29 + $0x60] sm:$0xff]   ;;  %v1477_v14 = vld [vmem:[%s1670_s29 + $0x68] sm:$0xff]   ;;  %v1478_v15 = vld [vmem:[%s1670_s29 + $0x70] sm:$0xff]  }
  0x13   : > { %v1479_v16 = vld [vmem:[%s1670_s29 + $0x78] sm:$0xff]  }
  0x18   : > { %1392 = vmatmul.mubr.msk.bf16.gmra.mxu0 %vm405_vm0, %v1467_v4 }
  0x19   : > { %1395 = vmatprep.mubr.msk.bf16.mxu0 %vm405_vm0, %v1468_v5 }
  0x20   : > { %1396 = vmatmul.mubr.msk.bf16.gmra.mxu0 %vm405_vm0, %v1469_v6 }
  0x21   : > { %1399 = vmatprep.mubr.msk.bf16.mxu0 %vm405_vm0, %v1470_v7 }
  0x28   : > { %1400 = vmatmul.mubr.msk.bf16.gmra.mxu0 %vm405_vm0, %v1471_v8 }
  0x29   : > { %1403 = vmatprep.mubr.msk.bf16.mxu0 %vm405_vm0, %v1472_v9 }
  0x30   : > { %1404 = vmatmul.mubr.msk.bf16.gmra.mxu0 %vm405_vm0, %v1473_v10 }
  0x31   : > { %1407 = vmatprep.mubr.msk.bf16.mxu0 %vm405_vm0, %v1474_v11 }
  0x38   : > { %1408 = vmatmul.mubr.msk.bf16.gmra.mxu0 %vm405_vm0, %v1475_v12 }
  0x39   : > { %1411 = vmatprep.mubr.msk.bf16.mxu0 %vm405_vm0, %v1476_v13 }
  0x40   : > { %1412 = vmatmul.mubr.msk.bf16.gmra.mxu0 %vm405_vm0, %v1477_v14 }
  0x41   : > { %1415 = vmatprep.mubr.msk.bf16.mxu0 %vm405_vm0, %v1478_v15 }
  0x48   : > { %1416 = vmatmul.mubr.msk.bf16.gmra.mxu0 %vm405_vm0, %v1479_v16 }
  0xd0   : > { %v1389_v20 = vpop.f32.mrf.mxu0 }
  0xd1   : > { %v1716_v21 = vadd.f32 %v1389_v20, %v1713_v19 }
  0xd2   : > { %v488_v22 = vpop.f32.mrf.mxu0 }
  0xd3   : > { %v1299_v23 = vmul.f32 -1.442695, %v1716_v21  ;;  %v1720_v24 = vadd.f32 %v1713_v19, %v488_v22 }
  0xd4   : > { %v1390_v25 = vpop.f32.mrf.mxu0 }
  0xd5   : > { %1482 = vpow2.f32 %v1299_v23  ;;  %v1297_v26 = vmul.f32 -1.442695, %v1720_v24  ;;  %v1724_v27 = vadd.f32 %v1390_v25, %v1713_v19 }
  0xd6   : > { %v491_v28 = vpop.f32.mrf.mxu0 }
  0xd7   : > { %1484 = vpow2.f32 %v1297_v26  ;;  %v1300_v29 = vmul.f32 -1.442695, %v1724_v27  ;;  %v1728_v30 = vadd.f32 %v1713_v19, %v491_v28 }
  0xd8   : > { %v1393_v31 = vpop.f32.mrf.mxu0 }
  0xd9   : > { %1486 = vpow2.f32 %v1300_v29  ;;  %v1298_v32 = vmul.f32 -1.442695, %v1728_v30  ;;  %v1732_v33 = vadd.f32 %v1393_v31, %v1713_v19 }
  0xda   : > { %v504_v34 = vpop.f32.mrf.mxu0 }
  0xdb   : > { %1488 = vpow2.f32 %v1298_v32  ;;  %v1303_v35 = vmul.f32 -1.442695, %v1732_v33  ;;  %v1736_v36 = vadd.f32 %v1713_v19, %v504_v34 }
  0xdc   : > { %v1394_v37 = vpop.f32.mrf.mxu0 }
  0xdd   : > { %1490 = vpow2.f32 %v1303_v35  ;;  %v1301_v38 = vmul.f32 -1.442695, %v1736_v36  ;;  %v1740_v39 = vadd.f32 %v1394_v37, %v1713_v19 }
  0xde   : > { %v507_v40 = vpop.f32.mrf.mxu0 }
  0xdf   : > { %1492 = vpow2.f32 %v1301_v38  ;;  %v1304_v41 = vmul.f32 -1.442695, %v1740_v39  ;;  %v1744_v42 = vadd.f32 %v1713_v19, %v507_v40 }
  0xe0   : > { %v1397_v43 = vpop.f32.mrf.mxu0 }
  0xe1   : > { %1494 = vpow2.f32 %v1304_v41  ;;  %v1302_v44 = vmul.f32 -1.442695, %v1744_v42  ;;  %v1748_v45 = vadd.f32 %v1397_v43, %v1713_v19 }
  0xe2   : > { %v1483_v46 = vpop.eup %1482  ;;  %v520_v47 = vpop.f32.mrf.mxu0 }
  0xe3   : > { %v713_v48 = vadd.f32 1.0, %v1483_v46  ;;  %1496 = vpow2.f32 %v1302_v44  ;;  %v1307_v49 = vmul.f32 -1.442695, %v1748_v45  ;;  %v1752_v50 = vadd.f32 %v1713_v19, %v520_v47 }
  0xe4   : > { %v1485_v51 = vpop.eup %1484  ;;  %v1398_v52 = vpop.f32.mrf.mxu0 }
  0xe5   : > { %1498 = vrcp.f32 %v713_v48  ;;  %v711_v53 = vadd.f32 1.0, %v1485_v51  ;;  %v1305_v54 = vmul.f32 -1.442695, %v1752_v50  ;;  %v1756_v55 = vadd.f32 %v1398_v52, %v1713_v19 }
  0xe6   : > { %v1487_v56 = vpop.eup %1486  ;;  %1500 = vpow2.f32 %v1307_v49  ;;  %v523_v57 = vpop.f32.mrf.mxu0 }
  0xe7   : > { %1502 = vrcp.f32 %v711_v53  ;;  %v714_v58 = vadd.f32 1.0, %v1487_v56  ;;  %v1308_v59 = vmul.f32 -1.442695, %v1756_v55  ;;  %v1760_v60 = vadd.f32 %v1713_v19, %v523_v57 }
  0xe8   : > { %v1489_v61 = vpop.eup %1488  ;;  %1504 = vpow2.f32 %v1305_v54  ;;  %v1401_v62 = vpop.f32.mrf.mxu0 }
  0xe9   : > { %1506 = vrcp.f32 %v714_v58  ;;  %v712_v63 = vadd.f32 1.0, %v1489_v61  ;;  %v1306_v0 = vmul.f32 -1.442695, %v1760_v60  ;;  %v1764_v1 = vadd.f32 %v1401_v62, %v1713_v19 }
  0xea   : > { %v1491_v2 = vpop.eup %1490  ;;  %1508 = vpow2.f32 %v1308_v59  ;;  %v536_v3 = vpop.f32.mrf.mxu0 }
  0xeb   : > { %1510 = vrcp.f32 %v712_v63  ;;  %v717_v4 = vadd.f32 1.0, %v1491_v2  ;;  %v1311_v5 = vmul.f32 -1.442695, %v1764_v1  ;;  %v1768_v6 = vadd.f32 %v1713_v19, %v536_v3 }
  0xec   : > { %v1493_v7 = vpop.eup %1492  ;;  %1512 = vpow2.f32 %v1306_v0  ;;  %v1402_v8 = vpop.f32.mrf.mxu0 }
  0xed   : > { %1514 = vrcp.f32 %v717_v4  ;;  %v715_v9 = vadd.f32 1.0, %v1493_v7  ;;  %v1309_v10 = vmul.f32 -1.442695, %v1768_v6  ;;  %v1772_v11 = vadd.f32 %v1402_v8, %v1713_v19 }
  0xee   : > { %v1495_v12 = vpop.eup %1494  ;;  %1516 = vpow2.f32 %v1311_v5  ;;  %v539_v13 = vpop.f32.mrf.mxu0 }
  0xef   : > { %1518 = vrcp.f32 %v715_v9  ;;  %v718_v14 = vadd.f32 1.0, %v1495_v12  ;;  %v1312_v15 = vmul.f32 -1.442695, %v1772_v11  ;;  %v1776_v16 = vadd.f32 %v1713_v19, %v539_v13 }
  0xf0   : > { %v1497_v17 = vpop.eup %1496  ;;  %1520 = vpow2.f32 %v1309_v10  ;;  %v1405_v18 = vpop.f32.mrf.mxu0 }
  0xf1   : > { %1522 = vrcp.f32 %v718_v14  ;;  %v716_v20 = vadd.f32 1.0, %v1497_v17  ;;  %v1310_v22 = vmul.f32 -1.442695, %v1776_v16  ;;  %v1780_v23 = vadd.f32 %v1405_v18, %v1713_v19 }
  0xf2   : > { %v1499_v25 = vpop.eup %1498  ;;  %1524 = vpow2.f32 %v1312_v15  ;;  %v552_v26 = vpop.f32.mrf.mxu0 }
  0xf3   : > { %v1501_v28 = vpop.eup %1500  ;;  %1526 = vrcp.f32 %v716_v20  ;;  %v1315_v29 = vmul.f32 -1.442695, %v1780_v23  ;;  %v1784_v31 = vadd.f32 %v1713_v19, %v552_v26  ;;  %v809_v61 = vmul.f32 %v1499_v25, %v1716_v21 }
  0xf4   : > { %v1503_v32 = vpop.eup %1502  ;;  %v721_v34 = vadd.f32 1.0, %v1501_v28  ;;  %1528 = vpow2.f32 %v1310_v22  ;;  %v1406_v35 = vpop.f32.mrf.mxu0 }
  0xf5   : > { %v1505_v37 = vpop.eup %1504  ;;  %1530 = vpow2.f32 %v1315_v29  ;;  %v1313_v38 = vmul.f32 -1.442695, %v1784_v31  ;;  %v1788_v40 = vadd.f32 %v1406_v35, %v1713_v19  ;;  %v807_v56 = vmul.f32 %v1503_v32, %v1720_v24 }
  0xf6   : > { %v1507_v41 = vpop.eup %1506  ;;  %1532 = vrcp.f32 %v721_v34  ;;  %v719_v43 = vadd.f32 1.0, %v1505_v37  ;;  %v555_v44 = vpop.f32.mrf.mxu0 }
  0xf7   : > { %v1509_v46 = vpop.eup %1508  ;;  %1534 = vpow2.f32 %v1313_v38  ;;  %v1316_v47 = vmul.f32 -1.442695, %v1788_v40  ;;  %v1792_v48 = vadd.f32 %v1713_v19, %v555_v44  ;;  %v810_v51 = vmul.f32 %v1507_v41, %v1724_v27 }
  0xf8   : > { %v1511_v49 = vpop.eup %1510  ;;  %1536 = vrcp.f32 %v719_v43  ;;  %v722_v52 = vadd.f32 1.0, %v1509_v46  ;;  %v1409_v53 = vpop.f32.mrf.mxu0 }
  0xf9   : > { %v1513_v54 = vpop.eup %1512  ;;  %v808_v57 = vmul.f32 %v1511_v49, %v1728_v30  ;;  %1538 = vpow2.f32 %v1316_v47  ;;  %v1314_v58 = vmul.f32 -1.442695, %v1792_v48  ;;  %v1800_v63 = vadd.f32 %v1409_v53, %v1713_v19 }
  0xfa   : > { %v1515_v59 = vpop.eup %1514  ;;  %1540 = vrcp.f32 %v722_v52  ;;  %v720_v62 = vadd.f32 1.0, %v1513_v54  ;;  %v568_v27 = vpop.f32.mrf.mxu0  ;;  %v840_v30 = vpack.c.bf16 %v810_v51, %v809_v61 }
  0xfb   : > { %v1517_v0 = vpop.eup %1516  ;;  %1542 = vpow2.f32 %v1314_v58  ;;  %v1803_v2 = vadd.f32 %v1713_v19, %v568_v27  ;;  %v839_v24 = vpack.c.bf16 %v808_v57, %v807_v56  ;;  %v1319_v5 = vmul.f32 -1.442695, %v1800_v63 }
  0xfc   : > { %v1519_v3 = vpop.eup %1518  ;;  %1544 = vrcp.f32 %v720_v62  ;;  %v725_v4 = vadd.f32 1.0, %v1517_v0  ;;  %v1410_v7 = vpop.f32.mrf.mxu0  ;;  %v813_v28 = vmul.f32 %v1515_v59, %v1732_v33 }
  0xfd   : > { %v1521_v21 = vpop.eup %1520  ;;  %v1317_v8 = vmul.f32 -1.442695, %v1803_v2  ;;  %v1808_v9 = vadd.f32 %v1410_v7, %v1713_v19  ;;  %1423 = vmatprep.mubr.msk.bf16.mxu1 %vm878_vm1, %v839_v24  ;;  %v811_v29 = vmul.f32 %v1519_v3, %v1736_v36 }
  0xfe   : > { %v1523_v10 = vpop.eup %1522  ;;  %1546 = vrcp.f32 %v725_v4  ;;  %v723_v12 = vadd.f32 1.0, %v1521_v21  ;;  %v571_v13 = vpop.f32.mrf.mxu0  ;;  %1424 = vmatmul.mubr.msk.bf16.vlgmr.msra.gmra.mxu1 %vm878_vm1, %v840_v30 }
  0xff   : > { %v1525_v14 = vpop.eup %1524  ;;  %1548 = vpow2.f32 %v1319_v5  ;;  %v1320_v15 = vmul.f32 -1.442695, %v1808_v9  ;;  %v1814_v17 = vadd.f32 %v1713_v19, %v571_v13  ;;  %v814_v20 = vmul.f32 %v1523_v10, %v1740_v39 }
 0x100   : > { %v1527_v18 = vpop.eup %1526  ;;  %1550 = vrcp.f32 %v723_v12  ;;  %v726_v22 = vadd.f32 1.0, %v1525_v14  ;;  %v1413_v25 = vpop.f32.mrf.mxu0 }
 0x101   : > { %v1529_v26 = vpop.eup %1528  ;;  %v812_v32 = vmul.f32 %v1527_v18, %v1744_v42  ;;  %1552 = vpow2.f32 %v1317_v8  ;;  %v1318_v37 = vmul.f32 -1.442695, %v1814_v17  ;;  %v1822_v38 = vadd.f32 %v1413_v25, %v1713_v19 }
 0x102   : > { %v1531_v34 = vpop.eup %1530  ;;  %1554 = vrcp.f32 %v726_v22  ;;  %v724_v35 = vadd.f32 1.0, %v1529_v26  ;;  %v584_v39 = vpop.f32.mrf.mxu0  ;;  %v842_v46 = vpack.c.bf16 %v814_v20, %v813_v28 }
 0x103   : > { %v1533_v41 = vpop.eup %1532  ;;  %v841_v43 = vpack.c.bf16 %v812_v32, %v811_v29  ;;  %v729_v44 = vadd.f32 1.0, %v1531_v34  ;;  %1556 = vpow2.f32 %v1320_v15  ;;  %v1825_v33 = vadd.f32 %v1713_v19, %v584_v39 }
 0x104   : > { %v1535_v36 = vpop.eup %1534  ;;  %1558 = vrcp.f32 %v724_v35  ;;  %v1323_v42 = vmul.f32 -1.442695, %v1822_v38  ;;  %v1414_v47 = vpop.f32.mrf.mxu0 }
 0x105   : > { %v1537_v49 = vpop.eup %1536  ;;  %1560 = vrcp.f32 %v729_v44  ;;  %v727_v51 = vadd.f32 1.0, %v1535_v36  ;;  %v1829_v52 = vadd.f32 %v1414_v47, %v1713_v19  ;;  %1427 = vmatprep.mubr.msk.bf16.mxu1 %vm878_vm1, %v841_v43  ;;  %v1321_v54 = vmul.f32 -1.442695, %v1825_v33 }
 0x106   : > { %v1539_v53 = vpop.eup %1538  ;;  %1562 = vpow2.f32 %v1318_v37  ;;  %v587_v56 = vpop.f32.mrf.mxu0  ;;  %1428 = vmatmul.mubr.msk.bf16.gmra.mxu1 %vm878_vm1, %v842_v46  ;;  %v815_v5 = vmul.f32 %v1537_v49, %v1752_v50 }
 0x107   : > { %v1541_v57 = vpop.eup %1540  ;;  %1564 = vrcp.f32 %v727_v51  ;;  %v730_v58 = vadd.f32 1.0, %v1539_v53  ;;  %v1835_v59 = vadd.f32 %v1713_v19, %v587_v56  ;;  %v1324_v27 = vmul.f32 -1.442695, %v1829_v52 }
 0x108   : > { %v1543_v61 = vpop.eup %1542  ;;  %v818_v62 = vmul.f32 %v1541_v57, %v1756_v55  ;;  %1566 = vpow2.f32 %v1323_v42  ;;  %v1417_v0 = vpop.f32.mrf.mxu0  ;;  %v817_v55 = vmul.f32 %v1533_v41, %v1748_v45 }
 0x109   : > { %v1545_v24 = vpop.eup %1544  ;;  %1568 = vrcp.f32 %v730_v58  ;;  %v728_v3 = vadd.f32 1.0, %v1543_v61  ;;  %v1322_v30 = vmul.f32 -1.442695, %v1835_v59  ;;  %v1841_v4 = vadd.f32 %v1417_v0, %v1713_v19 }
 0x10a   : > { %v816_v7 = vmul.f32 %v1545_v24, %v1760_v60  ;;  %1570 = vpow2.f32 %v1321_v54  ;;  %v600_v21 = vpop.f32.mrf.mxu0  ;;  %v844_v20 = vpack.c.bf16 %v818_v62, %v817_v55 }
 0x10b   : > { %v1547_v8 = vpop.eup %1546  ;;  %1572 = vrcp.f32 %v728_v3  ;;  %v1327_v10 = vmul.f32 -1.442695, %v1841_v4  ;;  %v1848_v12 = vadd.f32 %v1713_v19, %v600_v21 }
 0x10c   : > { %v1549_v13 = vpop.eup %1548  ;;  %v843_v14 = vpack.c.bf16 %v816_v7, %v815_v5  ;;  %1574 = vpow2.f32 %v1324_v27  ;;  %v1418_v15 = vpop.f32.mrf.mxu0  ;;  %v821_v46 = vmul.f32 %v1547_v8, %v1764_v1 }
 0x10d   : > { %v1551_v18 = vpop.eup %1550  ;;  %1576 = vpow2.f32 %v1322_v30  ;;  %v1325_v50 = vmul.f32 -1.442695, %v1848_v12  ;;  %v1852_v60 = vadd.f32 %v1418_v15, %v1713_v19  ;;  %v733_v34 = vadd.f32 1.0, %v1549_v13 }
 0x10e   : > { %v1553_v22 = vpop.eup %1552  ;;  %1431 = vmatprep.mubr.msk.bf16.mxu1 %vm878_vm1, %v843_v14  ;;  %v603_v45 = vpop.f32.mrf.mxu0  ;;  %1578 = vpow2.f32 %v1327_v10  ;;  %v819_v44 = vmul.f32 %v1551_v18, %v1768_v6 }
 0x10f   : > { %v1555_v25 = vpop.eup %1554  ;;  %v731_v26 = vadd.f32 1.0, %v1553_v22  ;;  %v1328_v28 = vmul.f32 -1.442695, %v1852_v60  ;;  %v1857_v29 = vadd.f32 %v1713_v19, %v603_v45  ;;  %1432 = vmatmul.mubr.msk.bf16.gmra.mxu1 %vm878_vm1, %v844_v20  ;;  %1580 = vpow2.f32 %v1325_v50 }
 0x110   : > { %v1557_v32 = vpop.eup %1556  ;;  %v822_v37 = vmul.f32 %v1555_v25, %v1772_v11 }
 0x111   : > { %v1559_v35 = vpop.eup %1558  ;;  %1582 = vrcp.f32 %v731_v26  ;;  %v734_v39 = vadd.f32 1.0, %v1557_v32  ;;  %v1326_v41 = vmul.f32 -1.442695, %v1857_v29 }
 0x112   : > { %v1561_v43 = vpop.eup %1560  ;;  %v820_v36 = vmul.f32 %v1559_v35, %v1776_v16  ;;  %1584 = vpow2.f32 %v1328_v28  ;;  %v846_v11 = vpack.c.bf16 %v822_v37, %v821_v46  ;;  %v1088_v46 = vld [vmem:[%s1895_s15] sm:$0xff] }
 0x113   : > { %v1563_v19 = vpop.eup %1562  ;;  %1586 = vrcp.f32 %v734_v39  ;;  %v825_v0 = vmul.f32 %v1561_v43, %v1780_v23 }
 0x114   : > { %v1565_v42 = vpop.eup %1564  ;;  %v845_v47 = vpack.c.bf16 %v820_v36, %v819_v44  ;;  %v732_v49 = vadd.f32 1.0, %v1563_v19  ;;  %1588 = vpow2.f32 %v1326_v41 }
 0x115   : > { %v1567_v51 = vpop.eup %1566  ;;  %1590 = vrcp.f32 %v733_v34  ;;  %v823_v1 = vmul.f32 %v1565_v42, %v1784_v31 }
 0x116   : > { %v1569_v53 = vpop.eup %1568  ;;  %1592 = vrcp.f32 %v732_v49  ;;  %v737_v54 = vadd.f32 1.0, %v1567_v51  ;;  %1435 = vmatprep.mubr.msk.bf16.mxu1 %vm878_vm1, %v845_v47  ;;  %v1091_v51 = vld [vmem:[%s1895_s15 + $0x18] sm:$0xff] }
 0x117   : > { %v1571_v6 = vpop.eup %1570  ;;  %1436 = vmatmul.mubr.msk.bf16.gmra.mxu1 %vm878_vm1, %v846_v11  ;;  %v826_v58 = vmul.f32 %v1569_v53, %v1788_v40 }
 0x118   : > { %v1573_v16 = vpop.eup %1572  ;;  %v735_v56 = vadd.f32 1.0, %v1571_v6  ;;  %1594 = vrcp.f32 %v737_v54  ;;  %v1089_v6 = vld [vmem:[%s1895_s15 + $0x8] sm:$0xff] }
 0x119   : > { %v1575_v57 = vpop.eup %1574  ;;  %v824_v61 = vmul.f32 %v1573_v16, %v1792_v48  ;;  %v848_v7 = vpack.c.bf16 %v826_v58, %v825_v0 }
 0x11a   : > { %v1577_v62 = vpop.eup %1576  ;;  %v738_v27 = vadd.f32 1.0, %v1575_v57  ;;  %1596 = vrcp.f32 %v735_v56 }
 0x11b   : > { %v847_v24 = vpack.c.bf16 %v824_v61, %v823_v1  ;;  %v736_v3 = vadd.f32 1.0, %v1577_v62  ;;  %v1579_v30 = vpop.eup %1578  ;;  %v1094_v1 = vld [vmem:[%s1895_s15 + $0x30] sm:$0xff] }
 0x11c   : > { %1598 = vrcp.f32 %v738_v27  ;;  %v1581_v5 = vpop.eup %1580  ;;  %v741_v10 = vadd.f32 1.0, %v1579_v30  ;;  %v1092_v27 = vld [vmem:[%s1895_s15 + $0x20] sm:$0xff]  ;;  %v1095_v30 = vld [vmem:[%s1895_s15 + $0x38] sm:$0xff] }
 0x11d   : > { %1600 = vrcp.f32 %v736_v3  ;;  %1439 = vmatprep.mubr.msk.bf16.mxu1 %vm878_vm1, %v847_v24  ;;  %v739_v21 = vadd.f32 1.0, %v1581_v5 }
 0x11e   : > { %v1583_v31 = vpop.eup %1582 }
 0x11f   : > { %v1585_v40 = vpop.eup %1584  ;;  %1440 = vmatmul.mubr.msk.bf16.gmra.mxu1 %vm878_vm1, %v848_v7  ;;  %1602 = vrcp.f32 %v739_v21  ;;  %v827_v18 = vmul.f32 %v1583_v31, %v1803_v2  ;;  %v1093_v21 = vld [vmem:[%s1895_s15 + $0x28] sm:$0xff] }
 0x120   : > { %v1587_v48 = vpop.eup %1586  ;;  %v742_v8 = vadd.f32 1.0, %v1585_v40 }
 0x121   : > { %v1589_v55 = vpop.eup %1588  ;;  %v830_v15 = vmul.f32 %v1587_v48, %v1808_v9 }
 0x122   : > { %v1591_v23 = vpop.eup %1590  ;;  %v740_v13 = vadd.f32 1.0, %v1589_v55  ;;  %1604 = vrcp.f32 %v742_v8 }
 0x123   : > { %v1593_v14 = vpop.eup %1592  ;;  %v829_v50 = vmul.f32 %v1591_v23, %v1800_v63 }
 0x124   : > { %v828_v20 = vmul.f32 %v1593_v14, %v1814_v17  ;;  %1606 = vrcp.f32 %v740_v13  ;;  %v1096_v14 = vld [vmem:[%s1895_s15 + $0x40] sm:$0xff] }
 0x125   : > { %1608 = vrcp.f32 %v741_v10  ;;  %v1595_v45 = vpop.eup %1594  ;;  %v850_v25 = vpack.c.bf16 %v830_v15, %v829_v50  ;;  %v1098_v10 = vld [vmem:[%s1895_s15 + $0x50] sm:$0xff]  ;;  %v1099_v50 = vld [vmem:[%s1895_s15 + $0x58] sm:$0xff] }
 0x126   : > { %v849_v22 = vpack.c.bf16 %v828_v20, %v827_v18  ;;  %v833_v34 = vmul.f32 %v1595_v45, %v1822_v38 }
 0x127   : > { %v1597_v26 = vpop.eup %1596 }
 0x128   : > { %1443 = vmatprep.mubr.msk.bf16.mxu1 %vm878_vm1, %v849_v22  ;;  %v831_v9 = vmul.f32 %v1597_v26, %v1825_v33  ;;  %v1097_v26 = vld [vmem:[%s1895_s15 + $0x48] sm:$0xff] }
 0x129   : > { %v1599_v28 = vpop.eup %1598  ;;  %1444 = vmatmul.mubr.msk.bf16.gmra.mxu1 %vm878_vm1, %v850_v25 }
 0x12a   : > { %v1601_v32 = vpop.eup %1600  ;;  %v834_v2 = vmul.f32 %v1599_v28, %v1829_v52 }
 0x12b   : > { %v832_v17 = vmul.f32 %v1601_v32, %v1835_v59 }
 0x12c   : > { %v1603_v35 = vpop.eup %1602  ;;  %v852_v37 = vpack.c.bf16 %v834_v2, %v833_v34  ;;  %v1102_v2 = vld [vmem:[%s1895_s15 + $0x70] sm:$0xff] }
 0x12d   : > { %v851_v63 = vpack.c.bf16 %v832_v17, %v831_v9  ;;  %v835_v44 = vmul.f32 %v1603_v35, %v1848_v12  ;;  %v1900_v12 = vld [vmem:[%s2043_s5] ss:$0 sm:$0xff] }
 0x12e   : > { %v1100_v35 = vld [vmem:[%s1895_s15 + $0x60] sm:$0xff] }
 0x12f   : > { %1447 = vmatprep.mubr.msk.bf16.mxu1 %vm878_vm1, %v851_v63  ;;  %v1605_v39 = vpop.eup %1604 }
 0x130   : > { %v838_v52 = vmul.f32 %v1605_v39, %v1852_v60  ;;  %v1090_v60 = vld [vmem:[%s1895_s15 + $0x10] sm:$0xff] }
 0x131   : > { %v1607_v41 = vpop.eup %1606  ;;  %1448 = vmatmul.mubr.msk.bf16.gmra.mxu1 %vm878_vm1, %v852_v37 }
 0x132   : > { %v1609_v43 = vpop.eup %1608  ;;  %v836_v33 = vmul.f32 %v1607_v41, %v1857_v29 }
 0x133   : > { %v837_v38 = vmul.f32 %v1609_v43, %v1841_v4  ;;  %v1103_v43 = vld [vmem:[%s1895_s15 + $0x78] sm:$0xff] }
 0x134   : > { %v853_v59 = vpack.c.bf16 %v836_v33, %v835_v44 }
 0x135   : > { %v854_v36 = vpack.c.bf16 %v838_v52, %v837_v38 }
 0x136   : > { %1451 = vmatprep.mubr.msk.bf16.mxu1 %vm878_vm1, %v853_v59  ;;  %v1101_v59 = vld [vmem:[%s1895_s15 + $0x68] sm:$0xff] }
 0x139   : > { %1452 = vmatmul.mubr.msk.bf16.gmra.mxu1 %vm878_vm1, %v854_v36 }
 0x1be   : > { %v1425_v4 = vpop.f32.mrf.mxu1 }
 0x1bf   : > { %v970_v29 = vadd.f32 %v1425_v4, %v1900_v12 }
 0x1c0   : > { %v961_v19 = vpop.f32.mrf.mxu1 }
 0x1c1   : > { %v1122_v42 = vadd.f32 %v1090_v60, %v970_v29  ;;  %v962_v47 = vadd.f32 %v1900_v12, %v961_v19  ;;  %v1106_v60 = vld [vmem:[%s1895_s15 + $0x90] sm:$0xff] }
 0x1c2   : > { %v1426_v49 = vpop.f32.mrf.mxu1 }
 0x1c3   : > { %1154 = vst.msk [vmem:[%s1907_s20 + $0x10] sm:$0xff] %vm405_vm0, %v1122_v42  ;;  %v1120_v11 = vadd.f32 %v1088_v46, %v962_v47  ;;  %v973_v53 = vadd.f32 %v1426_v49, %v1900_v12  ;;  %v1104_v42 = vld [vmem:[%s1895_s15 + $0x80] sm:$0xff] }
 0x1c4   : > { %v964_v54 = vpop.f32.mrf.mxu1 }
 0x1c5   : > { %1152 = vst.msk [vmem:[%s1907_s20] sm:$0xff] %vm405_vm0, %v1120_v11  ;;  %v1123_v16 = vadd.f32 %v1091_v51, %v973_v53  ;;  %v965_v56 = vadd.f32 %v1900_v12, %v964_v54  ;;  %v1107_v11 = vld [vmem:[%s1895_s15 + $0x98] sm:$0xff] }
 0x1c6   : > { %v1429_v57 = vpop.f32.mrf.mxu1 }
 0x1c7   : > { %1155 = vst.msk [vmem:[%s1907_s20 + $0x18] sm:$0xff] %vm405_vm0, %v1123_v16  ;;  %v1121_v58 = vadd.f32 %v1089_v6, %v965_v56  ;;  %v986_v61 = vadd.f32 %v1429_v57, %v1900_v12  ;;  %v1105_v16 = vld [vmem:[%s1895_s15 + $0x88] sm:$0xff] }
 0x1c8   : > { %v977_v62 = vpop.f32.mrf.mxu1 }
 0x1c9   : > { %1153 = vst.msk [vmem:[%s1907_s20 + $0x8] sm:$0xff] %vm405_vm0, %v1121_v58  ;;  %v1126_v0 = vadd.f32 %v1094_v1, %v986_v61  ;;  %v978_v24 = vadd.f32 %v1900_v12, %v977_v62  ;;  %v1110_v61 = vld [vmem:[%s1895_s15 + $0xb0] sm:$0xff] }
 0x1ca   : > { %v1430_v3 = vpop.f32.mrf.mxu1 }
 0x1cb   : > { %1158 = vst.msk [vmem:[%s1907_s20 + $0x30] sm:$0xff] %vm405_vm0, %v1126_v0  ;;  %v1124_v5 = vadd.f32 %v1092_v27, %v978_v24  ;;  %v989_v7 = vadd.f32 %v1430_v3, %v1900_v12  ;;  %v1108_v0 = vld [vmem:[%s1895_s15 + $0xa0] sm:$0xff] }
 0x1cc   : > { %v980_v31 = vpop.f32.mrf.mxu1 }
 0x1cd   : > { %1156 = vst.msk [vmem:[%s1907_s20 + $0x20] sm:$0xff] %vm405_vm0, %v1124_v5  ;;  %v1127_v40 = vadd.f32 %v1095_v30, %v989_v7  ;;  %v981_v48 = vadd.f32 %v1900_v12, %v980_v31  ;;  %v1111_v5 = vld [vmem:[%s1895_s15 + $0xb8] sm:$0xff] }
 0x1cf   : > { %1159 = vst.msk [vmem:[%s1907_s20 + $0x38] sm:$0xff] %vm405_vm0, %v1127_v40  ;;  %v1125_v8 = vadd.f32 %v1093_v21, %v981_v48  ;;  %v1433_v55 = vpop.f32.mrf.mxu1  ;;  %v1109_v40 = vld [vmem:[%s1895_s15 + $0xa8] sm:$0xff] }
 0x1d0   : > { %v1002_v23 = vadd.f32 %v1433_v55, %v1900_v12 }
 0x1d1   : > { %1157 = vst.msk [vmem:[%s1907_s20 + $0x28] sm:$0xff] %vm405_vm0, %v1125_v8  ;;  %v993_v13 = vpop.f32.mrf.mxu1 }
 0x1d2   : > { %v1130_v15 = vadd.f32 %v1098_v10, %v1002_v23  ;;  %v994_v18 = vadd.f32 %v1900_v12, %v993_v13  ;;  %v1114_v10 = vld [vmem:[%s1895_s15 + $0xd0] sm:$0xff] }
 0x1d3   : > { %v1434_v20 = vpop.f32.mrf.mxu1 }
 0x1d4   : > { %1162 = vst.msk [vmem:[%s1907_s20 + $0x50] sm:$0xff] %vm405_vm0, %v1130_v15  ;;  %v1128_v22 = vadd.f32 %v1096_v14, %v994_v18  ;;  %v1005_v45 = vadd.f32 %v1434_v20, %v1900_v12  ;;  %v1112_v15 = vld [vmem:[%s1895_s15 + $0xc0] sm:$0xff] }
 0x1d5   : > { %v996_v25 = vpop.f32.mrf.mxu1 }
 0x1d6   : > { %1160 = vst.msk [vmem:[%s1907_s20 + $0x40] sm:$0xff] %vm405_vm0, %v1128_v22  ;;  %v1131_v28 = vadd.f32 %v1099_v50, %v1005_v45  ;;  %v997_v32 = vadd.f32 %v1900_v12, %v996_v25  ;;  %v1115_v22 = vld [vmem:[%s1895_s15 + $0xd8] sm:$0xff] }
 0x1d7   : > { %v1437_v9 = vpop.f32.mrf.mxu1 }
 0x1d8   : > { %1163 = vst.msk [vmem:[%s1907_s20 + $0x58] sm:$0xff] %vm405_vm0, %v1131_v28  ;;  %v1129_v17 = vadd.f32 %v1097_v26, %v997_v32  ;;  %v1018_v34 = vadd.f32 %v1437_v9, %v1900_v12  ;;  %v1113_v28 = vld [vmem:[%s1895_s15 + $0xc8] sm:$0xff] }
 0x1d9   : > { %v1009_v63 = vpop.f32.mrf.mxu1 }
 0x1da   : > { %1161 = vst.msk [vmem:[%s1907_s20 + $0x48] sm:$0xff] %vm405_vm0, %v1129_v17  ;;  %v1134_v37 = vadd.f32 %v1102_v2, %v1018_v34  ;;  %v1010_v39 = vadd.f32 %v1900_v12, %v1009_v63  ;;  %v1118_v17 = vld [vmem:[%s1895_s15 + $0xf0] sm:$0xff] }
 0x1db   : > { %v1438_v41 = vpop.f32.mrf.mxu1 }
 0x1dc   : > { %1166 = vst.msk [vmem:[%s1907_s20 + $0x70] sm:$0xff] %vm405_vm0, %v1134_v37  ;;  %v1132_v44 = vadd.f32 %v1100_v35, %v1010_v39  ;;  %v1021_v33 = vadd.f32 %v1438_v41, %v1900_v12  ;;  %v1116_v37 = vld [vmem:[%s1895_s15 + $0xe0] sm:$0xff] }
 0x1dd   : > { %v1012_v52 = vpop.f32.mrf.mxu1 }
 0x1de   : > { %1164 = vst.msk [vmem:[%s1907_s20 + $0x60] sm:$0xff] %vm405_vm0, %v1132_v44  ;;  %v1135_v38 = vadd.f32 %v1103_v43, %v1021_v33  ;;  %v1013_v36 = vadd.f32 %v1900_v12, %v1012_v52  ;;  %v1119_v44 = vld [vmem:[%s1895_s15 + $0xf8] sm:$0xff] }
 0x1df   : > { %v1441_v4 = vpop.f32.mrf.mxu1 }
 0x1e0   : > { %1167 = vst.msk [vmem:[%s1907_s20 + $0x78] sm:$0xff] %vm405_vm0, %v1135_v38  ;;  %v1133_v29 = vadd.f32 %v1101_v59, %v1013_v36  ;;  %v1034_v19 = vadd.f32 %v1441_v4, %v1900_v12  ;;  %v1117_v38 = vld [vmem:[%s1895_s15 + $0xe8] sm:$0xff] }
 0x1e1   : > { %v1025_v46 = vpop.f32.mrf.mxu1 }
 0x1e2   : > { %1165 = vst.msk [vmem:[%s1907_s20 + $0x68] sm:$0xff] %vm405_vm0, %v1133_v29  ;;  %v1138_v47 = vadd.f32 %v1106_v60, %v1034_v19  ;;  %v1026_v49 = vadd.f32 %v1900_v12, %v1025_v46 }
 0x1e3   : > { %v1442_v51 = vpop.f32.mrf.mxu1 }
 0x1e4   : > { %1170 = vst.msk [vmem:[%s1907_s20 + $0x90] sm:$0xff] %vm405_vm0, %v1138_v47  ;;  %v1136_v53 = vadd.f32 %v1104_v42, %v1026_v49  ;;  %v1037_v54 = vadd.f32 %v1442_v51, %v1900_v12 }
 0x1e5   : > { %v1028_v6 = vpop.f32.mrf.mxu1 }
 0x1e6   : > { %1168 = vst.msk [vmem:[%s1907_s20 + $0x80] sm:$0xff] %vm405_vm0, %v1136_v53  ;;  %v1139_v56 = vadd.f32 %v1107_v11, %v1037_v54  ;;  %v1029_v57 = vadd.f32 %v1900_v12, %v1028_v6 }
 0x1e8   : > { %1171 = vst.msk [vmem:[%s1907_s20 + $0x98] sm:$0xff] %vm405_vm0, %v1139_v56  ;;  %v1137_v1 = vadd.f32 %v1105_v16, %v1029_v57 }
 0x1e9   : > { %v1445_v58 = vpop.f32.mrf.mxu1 }
 0x1ea   : > { %1169 = vst.msk [vmem:[%s1907_s20 + $0x88] sm:$0xff] %vm405_vm0, %v1137_v1  ;;  %v1050_v62 = vadd.f32 %v1445_v58, %v1900_v12 }
 0x1eb   : > { %v1041_v27 = vpop.f32.mrf.mxu1 }
 0x1ec   : > { %v1142_v24 = vadd.f32 %v1110_v61, %v1050_v62  ;;  %v1042_v3 = vadd.f32 %v1900_v12, %v1041_v27 }
 0x1ed   : > { %v1446_v30 = vpop.f32.mrf.mxu1 }
 0x1ee   : > { %1174 = vst.msk [vmem:[%s1907_s20 + $0xb0] sm:$0xff] %vm405_vm0, %v1142_v24  ;;  %v1140_v7 = vadd.f32 %v1108_v0, %v1042_v3  ;;  %v1053_v31 = vadd.f32 %v1446_v30, %v1900_v12 }
 0x1ef   : > { %v1044_v21 = vpop.f32.mrf.mxu1 }
 0x1f0   : > { %1172 = vst.msk [vmem:[%s1907_s20 + $0xa0] sm:$0xff] %vm405_vm0, %v1140_v7  ;;  %v1143_v48 = vadd.f32 %v1111_v5, %v1053_v31  ;;  %v1045_v8 = vadd.f32 %v1900_v12, %v1044_v21 }
 0x1f1   : > { %v1449_v55 = vpop.f32.mrf.mxu1 }
 0x1f2   : > { %1175 = vst.msk [vmem:[%s1907_s20 + $0xb8] sm:$0xff] %vm405_vm0, %v1143_v48  ;;  %v1141_v23 = vadd.f32 %v1109_v40, %v1045_v8  ;;  %v1066_v13 = vadd.f32 %v1449_v55, %v1900_v12 }
 0x1f3   : > { %v1057_v14 = vpop.f32.mrf.mxu1 }
 0x1f4   : > { %1173 = vst.msk [vmem:[%s1907_s20 + $0xa8] sm:$0xff] %vm405_vm0, %v1141_v23  ;;  %v1146_v18 = vadd.f32 %v1114_v10, %v1066_v13  ;;  %v1058_v20 = vadd.f32 %v1900_v12, %v1057_v14 }
 0x1f5   : > { %v1450_v50 = vpop.f32.mrf.mxu1 }
 0x1f6   : > { %1178 = vst.msk [vmem:[%s1907_s20 + $0xd0] sm:$0xff] %vm405_vm0, %v1146_v18  ;;  %v1144_v45 = vadd.f32 %v1112_v15, %v1058_v20  ;;  %v1069_v25 = vadd.f32 %v1450_v50, %v1900_v12 }
 0x1f7   : > { %v1060_v26 = vpop.f32.mrf.mxu1 }
 0x1f8   : > { %1176 = vst.msk [vmem:[%s1907_s20 + $0xc0] sm:$0xff] %vm405_vm0, %v1144_v45  ;;  %v1147_v32 = vadd.f32 %v1115_v22, %v1069_v25  ;;  %v1061_v9 = vadd.f32 %v1900_v12, %v1060_v26 }
 0x1f9   : > { %v1453_v2 = vpop.f32.mrf.mxu1 }
 0x1fa   : > { %1179 = vst.msk [vmem:[%s1907_s20 + $0xd8] sm:$0xff] %vm405_vm0, %v1147_v32  ;;  %v1145_v34 = vadd.f32 %v1113_v28, %v1061_v9  ;;  %v1082_v63 = vadd.f32 %v1453_v2, %v1900_v12 }
 0x1fb   : > { %v1073_v35 = vpop.f32.mrf.mxu1 }
 0x1fc   : > { %1177 = vst.msk [vmem:[%s1907_s20 + $0xc8] sm:$0xff] %vm405_vm0, %v1145_v34  ;;  %v1150_v39 = vadd.f32 %v1118_v17, %v1082_v63  ;;  %v1074_v41 = vadd.f32 %v1900_v12, %v1073_v35 }
 0x1fd   : > { %v1454_v43 = vpop.f32.mrf.mxu1 }
 0x1fe   : > { %1182 = vst.msk [vmem:[%s1907_s20 + $0xf0] sm:$0xff] %vm405_vm0, %v1150_v39  ;;  %v1148_v33 = vadd.f32 %v1116_v37, %v1074_v41  ;;  %v1085_v52 = vadd.f32 %v1454_v43, %v1900_v12 }
 0x1ff   : > { %v1076_v59 = vpop.f32.mrf.mxu1 }
 0x200   : > { %1180 = vst.msk [vmem:[%s1907_s20 + $0xe0] sm:$0xff] %vm405_vm0, %v1148_v33  ;;  %v1151_v36 = vadd.f32 %v1119_v44, %v1085_v52  ;;  %v1077_v4 = vadd.f32 %v1900_v12, %v1076_v59 }
 0x202   : > { %1183 = vst.msk [vmem:[%s1907_s20 + $0xf8] sm:$0xff] %vm405_vm0, %v1151_v36  ;;  %v1149_v60 = vadd.f32 %v1117_v38, %v1077_v4 }
 0x204   : > { %1181 = vst.msk [vmem:[%s1907_s20 + $0xe8] sm:$0xff] %vm405_vm0, %v1149_v60 }
 0x205 PF: > { %s16_s21 = sadd.s32 1, %s1616_s21  }
 0x206   : > { %p13_p4 = scmp.ge.s32.totalorder %s16_s21, 4  }
 0x208   :  { %15 = sbr.rel (!%p13_p4) target bundleno = 1 (0x1), region = 77 }

// kernel: block_conv_selfattn.4
= control target key start
LH: loop header
LB: loop body
LE: loop exit
PB: predicated region body
PF: predicated region fallthrough
CT: control target
= control target key end

     0   :  { %s2838_s27 = smov 0   ;;  %s3556_s0 = inlined_call_operand.vmem [shape: bf16[2,256,16], index: 0, kind: input, shape index: {}]   ;;  %s3557_s1 = inlined_call_operand.vmem [shape: f32[64,256], index: 1, kind: input, shape index: {}]   ;;  %s3558_s2 = inlined_call_operand.vmem [shape: f32[256,64], index: 2, kind: input, shape index: {}]   ;;  %s3559_s3 = inlined_call_operand.vmem [shape: bf16[2,16,64], index: 3, kind: input, shape index: {}]   ;;  %s3560_s4 = inlined_call_operand.vmem [shape: f32[2,1,64], index: 4, kind: input, shape index: {}]   ;;  %s3561_s5 = inlined_call_operand.vmem [shape: bf16[2,64,16], index: 5, kind: input, shape index: {}]   ;;  %s3562_s6 = inlined_call_operand.vmem [shape: f32[1,16], index: 6, kind: input, shape index: {}]   ;;  %s3563_s7 = inlined_call_operand.vmem [shape: f32[64,64], index: 7, kind: input, shape index: {}]   ;;  %s3564_s8 = inlined_call_operand.vmem [shape: bf16[2,256,16], index: 8, kind: output, shape index: {}]  }
   0x1 LB: > { %s2005_s28 = sadd.s32 4294967295, %s2791_s27   ;;  %p2009_p0 = scmp.ge.s32.totalorder %s2791_s27, 1  ;;  %s2791_s27 = sphi %s2838_s27, %s18_s27  }
   0x2   : > { %p262_p1 = scmp.lt.s32.totalorder %s2791_s27, 3 }
   0x4   : > { %p263_p2 = pnand %p2009_p0, %p262_p1 }
   0x5   : > { %p296_p3 = scmp.lt.s32.totalorder (!%p263_p2), %s2005_s28, 1 }
   0x6   : > { %266 = sbr.rel (%p263_p2) target bundleno = 1473 (0x5c1), region = 52 }
   0xb   : > { %v372_v0 = vld [vmem:[%s3557_s1 + $0x8] sm:$0xff]  ;;  %s3600_s28 = smov (!%p296_p3, %s2005_s28), 1  ;;  %v371_v49 = vld [vmem:[%s3557_s1] sm:$0xff]  ;;  %v374_v50 = vld [vmem:[%s3557_s1 + $0x18] sm:$0xff]  ;;  %vm519_vm0 = vcmask 130048   ;;  %vm597_vm1 = vcmask 523264  }
   0xc   : > { %451 = vmatprep.mubr.f32.mxu0 %v372_v0  ;;  %s2184_s9 = sshll.u32 %s3600_s28, 7  ;;  %v373_v51 = vld [vmem:[%s3557_s1 + $0x10] sm:$0xff]  ;;  %v376_v52 = vld [vmem:[%s3557_s1 + $0x28] sm:$0xff]  ;;  %v375_v53 = vld [vmem:[%s3557_s1 + $0x20] sm:$0xff]  ;;  %vm1917_vm2 = vcmask 125952  }
   0xd   : > { %s2857_s12 = scalar_lea.vmem %s3556_s0, %s2184_s9  ;;  %v378_v54 = vld [vmem:[%s3557_s1 + $0x38] sm:$0xff]  ;;  %v377_v55 = vld [vmem:[%s3557_s1 + $0x30] sm:$0xff]  ;;  %v380_v56 = vld [vmem:[%s3557_s1 + $0x48] sm:$0xff]  ;;  %s3417_s18 = scalar_lea.vmem %s3564_s8, %s2184_s9 }
   0xe   : > { %v2860_v1 = vld [vmem:[%s2857_s12 + $0x78] sm:$0xff]   ;;  %v2866_v3 = vld [vmem:[%s2857_s12 + $0x70] sm:$0xff]   ;;  %v2882_v11 = vld [vmem:[%s2857_s12 + $0x68] sm:$0xff]  }
   0xf   : > { %v2863_v2 = vld [vmem:[%s2857_s12 + $0x38] sm:$0xff]   ;;  %v3565_v4 = vunpack.c.l.bf16 %v2860_v1  ;;  %v3567_v5 = vunpack.c.h.bf16 %v2860_v1  ;;  %v2872_v7 = vld [vmem:[%s2857_s12 + $0x30] sm:$0xff]   ;;  %v3571_v9 = vunpack.c.h.bf16 %v2866_v3  ;;  %v3569_v12 = vunpack.c.l.bf16 %v2866_v3  ;;  %v2888_v13 = vld [vmem:[%s2857_s12 + $0x28] sm:$0xff]  }
  0x10   : > { %v2249_v6 = vunpack.c.h.bf16 %v2863_v2  ;;  %v2248_v8 = vunpack.c.l.bf16 %v2863_v2  ;;  %v2245_v10 = vunpack.c.h.bf16 %v2872_v7  ;;  %v2244_v14 = vunpack.c.l.bf16 %v2872_v7  ;;  %v2894_v15 = vld [vmem:[%s2857_s12 + $0x60] sm:$0xff]   ;;  %v2918_v23 = vld [vmem:[%s2857_s12 + $0x58] sm:$0xff]   ;;  %v2936_v29 = vld [vmem:[%s2857_s12 + $0x50] sm:$0xff]  }
  0x11   : > { %2297 = vmatprep.subr.mxu0 %v3567_v5  ;;  %v3574_v16 = vunpack.c.h.bf16 %v2882_v11  ;;  %v2900_v17 = vld [vmem:[%s2857_s12 + $0x20] sm:$0xff]   ;;  %v3568_v18 = vunpack.c.h.bf16 %v2888_v13  ;;  %v3573_v19 = vunpack.c.l.bf16 %v2882_v11  ;;  %v3566_v20 = vunpack.c.l.bf16 %v2888_v13  ;;  %v2924_v25 = vld [vmem:[%s2857_s12 + $0x18] sm:$0xff]   ;;  %v2942_v31 = vld [vmem:[%s2857_s12 + $0x10] sm:$0xff]  }
  0x12   : > { %2298 = vmatpush3.msra.mxu0 %v2249_v6  ;;  %v3576_v21 = vunpack.c.h.bf16 %v2894_v15  ;;  %v3572_v22 = vunpack.c.h.bf16 %v2900_v17  ;;  %v3575_v24 = vunpack.c.l.bf16 %v2894_v15  ;;  %v3570_v26 = vunpack.c.l.bf16 %v2900_v17  ;;  %v2954_v35 = vld [vmem:[%s2857_s12 + $0x48] sm:$0xff]   ;;  %v2972_v41 = vld [vmem:[%s2857_s12 + $0x40] sm:$0xff]   ;;  %v382_v58 = vld [vmem:[%s3557_s1 + $0x58] sm:$0xff] }
  0x13   : > { %2299 = vmatprep.subr.mxu0 %v3565_v4  ;;  %v3578_v27 = vunpack.c.h.bf16 %v2918_v23  ;;  %v3581_v28 = vunpack.c.h.bf16 %v2924_v25  ;;  %v3577_v30 = vunpack.c.l.bf16 %v2918_v23  ;;  %v3579_v32 = vunpack.c.l.bf16 %v2924_v25  ;;  %v2960_v37 = vld [vmem:[%s2857_s12 + $0x8] sm:$0xff]   ;;  %v2978_v43 = vld [vmem:[%s2857_s12] sm:$0xff]   ;;  %v381_v59 = vld [vmem:[%s3557_s1 + $0x50] sm:$0xff] }
  0x14   : > { %2300 = vmatpush3.msra.mxu0 %v2248_v8  ;;  %v2261_v33 = vunpack.c.h.bf16 %v2936_v29  ;;  %v2229_v34 = vunpack.c.h.bf16 %v2942_v31  ;;  %v3580_v36 = vunpack.c.l.bf16 %v2936_v29  ;;  %v2228_v38 = vunpack.c.l.bf16 %v2942_v31  ;;  %v379_v57 = vld [vmem:[%s3557_s1 + $0x40] sm:$0xff]  ;;  %v384_v60 = vld [vmem:[%s3557_s1 + $0x68] sm:$0xff]  ;;  %v386_v62 = vld [vmem:[%s3557_s1 + $0x78] sm:$0xff] }
  0x15   : > { %2301 = vmatprep.subr.mxu0 %v3571_v9  ;;  %v2257_v39 = vunpack.c.h.bf16 %v2954_v35  ;;  %v2225_v40 = vunpack.c.h.bf16 %v2960_v37  ;;  %v2256_v42 = vunpack.c.l.bf16 %v2954_v35  ;;  %v2224_v44 = vunpack.c.l.bf16 %v2960_v37  ;;  %v383_v61 = vld [vmem:[%s3557_s1 + $0x60] sm:$0xff]  ;;  %v385_v63 = vld [vmem:[%s3557_s1 + $0x70] sm:$0xff]  ;;  %v3144_v5 = vld [vmem:[%s3563_s7 + $0x38] sm:$0xff] }
  0x16   : > { %2302 = vmatpush3.msra.mxu0 %v2245_v10  ;;  %v2253_v45 = vunpack.c.h.bf16 %v2972_v41  ;;  %v2221_v46 = vunpack.c.h.bf16 %v2978_v43  ;;  %v2252_v47 = vunpack.c.l.bf16 %v2972_v41  ;;  %v2220_v48 = vunpack.c.l.bf16 %v2978_v43  ;;  %v2647_v0 = vld [vmem:[%s3559_s3] sm:$0xff]  }
  0x17   : > { %2303 = vmatprep.subr.mxu0 %v3569_v12  ;;  %2451 = vmatprep.subr.bf16.mxu1 %v2647_v0  ;;  %v2654_v12 = vld [vmem:[%s3561_s5 + $0x30] sm:$0xff]   ;;  %v3582_v31 = vunpack.c.h.bf16 %v2924_v25 }
  0x18   : > { %2304 = vmatpush3.msra.mxu0 %v2244_v14  ;;  %2452 = vmatpush3.bf16.msra.mxu1 %v2647_v0 }
  0x19   : > { %2305 = vmatprep.subr.mxu0 %v3574_v16 }
  0x1a   : > { %2306 = vmatpush3.msra.mxu0 %v3568_v18  ;;  %v2653_v18 = vld [vmem:[%s3561_s5 + $0x38] sm:$0xff]  }
  0x1b   : > { %2307 = vmatprep.subr.mxu0 %v3573_v19 }
  0x1c   : > { %2308 = vmatpush3.msra.mxu0 %v3566_v20  ;;  %v3135_v20 = vld [vmem:[%s3563_s7 + $0x30] sm:$0xff] }
  0x1d   : > { %2309 = vmatprep.subr.mxu0 %v3576_v21 }
  0x1e   : > { %2310 = vmatpush3.msra.mxu0 %v3572_v22 }
  0x1f   : > { %2311 = vmatprep.subr.mxu0 %v3575_v24 }
  0x20   : > { %2312 = vmatpush3.msra.mxu0 %v3570_v26 }
  0x21   : > { %2313 = vmatprep.subr.mxu0 %v3578_v27 }
  0x22   : > { %2314 = vmatpush3.msra.mxu0 %v3581_v28 }
  0x23   : > { %2315 = vmatprep.subr.mxu0 %v3577_v30 }
  0x24   : > { %2316 = vmatpush3.msra.mxu0 %v3579_v32 }
  0x25   : > { %2317 = vmatprep.subr.mxu0 %v2261_v33 }
  0x26   : > { %2318 = vmatpush3.msra.mxu0 %v2229_v34 }
  0x27   : > { %2319 = vmatprep.subr.mxu0 %v3580_v36 }
  0x28   : > { %2320 = vmatpush3.msra.mxu0 %v2228_v38 }
  0x29   : > { %2321 = vmatprep.subr.mxu0 %v2257_v39 }
  0x2a   : > { %2322 = vmatpush3.msra.mxu0 %v2225_v40 }
  0x2b   : > { %2323 = vmatprep.subr.mxu0 %v2256_v42 }
  0x2c   : > { %2324 = vmatpush3.msra.mxu0 %v2224_v44 }
  0x2d   : > { %2325 = vmatprep.subr.mxu0 %v2253_v45 }
  0x2e   : > { %2326 = vmatpush3.msra.mxu0 %v2221_v46 }
  0x2f   : > { %2327 = vmatprep.subr.mxu0 %v2252_v47 }
  0x30   : > { %2328 = vmatpush3.msra.mxu0 %v2220_v48 }
  0x31   : > { %452 = vmatmul.mubr.f32.vlgmr.msra.gmra.mxu0 %v371_v49 }
  0x32   : > { %456 = vmatprep.mubr.f32.mxu0 %v374_v50 }
  0x35   : > { %457 = vmatmul.mubr.f32.gmra.mxu0 %v373_v51 }
  0x36   : > { %461 = vmatprep.mubr.f32.mxu0 %v376_v52 }
  0x39   : > { %462 = vmatmul.mubr.f32.gmra.mxu0 %v375_v53 }
  0x3a   : > { %466 = vmatprep.mubr.f32.mxu0 %v378_v54 }
  0x3d   : > { %467 = vmatmul.mubr.f32.gmra.mxu0 %v377_v55 }
  0x3e   : > { %471 = vmatprep.mubr.f32.mxu0 %v380_v56 }
  0x41   : > { %472 = vmatmul.mubr.f32.gmra.mxu0 %v379_v57 }
  0x42   : > { %476 = vmatprep.mubr.f32.mxu0 %v382_v58 }
  0x45   : > { %477 = vmatmul.mubr.f32.gmra.mxu0 %v381_v59 }
  0x46   : > { %481 = vmatprep.mubr.f32.mxu0 %v384_v60 }
  0x49   : > { %482 = vmatmul.mubr.f32.gmra.mxu0 %v383_v61 }
  0x4a   : > { %486 = vmatprep.mubr.f32.mxu0 %v386_v62 }
  0x4d   : > { %487 = vmatmul.mubr.f32.gmra.mxu0 %v385_v63 }
  0xf1   : > { %v2329_v49 = vpop.f32.mrf.mxu0 }
  0xf3   : > { %v2330_v50 = vpop.f32.mrf.mxu0 }
  0xf4   : > { %v2331_v53 = vadd.f32 %v2330_v50, %v2329_v49 }
  0xf5   : > { %v2332_v51 = vpop.f32.mrf.mxu0 }
  0xf7   : > { %v2333_v52 = vpop.f32.mrf.mxu0 }
  0xf8   : > { %v2334_v54 = vadd.f32 %v2333_v52, %v2332_v51 }
  0xf9   : > { %v2335_v55 = vpop.f32.mrf.mxu0 }
  0xfa   : > { %v3051_v56 = vpack.c.bf16 %v2334_v54, %v2331_v53 }
  0xfb   : > { %v2336_v57 = vpop.f32.mrf.mxu0 }
  0xfc   : > { %2453 = vmatprep.mubr.msk.bf16.mxu1 %vm519_vm0, %v3051_v56  ;;  %v2337_v60 = vadd.f32 %v2336_v57, %v2335_v55 }
  0xfd   : > { %v2338_v58 = vpop.f32.mrf.mxu0 }
  0xff   : > { %v2339_v59 = vpop.f32.mrf.mxu0 }
 0x100   : > { %v2340_v61 = vadd.f32 %v2339_v59, %v2338_v58 }
 0x101   : > { %v2341_v62 = vpop.f32.mrf.mxu0 }
 0x102   : > { %v3055_v63 = vpack.c.bf16 %v2340_v61, %v2337_v60  ;;  %v496_v61 = vld [vmem:[%s3563_s7] sm:$0xff] }
 0x103   : > { %v2342_v0 = vpop.f32.mrf.mxu0  ;;  %2515 = vmatprep.mubr.msk.f32.mxu0 %vm597_vm1, %v496_v61 }
 0x104   : > { %2454 = vmatmul.mubr.msk.bf16.vlgmr.msra.gmra.mxu1 %vm519_vm0, %v3055_v63  ;;  %v2343_v51 = vadd.f32 %v2342_v0, %v2341_v62 }
 0x105   : > { %v2344_v49 = vpop.f32.mrf.mxu0 }
 0x107   : > { %v2345_v50 = vpop.f32.mrf.mxu0 }
 0x108   : > { %v2346_v52 = vadd.f32 %v2345_v50, %v2344_v49 }
 0x109   : > { %v2347_v53 = vpop.f32.mrf.mxu0 }
 0x10a   : > { %v3059_v54 = vpack.c.bf16 %v2346_v52, %v2343_v51 }
 0x10b   : > { %v2348_v4 = vpop.f32.mrf.mxu0 }
 0x10c   : > { %2457 = vmatprep.mubr.msk.bf16.mxu1 %vm519_vm0, %v3059_v54  ;;  %v2349_v58 = vadd.f32 %v2348_v4, %v2347_v53  ;;  %v2014_v4 = vld [vmem:[%s3560_s4] ss:$0 sm:$0xff] }
 0x10d   : > { %v2350_v55 = vpop.f32.mrf.mxu0 }
 0x10f   : > { %v2351_v57 = vpop.f32.mrf.mxu0 }
 0x110   : > { %v2352_v59 = vadd.f32 %v2351_v57, %v2350_v55 }
 0x112   : > { %v495_v60 = vpack.c.bf16 %v2352_v59, %v2349_v58 }
 0x114   : > { %2458 = vmatmul.mubr.msk.bf16.gmra.mxu1 %vm519_vm0, %v495_v60 }
 0x115   : > { %2477 = vmatprep.mubr.msk.f32.mxu1 %vm597_vm1, %v496_v61 }
 0x1c4   : > { %v2455_v62 = vpop.f32.mrf.mxu1 }
 0x1c6   : > { %v566_v0 = vpop.f32.mrf.mxu1 }
 0x1c8   : > { %v2456_v49 = vpop.f32.mrf.mxu1 }
 0x1ca   : > { %v569_v50 = vpop.f32.mrf.mxu1 }
 0x1d4   : > { %v2459_v51 = vpop.f32.mrf.mxu1 }
 0x1d5   : > { %v3074_v57 = vadd.f32 %v2459_v51, %v2014_v4  ;;  %v578_v51 = vadd.f32 %v2456_v49, %v2014_v4  ;;  %v2648_v49 = vld [vmem:[%s3559_s3 + $0x8] sm:$0xff]  }
 0x1d6   : > { %v582_v52 = vpop.f32.mrf.mxu1 }
 0x1d7   : > { %v583_v61 = vadd.f32 %v2014_v4, %v582_v52  ;;  %v567_v52 = vadd.f32 %v2014_v4, %v566_v0  ;;  %v3107_v0 = vld [vmem:[%s3563_s7 + $0x10] sm:$0xff] }
 0x1d8   : > { %v2460_v53 = vpop.f32.mrf.mxu1 }
 0x1d9   : > { %v3072_v55 = vadd.f32 %v2460_v53, %v2014_v4  ;;  %v575_v53 = vadd.f32 %v2455_v62, %v2014_v4  ;;  %v3102_v62 = vld [vmem:[%s3563_s7 + $0x8] sm:$0xff] }
 0x1da   : > { %v585_v58 = vpop.f32.mrf.mxu1 }
 0x1db   : > { %2461 = vmatprep.subr.msk.mxu1 %vm597_vm1, %v3072_v55  ;;  %v586_v59 = vadd.f32 %v2014_v4, %v585_v58  ;;  %v570_v58 = vadd.f32 %v2014_v4, %v569_v50  ;;  %v3116_v50 = vld [vmem:[%s3563_s7 + $0x18] sm:$0xff]  ;;  %v3121_v4 = vld [vmem:[%s3563_s7 + $0x20] sm:$0xff] }
 0x1dc   : > { %2462 = vmatpush3.xpose.msk.msra.mxu1 %vm597_vm1, %v3072_v55 }
 0x1dd   : > { %2463 = vmatprep.subr.msk.mxu1 %vm597_vm1, %v3074_v57 }
 0x1e0   : > { %2464 = vmatpush3.xpose.msk.msra.mxu1 %vm597_vm1, %v3074_v57 }
 0x1e1   : > { %2465 = vmatprep.subr.msk.mxu1 %vm597_vm1, %v586_v59 }
 0x1e4   : > { %2466 = vmatpush3.xpose.msk.msra.mxu1 %vm597_vm1, %v586_v59 }
 0x1e5   : > { %2467 = vmatprep.subr.msk.mxu1 %vm597_vm1, %v583_v61 }
 0x1e8   : > { %2468 = vmatpush3.xpose.msk.msra.mxu1 %vm597_vm1, %v583_v61 }
 0x1e9   : > { %2469 = vmatprep.subr.msk.mxu1 %vm597_vm1, %v578_v51 }
 0x1ec   : > { %2470 = vmatpush3.xpose.msk.msra.mxu1 %vm597_vm1, %v578_v51 }
 0x1ed   : > { %2471 = vmatprep.subr.msk.mxu1 %vm597_vm1, %v575_v53 }
 0x1f0   : > { %2472 = vmatpush3.xpose.msk.msra.mxu1 %vm597_vm1, %v575_v53 }
 0x1f1   : > { %2473 = vmatprep.subr.msk.mxu1 %vm597_vm1, %v570_v58 }
 0x1f4   : > { %2474 = vmatpush3.xpose.msk.msra.mxu1 %vm597_vm1, %v570_v58 }
 0x1f5   : > { %2475 = vmatprep.subr.msk.mxu1 %vm597_vm1, %v567_v52 }
 0x1f8   : > { %2476 = vmatpush3.xpose.msk.msra.mxu1 %vm597_vm1, %v567_v52 }
 0x1f9   : > { %2489 = vmatprep.subr.bf16.mxu1 %v2648_v49 }
 0x1fb   : > { %2478 = vmatmul.mubr.msk.f32.vlgmr.msra.gmra.mxu1 %vm597_vm1, %v3102_v62 }
 0x1fc   : > { %2490 = vmatpush3.bf16.msra.mxu1 %v2648_v49  ;;  %2480 = vmatprep.mubr.msk.f32.mxu1 %vm597_vm1, %v3107_v0  ;;  %v3130_v49 = vld [vmem:[%s3563_s7 + $0x28] sm:$0xff] }
 0x1fd   : > { %2527 = vmatprep.subr.bf16.mxu1 %v2653_v18 }
 0x1ff   : > { %2481 = vmatmul.mubr.msk.f32.gmra.mxu1 %vm597_vm1, %v3116_v50 }
 0x200   : > { %2483 = vmatprep.mubr.msk.f32.mxu1 %vm597_vm1, %v3121_v4 }
 0x203   : > { %2484 = vmatmul.mubr.msk.f32.gmra.mxu1 %vm597_vm1, %v3130_v49 }
 0x204   : > { %2486 = vmatprep.mubr.msk.f32.mxu1 %vm597_vm1, %v3135_v20 }
 0x207   : > { %2487 = vmatmul.mubr.msk.f32.gmra.mxu1 %vm597_vm1, %v3144_v5 }
 0x208   : > { %2491 = vmatprep.mubr.msk.bf16.mxu1 %vm519_vm0, %v3051_v56 }
 0x20b   : > { %2492 = vmatmul.mubr.msk.bf16.vlgmr.msra.gmra.mxu1 %vm519_vm0, %v3055_v63 }
 0x20c   : > { %2495 = vmatprep.mubr.msk.bf16.mxu1 %vm519_vm0, %v3059_v54  ;;  %2528 = vmatpush3.bf16.msra.mxu1 %v2653_v18 }
 0x20d   : > { %2529 = vmatprep.subr.bf16.mxu1 %v2654_v12 }
 0x210   : > { %2530 = vmatpush3.bf16.msra.mxu1 %v2654_v12 }
 0x213   : > { %2496 = vmatmul.mubr.msk.bf16.gmra.mxu1 %vm519_vm0, %v495_v60 }
 0x2bb   : > { %v2479_v56 = vpop.f32.mrf.mxu1 }
 0x2bc   : > { %v3161_v63 = vmul.f32 %v2479_v56, %v570_v58 }
 0x2bd   : > { %v712_v26 = vpop.f32.mrf.mxu1 }
 0x2be   : > { %v3163_v9 = vmul.f32 %v712_v26, %v567_v52 }
 0x2bf   : > { %v2482_v54 = vpop.f32.mrf.mxu1 }
 0x2c0   : > { %v759_v60 = vpack.c.bf16 %v3161_v63, %v3163_v9  ;;  %v3167_v19 = vmul.f32 %v2482_v54, %v578_v51 }
 0x2c1   : > { %v722_v22 = vpop.f32.mrf.mxu1 }
 0x2c2   : > { %v3169_v16 = vmul.f32 %v722_v22, %v575_v53 }
 0x2c3   : > { %v2485_v24 = vpop.f32.mrf.mxu1 }
 0x2c4   : > { %v760_v18 = vpack.c.bf16 %v3167_v19, %v3169_v16  ;;  %v3173_v21 = vmul.f32 %v2485_v24, %v586_v59  ;;  %v2039_v24 = vld [vmem:[%s3560_s4 + $0x1] ss:$0 sm:$0xff] }
 0x2c5   : > { %v732_v12 = vpop.f32.mrf.mxu1 }
 0x2c6   : > { %v755_v58 = vmul.f32 %v732_v12, %v583_v61 }
 0x2c7   : > { %v2488_v56 = vpop.f32.mrf.mxu1 }
 0x2c8   : > { %v761_v26 = vpack.c.bf16 %v3173_v21, %v755_v58  ;;  %v758_v30 = vmul.f32 %v2488_v56, %v3072_v55  ;;  %v2649_v58 = vld [vmem:[%s3561_s5 + $0x18] sm:$0xff]   ;;  %v2651_v56 = vld [vmem:[%s3561_s5 + $0x8] sm:$0xff]  }
 0x2c9   : > { %v742_v52 = vpop.f32.mrf.mxu1 }
 0x2ca   : > { %v757_v27 = vmul.f32 %v742_v52, %v3074_v57 }
 0x2cb   : > { %v2493_v51 = vpop.f32.mrf.mxu1 }
 0x2cc   : > { %v762_v54 = vpack.c.bf16 %v758_v30, %v757_v27  ;;  %v831_v57 = vadd.f32 %v2493_v51, %v2039_v24 }
 0x2cd   : > { %v822_v22 = vpop.f32.mrf.mxu1 }
 0x2cf   : > { %v2494_v53 = vpop.f32.mrf.mxu1 }
 0x2d1   : > { %v825_v32 = vpop.f32.mrf.mxu1 }
 0x2d2   : > { %v826_v12 = vadd.f32 %v2039_v24, %v825_v32  ;;  %v2650_v32 = vld [vmem:[%s3561_s5 + $0x10] sm:$0xff]  }
 0x2d3   : > { %v2497_v36 = vpop.f32.mrf.mxu1 }
 0x2d4   : > { %v3183_v21 = vadd.f32 %v2497_v36, %v2039_v24  ;;  %v834_v36 = vadd.f32 %v2494_v53, %v2039_v24 }
 0x2d5   : > { %v838_v28 = vpop.f32.mrf.mxu1 }
 0x2d6   : > { %v839_v30 = vadd.f32 %v2039_v24, %v838_v28  ;;  %v823_v28 = vadd.f32 %v2039_v24, %v822_v22 }
 0x2d7   : > { %v2498_v59 = vpop.f32.mrf.mxu1 }
 0x2d8   : > { %v3181_v61 = vadd.f32 %v2498_v59, %v2039_v24 }
 0x2d9   : > { %v841_v55 = vpop.f32.mrf.mxu1 }
 0x2da   : > { %2499 = vmatprep.subr.msk.mxu0 %vm597_vm1, %v3181_v61  ;;  %v842_v27 = vadd.f32 %v2039_v24, %v841_v55 }
 0x2db   : > { %2500 = vmatpush3.xpose.msk.msra.mxu0 %vm597_vm1, %v3181_v61 }
 0x2dc   : > { %2501 = vmatprep.subr.msk.mxu0 %vm597_vm1, %v3183_v21 }
 0x2df   : > { %2502 = vmatpush3.xpose.msk.msra.mxu0 %vm597_vm1, %v3183_v21 }
 0x2e0   : > { %2503 = vmatprep.subr.msk.mxu0 %vm597_vm1, %v842_v27 }
 0x2e3   : > { %2504 = vmatpush3.xpose.msk.msra.mxu0 %vm597_vm1, %v842_v27 }
 0x2e4   : > { %2505 = vmatprep.subr.msk.mxu0 %vm597_vm1, %v839_v30 }
 0x2e7   : > { %2506 = vmatpush3.xpose.msk.msra.mxu0 %vm597_vm1, %v839_v30 }
 0x2e8   : > { %2507 = vmatprep.subr.msk.mxu0 %vm597_vm1, %v834_v36 }
 0x2eb   : > { %2508 = vmatpush3.xpose.msk.msra.mxu0 %vm597_vm1, %v834_v36 }
 0x2ec   : > { %2509 = vmatprep.subr.msk.mxu0 %vm597_vm1, %v831_v57 }
 0x2ef   : > { %2510 = vmatpush3.xpose.msk.msra.mxu0 %vm597_vm1, %v831_v57 }
 0x2f0   : > { %2511 = vmatprep.subr.msk.mxu0 %vm597_vm1, %v826_v12 }
 0x2f3   : > { %2512 = vmatpush3.xpose.msk.msra.mxu0 %vm597_vm1, %v826_v12 }
 0x2f4   : > { %2513 = vmatprep.subr.msk.mxu0 %vm597_vm1, %v823_v28 }
 0x2f7   : > { %2514 = vmatpush3.xpose.msk.msra.mxu0 %vm597_vm1, %v823_v28 }
 0x2f8   : > { %2543 = vmatprep.subr.bf16.mxu0 %v2649_v58 }
 0x2fa   : > { %2516 = vmatmul.mubr.msk.f32.vlgmr.msra.gmra.mxu0 %vm597_vm1, %v3102_v62  ;;  %v2652_v62 = vld [vmem:[%s3561_s5] sm:$0xff]  }
 0x2fb   : > { %2544 = vmatpush3.bf16.msra.mxu0 %v2649_v58  ;;  %2518 = vmatprep.mubr.msk.f32.mxu0 %vm597_vm1, %v3107_v0 }
 0x2fc   : > { %2545 = vmatprep.subr.bf16.mxu0 %v2650_v32 }
 0x2fe   : > { %2519 = vmatmul.mubr.msk.f32.gmra.mxu0 %vm597_vm1, %v3116_v50 }
 0x2ff   : > { %2546 = vmatpush3.bf16.msra.mxu0 %v2650_v32  ;;  %2521 = vmatprep.mubr.msk.f32.mxu0 %vm597_vm1, %v3121_v4 }
 0x300   : > { %2547 = vmatprep.subr.bf16.mxu0 %v2651_v56 }
 0x302   : > { %2522 = vmatmul.mubr.msk.f32.gmra.mxu0 %vm597_vm1, %v3130_v49 }
 0x303   : > { %2548 = vmatpush3.bf16.msra.mxu0 %v2651_v56  ;;  %2524 = vmatprep.mubr.msk.f32.mxu0 %vm597_vm1, %v3135_v20  ;;  %v2655_v20 = vld [vmem:[%s3561_s5 + $0x28] sm:$0xff]  }
 0x304   : > { %2549 = vmatprep.subr.bf16.mxu0 %v2652_v62  ;;  %2531 = vmatprep.subr.bf16.mxu1 %v2655_v20 }
 0x305   : > { %2532 = vmatpush3.bf16.msra.mxu1 %v2655_v20 }
 0x306   : > { %2525 = vmatmul.mubr.msk.f32.gmra.mxu0 %vm597_vm1, %v3144_v5  ;;  %v2656_v5 = vld [vmem:[%s3561_s5 + $0x20] sm:$0xff]  }
 0x307   : > { %2550 = vmatpush3.bf16.msra.mxu0 %v2652_v62  ;;  %2551 = vmatprep.mubr.msk.bf16.mxu0 %vm597_vm1, %v759_v60 }
 0x308   : > { %2533 = vmatprep.subr.bf16.mxu1 %v2656_v5 }
 0x309   : > { %2534 = vmatpush3.bf16.msra.mxu1 %v2656_v5 }
 0x30a   : > { %2552 = vmatmul.mubr.msk.bf16.vlgmr.msra.gmra.mxu0 %vm597_vm1, %v760_v18 }
 0x30b   : > { %2555 = vmatprep.mubr.msk.bf16.mxu0 %vm597_vm1, %v761_v26 }
 0x312   : > { %2556 = vmatmul.mubr.msk.bf16.gmra.mxu0 %vm597_vm1, %v762_v54 }
 0x3ba   : > { %v2517_v9 = vpop.f32.mrf.mxu0 }
 0x3bb   : > { %v983_v19 = vmul.f32 %v2517_v9, %v826_v12 }
 0x3bc   : > { %v943_v16 = vpop.f32.mrf.mxu0 }
 0x3bd   : > { %v982_v0 = vmul.f32 %v943_v16, %v823_v28 }
 0x3be   : > { %v2520_v50 = vpop.f32.mrf.mxu0 }
 0x3bf   : > { %v990_v4 = vpack.c.bf16 %v983_v19, %v982_v0  ;;  %v985_v63 = vmul.f32 %v2520_v50, %v834_v36 }
 0x3c0   : > { %v953_v49 = vpop.f32.mrf.mxu0 }
 0x3c1   : > { %v984_v60 = vmul.f32 %v953_v49, %v831_v57  ;;  %2535 = vmatprep.mubr.msk.bf16.mxu1 %vm597_vm1, %v990_v4  ;;  %v1217_v57 = vld [vmem:[%s3558_s2 + $0x60] sm:$0xff] }
 0x3c2   : > { %v2523_v18 = vpop.f32.mrf.mxu0 }
 0x3c3   : > { %v991_v26 = vpack.c.bf16 %v985_v63, %v984_v60  ;;  %v987_v51 = vmul.f32 %v2523_v18, %v842_v27  ;;  %v1205_v27 = vld [vmem:[%s3558_s2] sm:$0xff] }
 0x3c4   : > { %v963_v52 = vpop.f32.mrf.mxu0  ;;  %2575 = vmatprep.mubr.msk.f32.mxu0 %vm597_vm1, %v1205_v27  ;;  %v1222_v27 = vld [vmem:[%s3558_s2 + $0x88] sm:$0xff] }
 0x3c5   : > { %v986_v54 = vmul.f32 %v963_v52, %v839_v30  ;;  %2536 = vmatmul.mubr.msk.bf16.vlgmr.msra.gmra.mxu1 %vm597_vm1, %v991_v26 }
 0x3c6   : > { %v2526_v22 = vpop.f32.mrf.mxu0 }
 0x3c7   : > { %v992_v53 = vpack.c.bf16 %v987_v51, %v986_v54  ;;  %v989_v59 = vmul.f32 %v2526_v22, %v3181_v61  ;;  %v1218_v54 = vld [vmem:[%s3558_s2 + $0x68] sm:$0xff] }
 0x3c8   : > { %v973_v24 = vpop.f32.mrf.mxu0  ;;  %v1206_v22 = vld [vmem:[%s3558_s2 + $0x8] sm:$0xff] }
 0x3c9   : > { %v988_v55 = vmul.f32 %v973_v24, %v3183_v21  ;;  %2539 = vmatprep.mubr.msk.bf16.mxu1 %vm597_vm1, %v992_v53  ;;  %v1219_v53 = vld [vmem:[%s3558_s2 + $0x70] sm:$0xff] }
 0x3ca   : > { %v2553_v61 = vpop.f32.mrf.mxu0  ;;  %v1207_v24 = vld [vmem:[%s3558_s2 + $0x10] sm:$0xff] }
 0x3cb   : > { %v993_v36 = vpack.c.bf16 %v989_v59, %v988_v55  ;;  %v1220_v59 = vld [vmem:[%s3558_s2 + $0x78] sm:$0xff] }
 0x3cc   : > { %v1174_v30 = vpop.f32.mrf.mxu0  ;;  %v1208_v55 = vld [vmem:[%s3558_s2 + $0x18] sm:$0xff] }
 0x3cd   : > { %2540 = vmatmul.mubr.msk.bf16.gmra.mxu1 %vm597_vm1, %v993_v36  ;;  %v1221_v36 = vld [vmem:[%s3558_s2 + $0x80] sm:$0xff] }
 0x3ce   : > { %2593 = vmatprep.mubr.msk.f32.mxu1 %vm597_vm1, %v1217_v57  ;;  %v2554_v21 = vpop.f32.mrf.mxu0  ;;  %v1209_v57 = vld [vmem:[%s3558_s2 + $0x20] sm:$0xff] }
 0x3d0   : > { %v1177_v12 = vpop.f32.mrf.mxu0 }
 0x3d2   : > { %v2557_v32 = vpop.f32.mrf.mxu0 }
 0x3d4   : > { %v1190_v20 = vpop.f32.mrf.mxu0 }
 0x3d6   : > { %v2558_v16 = vpop.f32.mrf.mxu0 }
 0x3d8   : > { %v1193_v49 = vpop.f32.mrf.mxu0 }
 0x485   : > { %v2537_v28 = vpop.f32.mrf.mxu1 }
 0x486   : > { %v1183_v26 = vadd.f32 %v2553_v61, %v2537_v28  ;;  %v1210_v61 = vld [vmem:[%s3558_s2 + $0x28] sm:$0xff]  ;;  %v1212_v28 = vld [vmem:[%s3558_s2 + $0x38] sm:$0xff] }
 0x487   : > { %v1073_v58 = vpop.f32.mrf.mxu1 }
 0x488   : > { %v1175_v51 = vadd.f32 %v1174_v30, %v1073_v58  ;;  %v1223_v30 = vld [vmem:[%s3558_s2 + $0x90] sm:$0xff]  ;;  %v1225_v58 = vld [vmem:[%s3558_s2 + $0xa0] sm:$0xff] }
 0x489   : > { %v2538_v56 = vpop.f32.mrf.mxu1 }
 0x48a   : > { %v1186_v18 = vadd.f32 %v2554_v21, %v2538_v56  ;;  %v1211_v21 = vld [vmem:[%s3558_s2 + $0x30] sm:$0xff]  ;;  %v1226_v56 = vld [vmem:[%s3558_s2 + $0xa8] sm:$0xff] }
 0x48b   : > { %v1076_v62 = vpop.f32.mrf.mxu1 }
 0x48c   : > { %v1178_v52 = vadd.f32 %v1177_v12, %v1076_v62  ;;  %v1224_v12 = vld [vmem:[%s3558_s2 + $0x98] sm:$0xff]  ;;  %v1214_v62 = vld [vmem:[%s3558_s2 + $0x48] sm:$0xff] }
 0x48d   : > { %v2541_v5 = vpop.f32.mrf.mxu1 }
 0x48e   : > { %v1199_v4 = vadd.f32 %v2557_v32, %v2541_v5  ;;  %v1213_v32 = vld [vmem:[%s3558_s2 + $0x40] sm:$0xff]  ;;  %v1215_v5 = vld [vmem:[%s3558_s2 + $0x50] sm:$0xff] }
 0x48f   : > { %v1089_v9 = vpop.f32.mrf.mxu1 }
 0x490   : > { %v1191_v60 = vadd.f32 %v1190_v20, %v1089_v9  ;;  %v1227_v20 = vld [vmem:[%s3558_s2 + $0xb0] sm:$0xff]  ;;  %v1228_v9 = vld [vmem:[%s3558_s2 + $0xb8] sm:$0xff] }
 0x491   : > { %v2542_v19 = vpop.f32.mrf.mxu1 }
 0x492   : > { %v1202_v0 = vadd.f32 %v2558_v16, %v2542_v19  ;;  %v1216_v16 = vld [vmem:[%s3558_s2 + $0x58] sm:$0xff]  ;;  %v1229_v19 = vld [vmem:[%s3558_s2 + $0xc0] sm:$0xff] }
 0x493   : > { %v1092_v50 = vpop.f32.mrf.mxu1 }
 0x494   : > { %2559 = vmatprep.subr.mxu0 %v1202_v0  ;;  %2623 = vmatprep.subr.mxu1 %v1202_v0  ;;  %v1194_v63 = vadd.f32 %v1193_v49, %v1092_v50  ;;  %v1231_v50 = vld [vmem:[%s3558_s2 + $0xd0] sm:$0xff]  ;;  %v1233_v49 = vld [vmem:[%s3558_s2 + $0xe0] sm:$0xff] }
 0x495   : > { %2560 = vmatpush3.msra.mxu0 %v1202_v0  ;;  %2631 = vmatpush3.msra.mxu1 %v1202_v0  ;;  %v1230_v0 = vld [vmem:[%s3558_s2 + $0xc8] sm:$0xff] }
 0x496   : > { %2561 = vmatprep.subr.mxu0 %v1199_v4  ;;  %2624 = vmatprep.subr.mxu1 %v1199_v4 }
 0x497   : > { %2562 = vmatpush3.msra.mxu0 %v1199_v4  ;;  %2632 = vmatpush3.msra.mxu1 %v1199_v4  ;;  %v1232_v4 = vld [vmem:[%s3558_s2 + $0xd8] sm:$0xff] }
 0x498   : > { %2563 = vmatprep.subr.mxu0 %v1194_v63  ;;  %2625 = vmatprep.subr.mxu1 %v1194_v63 }
 0x499   : > { %2564 = vmatpush3.msra.mxu0 %v1194_v63  ;;  %2633 = vmatpush3.msra.mxu1 %v1194_v63  ;;  %v1234_v63 = vld [vmem:[%s3558_s2 + $0xe8] sm:$0xff] }
 0x49a   : > { %2565 = vmatprep.subr.mxu0 %v1191_v60  ;;  %2626 = vmatprep.subr.mxu1 %v1191_v60 }
 0x49b   : > { %2566 = vmatpush3.msra.mxu0 %v1191_v60  ;;  %2634 = vmatpush3.msra.mxu1 %v1191_v60  ;;  %v1235_v60 = vld [vmem:[%s3558_s2 + $0xf0] sm:$0xff] }
 0x49c   : > { %2567 = vmatprep.subr.mxu0 %v1186_v18  ;;  %2627 = vmatprep.subr.mxu1 %v1186_v18 }
 0x49d   : > { %2568 = vmatpush3.msra.mxu0 %v1186_v18  ;;  %2635 = vmatpush3.msra.mxu1 %v1186_v18  ;;  %v1236_v18 = vld [vmem:[%s3558_s2 + $0xf8] sm:$0xff] }
 0x49e   : > { %2569 = vmatprep.subr.mxu0 %v1183_v26  ;;  %2628 = vmatprep.subr.mxu1 %v1183_v26 }
 0x49f   : > { %2570 = vmatpush3.msra.mxu0 %v1183_v26  ;;  %2636 = vmatpush3.msra.mxu1 %v1183_v26  ;;  %v3384_v26 = vld [vmem:[%s3562_s6] ss:$0 sm:$0xff] }
 0x4a0   : > { %2571 = vmatprep.subr.mxu0 %v1178_v52  ;;  %2629 = vmatprep.subr.mxu1 %v1178_v52 }
 0x4a1   : > { %2572 = vmatpush3.msra.mxu0 %v1178_v52  ;;  %2637 = vmatpush3.msra.mxu1 %v1178_v52 }
 0x4a2   : > { %2573 = vmatprep.subr.mxu0 %v1175_v51  ;;  %2630 = vmatprep.subr.mxu1 %v1175_v51 }
 0x4a3   : > { %2574 = vmatpush3.msra.mxu0 %v1175_v51  ;;  %2638 = vmatpush3.msra.mxu1 %v1175_v51 }
 0x4a4   : > { %2594 = vmatmul.mubr.msk.f32.vlgmr.msra.gmra.mxu1 %vm597_vm1, %v1218_v54  ;;  %2576 = vmatmul.mubr.msk.f32.vlgmr.msra.gmra.mxu0 %vm597_vm1, %v1206_v22 }
 0x4a5   : > { %2596 = vmatprep.mubr.msk.f32.mxu1 %vm597_vm1, %v1219_v53  ;;  %2578 = vmatprep.mubr.msk.f32.mxu0 %vm597_vm1, %v1207_v24 }
 0x4a8   : > { %2597 = vmatmul.mubr.msk.f32.gmra.mxu1 %vm597_vm1, %v1220_v59  ;;  %2579 = vmatmul.mubr.msk.f32.gmra.mxu0 %vm597_vm1, %v1208_v55 }
 0x4a9   : > { %2599 = vmatprep.mubr.msk.f32.mxu1 %vm597_vm1, %v1221_v36  ;;  %2581 = vmatprep.mubr.msk.f32.mxu0 %vm597_vm1, %v1209_v57 }
 0x4ac   : > { %2600 = vmatmul.mubr.msk.f32.gmra.mxu1 %vm597_vm1, %v1222_v27  ;;  %2582 = vmatmul.mubr.msk.f32.gmra.mxu0 %vm597_vm1, %v1210_v61 }
 0x4ad   : > { %2602 = vmatprep.mubr.msk.f32.mxu1 %vm597_vm1, %v1223_v30  ;;  %2584 = vmatprep.mubr.msk.f32.mxu0 %vm597_vm1, %v1211_v21 }
 0x4b0   : > { %2603 = vmatmul.mubr.msk.f32.gmra.mxu1 %vm597_vm1, %v1224_v12  ;;  %2585 = vmatmul.mubr.msk.f32.gmra.mxu0 %vm597_vm1, %v1212_v28 }
 0x4b1   : > { %2605 = vmatprep.mubr.msk.f32.mxu1 %vm597_vm1, %v1225_v58  ;;  %2587 = vmatprep.mubr.msk.f32.mxu0 %vm597_vm1, %v1213_v32 }
 0x4b4   : > { %2606 = vmatmul.mubr.msk.f32.gmra.mxu1 %vm597_vm1, %v1226_v56  ;;  %2588 = vmatmul.mubr.msk.f32.gmra.mxu0 %vm597_vm1, %v1214_v62 }
 0x4b5   : > { %2608 = vmatprep.mubr.msk.f32.mxu1 %vm597_vm1, %v1227_v20  ;;  %2590 = vmatprep.mubr.msk.f32.mxu0 %vm597_vm1, %v1215_v5 }
 0x4b8   : > { %2609 = vmatmul.mubr.msk.f32.gmra.mxu1 %vm597_vm1, %v1228_v9  ;;  %2591 = vmatmul.mubr.msk.f32.gmra.mxu0 %vm597_vm1, %v1216_v16 }
 0x4b9   : > { %2611 = vmatprep.mubr.msk.f32.mxu1 %vm597_vm1, %v1229_v19 }
 0x4bc   : > { %2612 = vmatmul.mubr.msk.f32.gmra.mxu1 %vm597_vm1, %v1230_v0 }
 0x4bd   : > { %2614 = vmatprep.mubr.msk.f32.mxu1 %vm597_vm1, %v1231_v50 }
 0x4c0   : > { %2615 = vmatmul.mubr.msk.f32.gmra.mxu1 %vm597_vm1, %v1232_v4 }
 0x4c1   : > { %2617 = vmatprep.mubr.msk.f32.mxu1 %vm597_vm1, %v1233_v49 }
 0x4c4   : > { %2618 = vmatmul.mubr.msk.f32.gmra.mxu1 %vm597_vm1, %v1234_v63 }
 0x4c5   : > { %2620 = vmatprep.mubr.msk.f32.mxu1 %vm597_vm1, %v1235_v60 }
 0x4c8   : > { %2621 = vmatmul.mubr.msk.f32.gmra.mxu1 %vm597_vm1, %v1236_v18 }
 0x564   : > { %v2595_v52 = vpop.f32.mrf.mxu1  ;;  %v2577_v51 = vpop.f32.mrf.mxu0 }
 0x565   : > { %v1472_v54 = vadd.f32 %v2595_v52, %v3384_v26  ;;  %v1412_v22 = vadd.f32 %v2577_v51, %v3384_v26 }
 0x566   : > { %v1466_v53 = vpop.f32.mrf.mxu1  ;;  %v1406_v24 = vpop.f32.mrf.mxu0 }
 0x567   : > { %v2131_v59 = vmul.f32 -1.442695, %v1472_v54  ;;  %v1467_v55 = vadd.f32 %v3384_v26, %v1466_v53  ;;  %v2119_v36 = vmul.f32 -1.442695, %v1412_v22  ;;  %v1407_v57 = vadd.f32 %v3384_v26, %v1406_v24 }
 0x568   : > { %v2598_v27 = vpop.f32.mrf.mxu1  ;;  %v2580_v61 = vpop.f32.mrf.mxu0 }
 0x569   : > { %2657 = vpow2.f32 %v2131_v59  ;;  %v2130_v30 = vmul.f32 -1.442695, %v1467_v55  ;;  %v1482_v21 = vadd.f32 %v2598_v27, %v3384_v26  ;;  %v2118_v12 = vmul.f32 -1.442695, %v1407_v57 }
 0x56a   : > { %v1476_v28 = vpop.f32.mrf.mxu1  ;;  %2659 = vpow2.f32 %v2119_v36  ;;  %v1422_v58 = vadd.f32 %v2580_v61, %v3384_v26  ;;  %v1416_v32 = vpop.f32.mrf.mxu0 }
 0x56b   : > { %2661 = vpow2.f32 %v2130_v30  ;;  %v2133_v56 = vmul.f32 -1.442695, %v1482_v21  ;;  %v1477_v62 = vadd.f32 %v3384_v26, %v1476_v28  ;;  %v1417_v20 = vadd.f32 %v3384_v26, %v1416_v32 }
 0x56c   : > { %v2601_v5 = vpop.f32.mrf.mxu1  ;;  %2663 = vpow2.f32 %v2118_v12  ;;  %v2121_v9 = vmul.f32 -1.442695, %v1422_v58  ;;  %v2583_v16 = vpop.f32.mrf.mxu0 }
 0x56d   : > { %2665 = vpow2.f32 %v2133_v56  ;;  %v2132_v19 = vmul.f32 -1.442695, %v1477_v62  ;;  %v1492_v0 = vadd.f32 %v2601_v5, %v3384_v26  ;;  %v2120_v50 = vmul.f32 -1.442695, %v1417_v20 }
 0x56e   : > { %v1486_v4 = vpop.f32.mrf.mxu1  ;;  %2667 = vpow2.f32 %v2121_v9  ;;  %v1432_v49 = vadd.f32 %v2583_v16, %v3384_v26  ;;  %v1426_v63 = vpop.f32.mrf.mxu0 }
 0x56f   : > { %2669 = vpow2.f32 %v2132_v19  ;;  %v2135_v60 = vmul.f32 -1.442695, %v1492_v0  ;;  %v1487_v18 = vadd.f32 %v3384_v26, %v1486_v4  ;;  %v1427_v52 = vadd.f32 %v3384_v26, %v1426_v63 }
 0x570   : > { %v2604_v51 = vpop.f32.mrf.mxu1  ;;  %2671 = vpow2.f32 %v2120_v50  ;;  %v2123_v54 = vmul.f32 -1.442695, %v1432_v49  ;;  %v2586_v22 = vpop.f32.mrf.mxu0 }
 0x571   : > { %2673 = vpow2.f32 %v2135_v60  ;;  %v2134_v53 = vmul.f32 -1.442695, %v1487_v18  ;;  %v1502_v24 = vadd.f32 %v2604_v51, %v3384_v26  ;;  %v2122_v59 = vmul.f32 -1.442695, %v1427_v52 }
 0x572   : > { %v1496_v55 = vpop.f32.mrf.mxu1  ;;  %2675 = vpow2.f32 %v2123_v54  ;;  %v1442_v36 = vadd.f32 %v2586_v22, %v3384_v26  ;;  %v1436_v57 = vpop.f32.mrf.mxu0 }
 0x573   : > { %2677 = vpow2.f32 %v2134_v53  ;;  %v2137_v27 = vmul.f32 -1.442695, %v1502_v24  ;;  %v1497_v61 = vadd.f32 %v3384_v26, %v1496_v55  ;;  %v1437_v30 = vadd.f32 %v3384_v26, %v1436_v57 }
 0x574   : > { %v2607_v21 = vpop.f32.mrf.mxu1  ;;  %2679 = vpow2.f32 %v2122_v59  ;;  %v2125_v12 = vmul.f32 -1.442695, %v1442_v36 }
 0x575   : > { %2681 = vpow2.f32 %v2137_v27  ;;  %v2136_v28 = vmul.f32 -1.442695, %v1497_v61  ;;  %v1512_v58 = vadd.f32 %v2607_v21, %v3384_v26  ;;  %v2124_v32 = vmul.f32 -1.442695, %v1437_v30 }
 0x576   : > { %v2658_v56 = vpop.eup %2657  ;;  %v1506_v62 = vpop.f32.mrf.mxu1  ;;  %2683 = vpow2.f32 %v2125_v12 }
 0x577   : > { %v2660_v20 = vpop.eup %2659  ;;  %v1674_v5 = vadd.f32 1.0, %v2658_v56  ;;  %2685 = vpow2.f32 %v2136_v28  ;;  %v2139_v19 = vmul.f32 -1.442695, %v1512_v58  ;;  %v1507_v0 = vadd.f32 %v3384_v26, %v1506_v62  ;;  %v2589_v62 = vpop.f32.mrf.mxu0 }
 0x578   : > { %v2662_v9 = vpop.eup %2661  ;;  %v1662_v16 = vadd.f32 1.0, %v2660_v20  ;;  %v2610_v50 = vpop.f32.mrf.mxu1  ;;  %2687 = vpow2.f32 %v2124_v32 }
 0x579   : > { %v2664_v4 = vpop.eup %2663  ;;  %2689 = vrcp.f32 %v1674_v5  ;;  %v1673_v49 = vadd.f32 1.0, %v2662_v9  ;;  %v2138_v22 = vmul.f32 -1.442695, %v1507_v0  ;;  %v1522_v53 = vadd.f32 %v2610_v50, %v3384_v26 }
 0x57a   : > { %v2666_v63 = vpop.eup %2665  ;;  %2691 = vrcp.f32 %v1662_v16  ;;  %v1661_v60 = vadd.f32 1.0, %v2664_v4  ;;  %v1516_v18 = vpop.f32.mrf.mxu1 }
 0x57b   : > { %v2668_v52 = vpop.eup %2667  ;;  %2693 = vrcp.f32 %v1673_v49  ;;  %v1676_v51 = vadd.f32 1.0, %v2666_v63  ;;  %v2141_v12 = vmul.f32 -1.442695, %v1522_v53  ;;  %v1517_v28 = vadd.f32 %v3384_v26, %v1516_v18 }
 0x57c   : > { %v2670_v54 = vpop.eup %2669  ;;  %2695 = vpow2.f32 %v2139_v19  ;;  %v2613_v24 = vpop.f32.mrf.mxu1  ;;  %v1664_v57 = vadd.f32 1.0, %v2668_v52 }
 0x57d   : > { %v2672_v59 = vpop.eup %2671  ;;  %2697 = vrcp.f32 %v1676_v51  ;;  %v1675_v55 = vadd.f32 1.0, %v2670_v54  ;;  %v1532_v9 = vadd.f32 %v2613_v24, %v3384_v26  ;;  %v2140_v4 = vmul.f32 -1.442695, %v1517_v28  ;;  %v1446_v52 = vpop.f32.mrf.mxu0 }
 0x57e   : > { %v2674_v36 = vpop.eup %2673  ;;  %2699 = vrcp.f32 %v1661_v60  ;;  %v1526_v27 = vpop.f32.mrf.mxu1  ;;  %v1663_v5 = vadd.f32 1.0, %v2672_v59 }
 0x57f   : > { %v2676_v61 = vpop.eup %2675  ;;  %2701 = vrcp.f32 %v1675_v55  ;;  %v1678_v30 = vadd.f32 1.0, %v2674_v36  ;;  %v1527_v18 = vadd.f32 %v3384_v26, %v1526_v27  ;;  %v2143_v54 = vmul.f32 -1.442695, %v1532_v9 }
 0x580   : > { %v2678_v21 = vpop.eup %2677  ;;  %2703 = vpow2.f32 %v2138_v22  ;;  %v2616_v58 = vpop.f32.mrf.mxu1  ;;  %v1666_v60 = vadd.f32 1.0, %v2676_v61  ;;  %v1452_v22 = vadd.f32 %v2589_v62, %v3384_v26 }
 0x581   : > { %v2680_v32 = vpop.eup %2679  ;;  %2705 = vrcp.f32 %v1678_v30  ;;  %v1677_v56 = vadd.f32 1.0, %v2678_v21  ;;  %v1542_v55 = vadd.f32 %v2616_v58, %v3384_v26  ;;  %v2142_v28 = vmul.f32 -1.442695, %v1527_v18 }
 0x582   : > { %v2682_v20 = vpop.eup %2681  ;;  %2707 = vrcp.f32 %v1664_v57  ;;  %v1536_v0 = vpop.f32.mrf.mxu1  ;;  %v1665_v59 = vadd.f32 1.0, %v2680_v32  ;;  %v2127_v2 = vmul.f32 -1.442695, %v1452_v22 }
 0x583   : > { %v2684_v16 = vpop.eup %2683  ;;  %2709 = vrcp.f32 %v1677_v56  ;;  %v1680_v19 = vadd.f32 1.0, %v2682_v20  ;;  %v1537_v61 = vadd.f32 %v3384_v26, %v1536_v0  ;;  %v2145_v9 = vmul.f32 -1.442695, %v1542_v55 }
 0x584   : > { %v2686_v50 = vpop.eup %2685  ;;  %2711 = vpow2.f32 %v2141_v12  ;;  %v2619_v36 = vpop.f32.mrf.mxu1  ;;  %v1668_v62 = vadd.f32 1.0, %v2684_v16 }
 0x585   : > { %v2688_v49 = vpop.eup %2687  ;;  %2713 = vrcp.f32 %v1680_v19  ;;  %v1679_v63 = vadd.f32 1.0, %v2686_v50  ;;  %v2144_v0 = vmul.f32 -1.442695, %v1537_v61  ;;  %v1552_v16 = vadd.f32 %v2619_v36, %v3384_v26 }
 0x586   : > { %v2690_v51 = vpop.eup %2689  ;;  %2715 = vrcp.f32 %v1663_v5  ;;  %v1546_v7 = vpop.f32.mrf.mxu1 }
 0x587   : > { %v2692_v53 = vpop.eup %2691  ;;  %v1770_v24 = vmul.f32 %v2690_v51, %v2245_v10  ;;  %2717 = vrcp.f32 %v1679_v63  ;;  %v1447_v10 = vadd.f32 %v3384_v26, %v1446_v52  ;;  %v1667_v63 = vadd.f32 1.0, %v2688_v49 }
 0x588   : > { %v2694_v57 = vpop.eup %2693  ;;  %v1758_v27 = vmul.f32 %v2692_v53, %v2221_v46  ;;  %2719 = vpow2.f32 %v2140_v4  ;;  %v1547_v43 = vadd.f32 %v3384_v26, %v1546_v7  ;;  %v2147_v22 = vmul.f32 -1.442695, %v1552_v16 }
 0x589   : > { %v2696_v30 = vpop.eup %2695  ;;  %v2199_v21 = vpack.c.bf16 %v1770_v24, %v1770_v24  ;;  %v1769_v12 = vmul.f32 %v2694_v57, %v2244_v14  ;;  %2721 = vrcp.f32 %v1666_v60  ;;  %v2592_v60 = vpop.f32.mrf.mxu0 }
 0x58a   : > { %v2698_v58 = vpop.eup %2697  ;;  %v2187_v32 = vpack.c.bf16 %v1758_v27, %v1758_v27  ;;  %v1682_v56 = vadd.f32 1.0, %v2696_v30  ;;  %2723 = vpow2.f32 %v2143_v54  ;;  %v1462_v55 = vadd.f32 %v2592_v60, %v3384_v26 }
 0x58b   : > { %v2700_v46 = vpop.eup %2699  ;;  %1931 = vst.msk [vmem:[%s3417_s18 + $0x34] sm:$0xf] %vm1917_vm2, %v2199_v21  ;;  %v2198_v20 = vpack.c.bf16 %v1769_v12, %v1769_v12  ;;  %v1772_v5 = vmul.f32 %v2698_v58, %v2249_v6  ;;  %2725 = vrcp.f32 %v1665_v59  ;;  %v2126_v59 = vmul.f32 -1.442695, %v1447_v10  ;;  %v1456_v27 = vpop.f32.mrf.mxu0 }
 0x58c   : > { %v2702_v14 = vpop.eup %2701  ;;  %1919 = vst.msk [vmem:[%s3417_s18 + $0x4] sm:$0xf] %vm1917_vm2, %v2187_v32  ;;  %2727 = vrcp.f32 %v1682_v56  ;;  %v1757_v19 = vmul.f32 %v2700_v46, %v2220_v48  ;;  %v1457_v56 = vadd.f32 %v3384_v26, %v1456_v27 }
 0x58d   : > { %v2704_v50 = vpop.eup %2703  ;;  %1930 = vst.msk [vmem:[%s3417_s18 + $0x30] sm:$0xf] %vm1917_vm2, %v2198_v20  ;;  %v2201_v4 = vpack.c.bf16 %v1772_v5, %v1772_v5  ;;  %v1771_v6 = vmul.f32 %v2702_v14, %v2248_v8  ;;  %2729 = vpow2.f32 %v2142_v28  ;;  %v2622_v8 = vpop.f32.mrf.mxu1  ;;  %v2129_v20 = vmul.f32 -1.442695, %v1462_v55 }
 0x58e   : > { %v2706_v18 = vpop.eup %2705  ;;  %v2186_v52 = vpack.c.bf16 %v1757_v19, %v1757_v19  ;;  %v1681_v51 = vadd.f32 1.0, %v2704_v50  ;;  %2731 = vrcp.f32 %v1668_v62  ;;  %v1562_v41 = vadd.f32 %v2622_v8, %v3384_v26 }
 0x58f   : > { %v2708_v48 = vpop.eup %2707  ;;  %1933 = vst.msk [vmem:[%s3417_s18 + $0x3c] sm:$0xf] %vm1917_vm2, %v2201_v4  ;;  %v2200_v54 = vpack.c.bf16 %v1771_v6, %v1771_v6  ;;  %v1774_v53 = vmul.f32 %v2706_v18, %v2253_v45  ;;  %2733 = vpow2.f32 %v2145_v9  ;;  %v2128_v16 = vmul.f32 -1.442695, %v1457_v56 }
 0x590   : > { %v2710_v24 = vpop.eup %2709  ;;  %1918 = vst.msk [vmem:[%s3417_s18] sm:$0xf] %vm1917_vm2, %v2186_v52  ;;  %2735 = vrcp.f32 %v1681_v51  ;;  %v1760_v49 = vmul.f32 %v2708_v48, %v2225_v40  ;;  %v2146_v40 = vmul.f32 -1.442695, %v1547_v43  ;;  %v2149_v35 = vmul.f32 -1.442695, %v1562_v41 }
 0x591   : > { %v2712_v36 = vpop.eup %2711  ;;  %1932 = vst.msk [vmem:[%s3417_s18 + $0x38] sm:$0xf] %vm1917_vm2, %v2200_v54  ;;  %v2203_v57 = vpack.c.bf16 %v1774_v53, %v1774_v53  ;;  %v1773_v45 = vmul.f32 %v2710_v24, %v2252_v47  ;;  %2737 = vrcp.f32 %v1667_v63  ;;  %v1556_v47 = vpop.f32.mrf.mxu1  ;;  %v3583_v53 = vunpack.c.l.bf16 %v2936_v29 }
 0x592   : > { %v2714_v61 = vpop.eup %2713  ;;  %v2189_v30 = vpack.c.bf16 %v1760_v49, %v1760_v49  ;;  %v1684_v21 = vadd.f32 1.0, %v2712_v36  ;;  %2739 = vpow2.f32 %v2144_v0  ;;  %v1557_v37 = vadd.f32 %v3384_v26, %v1556_v47 }
 0x593   : > { %v2716_v10 = vpop.eup %2715  ;;  %1935 = vst.msk [vmem:[%s3417_s18 + $0x44] sm:$0xf] %vm1917_vm2, %v2203_v57  ;;  %v2202_v12 = vpack.c.bf16 %v1773_v45, %v1773_v45  ;;  %v1776_v28 = vmul.f32 %v2714_v61, %v2257_v39  ;;  %2741 = vpow2.f32 %v2127_v2  ;;  %v3584_v49 = vunpack.c.l.bf16 %v2924_v25 }
 0x594   : > { %v2718_v58 = vpop.eup %2717  ;;  %1921 = vst.msk [vmem:[%s3417_s18 + $0xc] sm:$0xf] %vm1917_vm2, %v2189_v30  ;;  %2743 = vrcp.f32 %v1684_v21  ;;  %v1759_v32 = vmul.f32 %v2716_v10, %v2224_v44  ;;  %v2148_v63 = vmul.f32 -1.442695, %v1557_v37  ;;  %v3585_v29 = vunpack.c.h.bf16 %v2918_v23 }
 0x595   : > { %v2720_v62 = vpop.eup %2719  ;;  %1934 = vst.msk [vmem:[%s3417_s18 + $0x40] sm:$0xf] %vm1917_vm2, %v2202_v12  ;;  %v2205_v46 = vpack.c.bf16 %v1776_v28, %v1776_v28  ;;  %v1775_v39 = vmul.f32 %v2718_v58, %v2256_v42  ;;  %2745 = vpow2.f32 %v2147_v22  ;;  %v3586_v58 = vunpack.c.l.bf16 %v2918_v23 }
 0x596   : > { %v2722_v5 = vpop.eup %2721  ;;  %v2188_v9 = vpack.c.bf16 %v1759_v32, %v1759_v32  ;;  %v1683_v7 = vadd.f32 1.0, %v2720_v62  ;;  %2747 = vpow2.f32 %v2126_v59 }
 0x597   : > { %v2724_v44 = vpop.eup %2723  ;;  %1937 = vst.msk [vmem:[%s3417_s18 + $0x4c] sm:$0xf] %vm1917_vm2, %v2205_v46  ;;  %v2204_v14 = vpack.c.bf16 %v1775_v39, %v1775_v39  ;;  %v1762_v19 = vmul.f32 %v2722_v5, %v2229_v34  ;;  %2749 = vpow2.f32 %v2146_v40 }
 0x598   : > { %v2726_v42 = vpop.eup %2725  ;;  %1920 = vst.msk [vmem:[%s3417_s18 + $0x8] sm:$0xf] %vm1917_vm2, %v2188_v9  ;;  %2751 = vrcp.f32 %v1683_v7  ;;  %v1686_v0 = vadd.f32 1.0, %v2724_v44 }
 0x599   : > { %v2728_v50 = vpop.eup %2727  ;;  %1936 = vst.msk [vmem:[%s3417_s18 + $0x48] sm:$0xf] %vm1917_vm2, %v2204_v14  ;;  %v2191_v26 = vpack.c.bf16 %v1762_v19, %v1762_v19  ;;  %v1761_v4 = vmul.f32 %v2726_v42, %v2228_v38  ;;  %2753 = vpow2.f32 %v2129_v20  ;;  %v3587_v20 = vunpack.c.h.bf16 %v2894_v15 }
 0x59a   : > { %v2730_v6 = vpop.eup %2729  ;;  %v1778_v34 = vmul.f32 %v2728_v50, %v2261_v33  ;;  %2755 = vrcp.f32 %v1686_v0  ;;  %v3588_v19 = vunpack.c.l.bf16 %v2894_v15  ;;  %v3589_v50 = vunpack.c.h.bf16 %v2882_v11 }
 0x59b   : > { %v2732_v60 = vpop.eup %2731  ;;  %1923 = vst.msk [vmem:[%s3417_s18 + $0x14] sm:$0xf] %vm1917_vm2, %v2191_v26  ;;  %v2190_v18 = vpack.c.bf16 %v1761_v4, %v1761_v4  ;;  %v1685_v52 = vadd.f32 1.0, %v2730_v6  ;;  %2757 = vpow2.f32 %v2149_v35  ;;  %v3590_v15 = vunpack.c.l.bf16 %v2882_v11 }
 0x59c   : > { %v2734_v51 = vpop.eup %2733  ;;  %v2207_v43 = vpack.c.bf16 %v1778_v34, %v1778_v34  ;;  %v1764_v38 = vmul.f32 %v2732_v60, %v3582_v31  ;;  %2759 = vpow2.f32 %v2128_v16  ;;  %v3591_v60 = vunpack.c.h.bf16 %v2900_v17 }
 0x59d   : > { %v2736_v48 = vpop.eup %2735  ;;  %1922 = vst.msk [vmem:[%s3417_s18 + $0x10] sm:$0xf] %vm1917_vm2, %v2190_v18  ;;  %2761 = vrcp.f32 %v1685_v52  ;;  %v1688_v33 = vadd.f32 1.0, %v2734_v51  ;;  %v3593_v11 = vunpack.c.l.bf16 %v2900_v17 }
 0x59e   : > { %v2738_v54 = vpop.eup %2737  ;;  %1939 = vst.msk [vmem:[%s3417_s18 + $0x54] sm:$0xf] %vm1917_vm2, %v2207_v43  ;;  %v1777_v2 = vmul.f32 %v2736_v48, %v3583_v53  ;;  %v2193_v8 = vpack.c.bf16 %v1764_v38, %v1764_v38  ;;  %2763 = vpow2.f32 %v2148_v63  ;;  %v3592_v38 = vunpack.c.h.bf16 %v2866_v3 }
 0x59f   : > { %v2740_v24 = vpop.eup %2739  ;;  %2765 = vrcp.f32 %v1688_v33  ;;  %v1763_v59 = vmul.f32 %v2738_v54, %v3584_v49 }
 0x5a0   : > { %v2742_v55 = vpop.eup %2741  ;;  %v2206_v36 = vpack.c.bf16 %v1777_v2, %v1777_v2  ;;  %1925 = vst.msk [vmem:[%s3417_s18 + $0x1c] sm:$0xf] %vm1917_vm2, %v2193_v8  ;;  %v1687_v57 = vadd.f32 1.0, %v2740_v24  ;;  %v3594_v2 = vunpack.c.l.bf16 %v2866_v3  ;;  %v3596_v3 = vunpack.c.h.bf16 %v2860_v1 }
 0x5a1   : > { %v2744_v45 = vpop.eup %2743  ;;  %v2192_v22 = vpack.c.bf16 %v1763_v59, %v1763_v59  ;;  %v1670_v27 = vadd.f32 1.0, %v2742_v55  ;;  %v3595_v55 = vunpack.c.h.bf16 %v2888_v13 }
 0x5a2   : > { %v2746_v61 = vpop.eup %2745  ;;  %1938 = vst.msk [vmem:[%s3417_s18 + $0x50] sm:$0xf] %vm1917_vm2, %v2206_v36  ;;  %v1780_v30 = vmul.f32 %v2744_v45, %v3585_v29  ;;  %2767 = vrcp.f32 %v1687_v57 }
 0x5a3   : > { %v2748_v21 = vpop.eup %2747  ;;  %1924 = vst.msk [vmem:[%s3417_s18 + $0x18] sm:$0xf] %vm1917_vm2, %v2192_v22  ;;  %2769 = vrcp.f32 %v1670_v27  ;;  %v1690_v25 = vadd.f32 1.0, %v2746_v61  ;;  %v3597_v27 = vunpack.c.l.bf16 %v2888_v13 }
 0x5a4   : > { %v2750_v40 = vpop.eup %2749  ;;  %v2209_v10 = vpack.c.bf16 %v1780_v30, %v1780_v30  ;;  %v1669_v12 = vadd.f32 1.0, %v2748_v21 }
 0x5a5   : > { %v2752_v28 = vpop.eup %2751  ;;  %2771 = vrcp.f32 %v1690_v25  ;;  %v1689_v41 = vadd.f32 1.0, %v2750_v40  ;;  %v3598_v25 = vunpack.c.l.bf16 %v2860_v1 }
 0x5a6   : > { %v2754_v47 = vpop.eup %2753  ;;  %1941 = vst.msk [vmem:[%s3417_s18 + $0x5c] sm:$0xf] %vm1917_vm2, %v2209_v10  ;;  %v1779_v32 = vmul.f32 %v2752_v28, %v3586_v58  ;;  %2773 = vrcp.f32 %v1669_v12 }
 0x5a7   : > { %v2756_v56 = vpop.eup %2755  ;;  %2775 = vrcp.f32 %v1689_v41  ;;  %v1672_v62 = vadd.f32 1.0, %v2754_v47 }
 0x5a8   : > { %v2758_v46 = vpop.eup %2757  ;;  %v2208_v39 = vpack.c.bf16 %v1779_v32, %v1779_v32  ;;  %v1782_v5 = vmul.f32 %v2756_v56, %v3587_v20 }
 0x5a9   : > { %v2760_v9 = vpop.eup %2759  ;;  %2777 = vrcp.f32 %v1672_v62  ;;  %v1692_v7 = vadd.f32 1.0, %v2758_v46 }
 0x5aa   : > { %v2762_v37 = vpop.eup %2761  ;;  %1940 = vst.msk [vmem:[%s3417_s18 + $0x58] sm:$0xf] %vm1917_vm2, %v2208_v39  ;;  %v2211_v44 = vpack.c.bf16 %v1782_v5, %v1782_v5  ;;  %v1671_v23 = vadd.f32 1.0, %v2760_v9 }
 0x5ab   : > { %v2764_v14 = vpop.eup %2763  ;;  %v1781_v35 = vmul.f32 %v2762_v37, %v3588_v19  ;;  %2779 = vrcp.f32 %v1692_v7 }
 0x5ac   : > { %v2766_v42 = vpop.eup %2765  ;;  %1943 = vst.msk [vmem:[%s3417_s18 + $0x64] sm:$0xf] %vm1917_vm2, %v2211_v44  ;;  %2781 = vrcp.f32 %v1671_v23  ;;  %v1691_v0 = vadd.f32 1.0, %v2764_v14 }
 0x5ad   : > { %v2210_v16 = vpack.c.bf16 %v1781_v35, %v1781_v35  ;;  %v1784_v26 = vmul.f32 %v2766_v42, %v3589_v50 }
 0x5ae   : > { %2783 = vrcp.f32 %v1691_v0 }
 0x5af   : > { %v2768_v4 = vpop.eup %2767  ;;  %1942 = vst.msk [vmem:[%s3417_s18 + $0x60] sm:$0xf] %vm1917_vm2, %v2210_v16  ;;  %v2213_v6 = vpack.c.bf16 %v1784_v26, %v1784_v26 }
 0x5b0   : > { %v2770_v34 = vpop.eup %2769  ;;  %v1783_v63 = vmul.f32 %v2768_v4, %v3590_v15 }
 0x5b1   : > { %1945 = vst.msk [vmem:[%s3417_s18 + $0x6c] sm:$0xf] %vm1917_vm2, %v2213_v6  ;;  %v1766_v18 = vmul.f32 %v2770_v34, %v3591_v60 }
 0x5b2   : > { %v2772_v52 = vpop.eup %2771  ;;  %v2212_v51 = vpack.c.bf16 %v1783_v63, %v1783_v63 }
 0x5b3   : > { %v2774_v43 = vpop.eup %2773  ;;  %v2195_v31 = vpack.c.bf16 %v1766_v18, %v1766_v18  ;;  %v1786_v48 = vmul.f32 %v2772_v52, %v3592_v38 }
 0x5b4   : > { %v2776_v33 = vpop.eup %2775  ;;  %1944 = vst.msk [vmem:[%s3417_s18 + $0x68] sm:$0xf] %vm1917_vm2, %v2212_v51  ;;  %v1765_v54 = vmul.f32 %v2774_v43, %v3593_v11 }
 0x5b5   : > { %1927 = vst.msk [vmem:[%s3417_s18 + $0x24] sm:$0xf] %vm1917_vm2, %v2195_v31  ;;  %v2215_v53 = vpack.c.bf16 %v1786_v48, %v1786_v48  ;;  %v1785_v8 = vmul.f32 %v2776_v33, %v3594_v2 }
 0x5b6   : > { %v2778_v24 = vpop.eup %2777  ;;  %v2194_v49 = vpack.c.bf16 %v1765_v54, %v1765_v54 }
 0x5b7   : > { %1947 = vst.msk [vmem:[%s3417_s18 + $0x74] sm:$0xf] %vm1917_vm2, %v2215_v53  ;;  %v2214_v59 = vpack.c.bf16 %v1785_v8, %v1785_v8  ;;  %v1768_v36 = vmul.f32 %v2778_v24, %v3595_v55 }
 0x5b8   : > { %v2780_v17 = vpop.eup %2779  ;;  %1926 = vst.msk [vmem:[%s3417_s18 + $0x20] sm:$0xf] %vm1917_vm2, %v2194_v49 }
 0x5b9   : > { %v2782_v57 = vpop.eup %2781  ;;  %1946 = vst.msk [vmem:[%s3417_s18 + $0x70] sm:$0xf] %vm1917_vm2, %v2214_v59  ;;  %v2197_v45 = vpack.c.bf16 %v1768_v36, %v1768_v36  ;;  %v1788_v22 = vmul.f32 %v2780_v17, %v3596_v3 }
 0x5ba   : > { %v1767_v61 = vmul.f32 %v2782_v57, %v3597_v27 }
 0x5bb   : > { %v2784_v29 = vpop.eup %2783  ;;  %1929 = vst.msk [vmem:[%s3417_s18 + $0x2c] sm:$0xf] %vm1917_vm2, %v2197_v45  ;;  %v2217_v30 = vpack.c.bf16 %v1788_v22, %v1788_v22 }
 0x5bc   : > { %v2196_v21 = vpack.c.bf16 %v1767_v61, %v1767_v61  ;;  %v1787_v40 = vmul.f32 %v2784_v29, %v3598_v25 }
 0x5bd   : > { %1949 = vst.msk [vmem:[%s3417_s18 + $0x7c] sm:$0xf] %vm1917_vm2, %v2217_v30 }
 0x5be   : > { %1928 = vst.msk [vmem:[%s3417_s18 + $0x28] sm:$0xf] %vm1917_vm2, %v2196_v21  ;;  %v2216_v10 = vpack.c.bf16 %v1787_v40, %v1787_v40 }
 0x5c0   : > { %1948 = vst.msk [vmem:[%s3417_s18 + $0x78] sm:$0xf] %vm1917_vm2, %v2216_v10 }
 0x5c1 PF: > { %s18_s27 = sadd.s32 1, %s2791_s27  }
 0x5c2   : > { %p15_p4 = scmp.ge.s32.totalorder %s18_s27, 4  }
 0x5c4   :  { %17 = sbr.rel (!%p15_p4) target bundleno = 1 (0x1), region = 85 }

// kernel: block_conv_selfattn.3
= control target key start
LH: loop header
LB: loop body
LE: loop exit
PB: predicated region body
PF: predicated region fallthrough
CT: control target
= control target key end

     0   :  { %s1969_s12 = smov 0   ;;  %s3169_s0 = inlined_call_operand.vmem [shape: f32[2,16,16,16], index: 0, kind: input, shape index: {}]   ;;  %s3170_s1 = inlined_call_operand.vmem [shape: f32[3,3,16], index: 1, kind: input, shape index: {}]   ;;  %s3171_s2 = inlined_call_operand.vmem [shape: f32[1,16], index: 2, kind: input, shape index: {}]   ;;  %s3172_s3 = inlined_call_operand.vmem [shape: bf16[2,16,16,16], index: 3, kind: output, shape index: {}]  }
   0x1 LB: > { %s1692_s13 = sadd.s32 4294967295, %s1946_s12   ;;  %p1696_p0 = scmp.ge.s32.totalorder %s1946_s12, 1  ;;  %s1946_s12 = sphi %s1969_s12, %s13_s12  }
   0x2   : > { %p137_p1 = scmp.lt.s32.totalorder %s1946_s12, 3 }
   0x4   : > { %p138_p2 = pnand %p1696_p0, %p137_p1 }
   0x5   : > { %p1979_p3 = scmp.lt.s32.totalorder (!%p138_p2), %s1692_s13, 1 }
   0x6   : > { %141 = sbr.rel (%p138_p2) target bundleno = 286 (0x11e), region = 32 }
   0xb   : > { %vm171_vm0 = vcmask 130048   ;;  %v1948_v0 = vmov 0.0   ;;  %v344_v1 = vlaneseq  ;;  %s3175_s13 = smov (!%p1979_p3, %s1692_s13), 1  ;;  %v309_v12 = vld [vmem:[%s3170_s1] sm:$0x7]  ;;  %vm1604_vm1 = vcmask 125952  }
   0xc   : > { %172 = vst.msk [vmem:[#allocation2] sm:$0xff] %vm171_vm0, %v1948_v0  ;;  %173 = vst.msk [vmem:[#allocation2 + $0x8] sm:$0xff] %vm171_vm0, %v1948_v0  ;;  %s1768_s15 = sshll.u32 %s3175_s13, 8  ;;  %v310_v20 = vld [vmem:[%s3170_s1 + $0x4] sm:$0x7]  ;;  %s1769_s27 = sshll.u32 %s3175_s13, 7 }
   0xd   : > { %174 = vst.msk [vmem:[#allocation2 + $0x10] sm:$0xff] %vm171_vm0, %v1948_v0  ;;  %175 = vst.msk [vmem:[#allocation2 + $0x18] sm:$0xff] %vm171_vm0, %v1948_v0  ;;  %s2137_s18 = scalar_lea.vmem %s3169_s0, %s1768_s15  ;;  %v345_v2 = vshrl.u32 %v344_v1, 7  ;;  %v311_v26 = vld [vmem:[%s3170_s1 + $0x8] sm:$0x7]  ;;  %s2510_s30 = scalar_lea.vmem %s3172_s3, %s1769_s27 }
   0xe   : > { %176 = vst.msk [vmem:[#allocation2 + $0x20] sm:$0xff] %vm171_vm0, %v1948_v0  ;;  %177 = vst.msk [vmem:[#allocation2 + $0x28] sm:$0xff] %vm171_vm0, %v1948_v0  ;;  %v244_v3 = vld [vmem:[%s2137_s18] sm:$0xff]  ;;  %v245_v4 = vld [vmem:[%s2137_s18 + $0x8] sm:$0xff] }
   0xf   : > { %178 = vst.msk [vmem:[#allocation2 + $0x30] sm:$0xff] %vm171_vm0, %v1948_v0  ;;  %179 = vst.msk [vmem:[#allocation2 + $0x38] sm:$0xff] %vm171_vm0, %v1948_v0  ;;  %v246_v5 = vld [vmem:[%s2137_s18 + $0x10] sm:$0xff]  ;;  %v247_v6 = vld [vmem:[%s2137_s18 + $0x18] sm:$0xff]  ;;  %v346_v16 = vsub.s32 0, %v345_v2  ;;  %v446_v21 = vsub.s32 1, %v345_v2 }
  0x10   : > { %180 = vst.msk [vmem:[#allocation2 + $0x40] sm:$0xff] %vm171_vm0, %v1948_v0  ;;  %181 = vst.msk [vmem:[#allocation2 + $0x48] sm:$0xff] %vm171_vm0, %v1948_v0  ;;  %v248_v7 = vld [vmem:[%s2137_s18 + $0x20] sm:$0xff]  ;;  %v249_v8 = vld [vmem:[%s2137_s18 + $0x28] sm:$0xff]  ;;  %v546_v22 = vsub.s32 2, %v345_v2 }
  0x11   : > { %182 = vst.msk [vmem:[#allocation2 + $0x50] sm:$0xff] %vm171_vm0, %v1948_v0  ;;  %183 = vst.msk [vmem:[#allocation2 + $0x58] sm:$0xff] %vm171_vm0, %v1948_v0  ;;  %v250_v9 = vld [vmem:[%s2137_s18 + $0x30] sm:$0xff]  ;;  %v251_v10 = vld [vmem:[%s2137_s18 + $0x38] sm:$0xff]  ;;  %v2193_v33 = vrot.slane %v309_v12, %v346_v16  ;;  %v2201_v37 = vrot.slane %v309_v12, %v446_v21  ;;  %v2211_v42 = vrot.slane %v310_v20, %v346_v16 }
  0x12   : > { %184 = vst.msk [vmem:[#allocation2 + $0x60] sm:$0xff] %vm171_vm0, %v1948_v0  ;;  %185 = vst.msk [vmem:[#allocation2 + $0x68] sm:$0xff] %vm171_vm0, %v1948_v0  ;;  %v252_v11 = vld [vmem:[%s2137_s18 + $0x40] sm:$0xff]  ;;  %v253_v13 = vld [vmem:[%s2137_s18 + $0x48] sm:$0xff]  ;;  %v2203_v38 = vrot.slane %v309_v12, %v546_v22  ;;  %v2213_v43 = vrot.slane %v310_v20, %v446_v21  ;;  %v2220_v47 = vrot.slane %v310_v20, %v546_v22 }
  0x13   : > { %186 = vst.msk [vmem:[#allocation2 + $0x70] sm:$0xff] %vm171_vm0, %v1948_v0  ;;  %187 = vst.msk [vmem:[#allocation2 + $0x78] sm:$0xff] %vm171_vm0, %v1948_v0  ;;  %v254_v14 = vld [vmem:[%s2137_s18 + $0x50] sm:$0xff]  ;;  %v255_v15 = vld [vmem:[%s2137_s18 + $0x58] sm:$0xff]  ;;  %v2222_v48 = vrot.slane %v311_v26, %v346_v16  ;;  %v2227_v53 = vrot.slane %v311_v26, %v446_v21  ;;  %v2233_v59 = vrot.slane %v311_v26, %v546_v22 }
  0x14   : > { %188 = vst.msk [vmem:[#allocation2 + $0x80] sm:$0xff] %vm171_vm0, %v1948_v0  ;;  %189 = vst.msk [vmem:[#allocation2 + $0x88] sm:$0xff] %vm171_vm0, %v1948_v0  ;;  %v256_v17 = vld [vmem:[%s2137_s18 + $0x60] sm:$0xff]  ;;  %v257_v18 = vld [vmem:[%s2137_s18 + $0x68] sm:$0xff] }
  0x15   : > { %190 = vst.msk [vmem:[#allocation2 + $0x90] sm:$0xff] %vm171_vm0, %v1948_v0  ;;  %191 = vst.msk [vmem:[#allocation2 + $0x98] sm:$0xff] %vm171_vm0, %v1948_v0  ;;  %v258_v19 = vld [vmem:[%s2137_s18 + $0x70] sm:$0xff]  ;;  %v259_v23 = vld [vmem:[%s2137_s18 + $0x78] sm:$0xff] }
  0x16   : > { %192 = vst.msk [vmem:[#allocation2 + $0xa0] sm:$0xff] %vm171_vm0, %v1948_v0  ;;  %193 = vst.msk [vmem:[#allocation2 + $0xa8] sm:$0xff] %vm171_vm0, %v1948_v0  ;;  %v260_v24 = vld [vmem:[%s2137_s18 + $0x80] sm:$0xff]  ;;  %v261_v25 = vld [vmem:[%s2137_s18 + $0x88] sm:$0xff] }
  0x17   : > { %194 = vst.msk [vmem:[#allocation2 + $0xb0] sm:$0xff] %vm171_vm0, %v1948_v0  ;;  %195 = vst.msk [vmem:[#allocation2 + $0xb8] sm:$0xff] %vm171_vm0, %v1948_v0  ;;  %v262_v27 = vld [vmem:[%s2137_s18 + $0x90] sm:$0xff]  ;;  %v263_v28 = vld [vmem:[%s2137_s18 + $0x98] sm:$0xff] }
  0x18   : > { %196 = vst.msk [vmem:[#allocation2 + $0xc0] sm:$0xff] %vm171_vm0, %v1948_v0  ;;  %197 = vst.msk [vmem:[#allocation2 + $0xc8] sm:$0xff] %vm171_vm0, %v1948_v0  ;;  %v264_v29 = vld [vmem:[%s2137_s18 + $0xa0] sm:$0xff]  ;;  %v265_v30 = vld [vmem:[%s2137_s18 + $0xa8] sm:$0xff] }
  0x19   : > { %198 = vst.msk [vmem:[#allocation2 + $0xd0] sm:$0xff] %vm171_vm0, %v1948_v0  ;;  %199 = vst.msk [vmem:[#allocation2 + $0xd8] sm:$0xff] %vm171_vm0, %v1948_v0  ;;  %v266_v31 = vld [vmem:[%s2137_s18 + $0xb0] sm:$0xff]  ;;  %v267_v32 = vld [vmem:[%s2137_s18 + $0xb8] sm:$0xff] }
  0x1a   : > { %200 = vst.msk [vmem:[#allocation2 + $0xe0] sm:$0xff] %vm171_vm0, %v1948_v0  ;;  %201 = vst.msk [vmem:[#allocation2 + $0xe8] sm:$0xff] %vm171_vm0, %v1948_v0  ;;  %v268_v34 = vld [vmem:[%s2137_s18 + $0xc0] sm:$0xff]  ;;  %v269_v35 = vld [vmem:[%s2137_s18 + $0xc8] sm:$0xff] }
  0x1b   : > { %202 = vst.msk [vmem:[#allocation2 + $0xf0] sm:$0xff] %vm171_vm0, %v1948_v0  ;;  %203 = vst.msk [vmem:[#allocation2 + $0xf8] sm:$0xff] %vm171_vm0, %v1948_v0  ;;  %v270_v36 = vld [vmem:[%s2137_s18 + $0xd0] sm:$0xff]  ;;  %v271_v39 = vld [vmem:[%s2137_s18 + $0xd8] sm:$0xff] }
  0x1c   : > { %204 = vst.msk [vmem:[#allocation2 + $0x100] sm:$0xff] %vm171_vm0, %v1948_v0  ;;  %205 = vst.msk [vmem:[#allocation2 + $0x108] sm:$0xff] %vm171_vm0, %v1948_v0  ;;  %v272_v40 = vld [vmem:[%s2137_s18 + $0xe0] sm:$0xff]  ;;  %v273_v41 = vld [vmem:[%s2137_s18 + $0xe8] sm:$0xff] }
  0x1d   : > { %206 = vst.msk [vmem:[#allocation2 + $0x110] sm:$0xff] %vm171_vm0, %v1948_v0  ;;  %207 = vst.msk [vmem:[#allocation2 + $0x118] sm:$0xff] %vm171_vm0, %v1948_v0  ;;  %v274_v44 = vld [vmem:[%s2137_s18 + $0xf0] sm:$0xff]  ;;  %v275_v45 = vld [vmem:[%s2137_s18 + $0xf8] sm:$0xff] }
  0x1e   : > { %208 = vst.msk [vmem:[#allocation2 + $0x120] sm:$0xff] %vm171_vm0, %v1948_v0  ;;  %209 = vst.msk [vmem:[#allocation2 + $0x128] sm:$0xff] %vm171_vm0, %v1948_v0  ;;  %v312_v46 = vld [vmem:[#allocation2 + $0x7] sm:$0xff]  ;;  %v313_v1 = vld [vmem:[#allocation2 + $0xf] sm:$0xff] }
  0x1f   : > { %210 = vst.msk [vmem:[#allocation2 + $0x130] sm:$0xff] %vm171_vm0, %v1948_v0  ;;  %211 = vst.msk [vmem:[#allocation2 + $0x138] sm:$0xff] %vm171_vm0, %v1948_v0  ;;  %v348_v49 = vmul.f32 %v2193_v33, %v312_v46  ;;  %v412_v50 = vld [vmem:[#allocation2 + $0x8] sm:$0xff] }
  0x20   : > { %212 = vst.msk [vmem:[#allocation2 + $0x140] sm:$0xff] %vm171_vm0, %v1948_v0  ;;  %213 = vst.msk [vmem:[#allocation2 + $0x148] sm:$0xff] %vm171_vm0, %v1948_v0  ;;  %v512_v51 = vld [vmem:[#allocation2 + $0x9] sm:$0xff]  ;;  %v448_v54 = vmul.f32 %v2201_v37, %v412_v50 }
  0x21   : > { %214 = vst.msk [vmem:[#allocation2 + $0x150] sm:$0xff] %vm171_vm0, %v1948_v0  ;;  %215 = vst.msk [vmem:[#allocation2 + $0x158] sm:$0xff] %vm171_vm0, %v1948_v0  ;;  %v548_v55 = vmul.f32 %v2203_v38, %v512_v51 }
  0x22   : > { %216 = vst.msk [vmem:[#allocation2 + $0x160] sm:$0xff] %vm171_vm0, %v1948_v0  ;;  %217 = vst.msk [vmem:[#allocation2 + $0x168] sm:$0xff] %vm171_vm0, %v1948_v0 }
  0x23   : > { %218 = vst.msk [vmem:[#allocation2 + $0x170] sm:$0xff] %vm171_vm0, %v1948_v0  ;;  %219 = vst.msk [vmem:[#allocation2 + $0x178] sm:$0xff] %vm171_vm0, %v1948_v0 }
  0x24   : > { %220 = vst.msk [vmem:[#allocation2 + $0x180] sm:$0xff] %vm171_vm0, %v1948_v0  ;;  %221 = vst.msk [vmem:[#allocation2 + $0x188] sm:$0xff] %vm171_vm0, %v1948_v0 }
  0x25   : > { %222 = vst.msk [vmem:[#allocation2 + $0x190] sm:$0xff] %vm171_vm0, %v1948_v0  ;;  %223 = vst.msk [vmem:[#allocation2 + $0x198] sm:$0xff] %vm171_vm0, %v1948_v0 }
  0x26   : > { %224 = vst.msk [vmem:[#allocation2 + $0x1a0] sm:$0xff] %vm171_vm0, %v1948_v0  ;;  %225 = vst.msk [vmem:[#allocation2 + $0x1a8] sm:$0xff] %vm171_vm0, %v1948_v0 }
  0x27   : > { %226 = vst.msk [vmem:[#allocation2 + $0x1b0] sm:$0xff] %vm171_vm0, %v1948_v0  ;;  %227 = vst.msk [vmem:[#allocation2 + $0x1b8] sm:$0xff] %vm171_vm0, %v1948_v0 }
  0x28   : > { %228 = vst.msk [vmem:[#allocation2 + $0x1c0] sm:$0xff] %vm171_vm0, %v1948_v0  ;;  %229 = vst.msk [vmem:[#allocation2 + $0x1c8] sm:$0xff] %vm171_vm0, %v1948_v0 }
  0x29   : > { %230 = vst.msk [vmem:[#allocation2 + $0x1d0] sm:$0xff] %vm171_vm0, %v1948_v0  ;;  %231 = vst.msk [vmem:[#allocation2 + $0x1d8] sm:$0xff] %vm171_vm0, %v1948_v0 }
  0x2a   : > { %232 = vst.msk [vmem:[#allocation2 + $0x1e0] sm:$0xff] %vm171_vm0, %v1948_v0  ;;  %233 = vst.msk [vmem:[#allocation2 + $0x1e8] sm:$0xff] %vm171_vm0, %v1948_v0 }
  0x2b   : > { %234 = vst.msk [vmem:[#allocation2 + $0x1f0] sm:$0xff] %vm171_vm0, %v1948_v0  ;;  %235 = vst.msk [vmem:[#allocation2 + $0x1f8] sm:$0xff] %vm171_vm0, %v1948_v0 }
  0x2c   : > { %236 = vst.msk [vmem:[#allocation2 + $0x200] sm:$0xff] %vm171_vm0, %v1948_v0  ;;  %237 = vst.msk [vmem:[#allocation2 + $0x208] sm:$0xff] %vm171_vm0, %v1948_v0 }
  0x2d   : > { %238 = vst.msk [vmem:[#allocation2 + $0x210] sm:$0xff] %vm171_vm0, %v1948_v0  ;;  %239 = vst.msk [vmem:[#allocation2 + $0x218] sm:$0xff] %vm171_vm0, %v1948_v0 }
  0x2e   : > { %240 = vst.msk [vmem:[#allocation2 + $0x220] sm:$0xff] %vm171_vm0, %v1948_v0  ;;  %241 = vst.msk [vmem:[#allocation2 + $0x228] sm:$0xff] %vm171_vm0, %v1948_v0 }
  0x2f   : > { %242 = vst.msk [vmem:[#allocation2 + $0x230] sm:$0xff] %vm171_vm0, %v1948_v0  ;;  %243 = vst.msk [vmem:[#allocation2 + $0x238] sm:$0xff] %vm171_vm0, %v1948_v0 }
  0x30   : > { %277 = vst.msk [vmem:[#allocation2 + $0x28] sm:$0xff] %vm171_vm0, %v244_v3  ;;  %278 = vst.msk [vmem:[#allocation2 + $0x30] sm:$0xff] %vm171_vm0, %v245_v4  ;;  %v480_v3 = vadd.f32 %v448_v54, %v348_v49 }
  0x31   : > { %279 = vst.msk [vmem:[#allocation2 + $0x48] sm:$0xff] %vm171_vm0, %v246_v5  ;;  %280 = vst.msk [vmem:[#allocation2 + $0x50] sm:$0xff] %vm171_vm0, %v247_v6  ;;  %v349_v6 = vmul.f32 %v2193_v33, %v313_v1 }
  0x32   : > { %281 = vst.msk [vmem:[#allocation2 + $0x68] sm:$0xff] %vm171_vm0, %v248_v7  ;;  %282 = vst.msk [vmem:[#allocation2 + $0x70] sm:$0xff] %vm171_vm0, %v249_v8  ;;  %v413_v7 = vld [vmem:[#allocation2 + $0x10] sm:$0xff] }
  0x33   : > { %283 = vst.msk [vmem:[#allocation2 + $0x88] sm:$0xff] %vm171_vm0, %v250_v9  ;;  %284 = vst.msk [vmem:[#allocation2 + $0x90] sm:$0xff] %vm171_vm0, %v251_v10  ;;  %v513_v8 = vld [vmem:[#allocation2 + $0x11] sm:$0xff] }
  0x34   : > { %285 = vst.msk [vmem:[#allocation2 + $0xa8] sm:$0xff] %vm171_vm0, %v252_v11  ;;  %286 = vst.msk [vmem:[#allocation2 + $0xb0] sm:$0xff] %vm171_vm0, %v253_v13  ;;  %v449_v11 = vmul.f32 %v2201_v37, %v413_v7  ;;  %v549_v12 = vmul.f32 %v2203_v38, %v513_v8 }
  0x35   : > { %287 = vst.msk [vmem:[#allocation2 + $0xc8] sm:$0xff] %vm171_vm0, %v254_v14  ;;  %288 = vst.msk [vmem:[#allocation2 + $0xd0] sm:$0xff] %vm171_vm0, %v255_v15 }
  0x36   : > { %289 = vst.msk [vmem:[#allocation2 + $0xe8] sm:$0xff] %vm171_vm0, %v256_v17  ;;  %290 = vst.msk [vmem:[#allocation2 + $0xf0] sm:$0xff] %vm171_vm0, %v257_v18  ;;  %v580_v17 = vadd.f32 %v548_v55, %v480_v3 }
  0x37   : > { %291 = vst.msk [vmem:[#allocation2 + $0x108] sm:$0xff] %vm171_vm0, %v258_v19  ;;  %292 = vst.msk [vmem:[#allocation2 + $0x110] sm:$0xff] %vm171_vm0, %v259_v23  ;;  %v612_v52 = vld [vmem:[#allocation2 + $0x27] sm:$0xff]  ;;  %v613_v9 = vld [vmem:[#allocation2 + $0x2f] sm:$0xff]  ;;  %v481_v23 = vadd.f32 %v449_v11, %v349_v6 }
  0x38   : > { %293 = vst.msk [vmem:[#allocation2 + $0x128] sm:$0xff] %vm171_vm0, %v260_v24  ;;  %294 = vst.msk [vmem:[#allocation2 + $0x130] sm:$0xff] %vm171_vm0, %v261_v25  ;;  %v712_v56 = vld [vmem:[#allocation2 + $0x28] sm:$0xff]  ;;  %v350_v60 = vmul.f32 %v612_v52, %v2193_v33  ;;  %v648_v61 = vmul.f32 %v2211_v42, %v612_v52  ;;  %v713_v13 = vld [vmem:[#allocation2 + $0x30] sm:$0xff]  ;;  %v649_v19 = vmul.f32 %v2211_v42, %v613_v9 }
  0x39   : > { %295 = vst.msk [vmem:[#allocation2 + $0x148] sm:$0xff] %vm171_vm0, %v262_v27  ;;  %296 = vst.msk [vmem:[#allocation2 + $0x150] sm:$0xff] %vm171_vm0, %v263_v28  ;;  %v812_v57 = vld [vmem:[#allocation2 + $0x29] sm:$0xff]  ;;  %v748_v62 = vmul.f32 %v2213_v43, %v712_v56  ;;  %v450_v2 = vmul.f32 %v712_v56, %v2201_v37  ;;  %v813_v14 = vld [vmem:[#allocation2 + $0x31] sm:$0xff]  ;;  %v749_v20 = vmul.f32 %v2213_v43, %v713_v13 }
  0x3a   : > { %297 = vst.msk [vmem:[#allocation2 + $0x168] sm:$0xff] %vm171_vm0, %v264_v29  ;;  %298 = vst.msk [vmem:[#allocation2 + $0x170] sm:$0xff] %vm171_vm0, %v265_v30  ;;  %v2231_v58 = vld [vmem:[#allocation2 + $0x47] sm:$0xff]  ;;  %v848_v4 = vmul.f32 %v2220_v47, %v812_v57  ;;  %v2251_v15 = vld [vmem:[#allocation2 + $0x4f] sm:$0xff]  ;;  %v849_v24 = vmul.f32 %v2220_v47, %v813_v14  ;;  %v550_v26 = vmul.f32 %v812_v57, %v2203_v38 }
  0x3b   : > { %299 = vst.msk [vmem:[#allocation2 + $0x188] sm:$0xff] %vm171_vm0, %v266_v31  ;;  %300 = vst.msk [vmem:[#allocation2 + $0x190] sm:$0xff] %vm171_vm0, %v267_v32  ;;  %v2238_v63 = vld [vmem:[#allocation2 + $0x48] sm:$0xff]  ;;  %v949_v5 = vmul.f32 %v2222_v48, %v2231_v58  ;;  %v482_v16 = vadd.f32 %v450_v2, %v350_v60  ;;  %v2257_v21 = vld [vmem:[#allocation2 + $0x50] sm:$0xff]  ;;  %v950_v25 = vmul.f32 %v2222_v48, %v2251_v15 }
  0x3c   : > { %301 = vst.msk [vmem:[#allocation2 + $0x1a8] sm:$0xff] %vm171_vm0, %v268_v34  ;;  %302 = vst.msk [vmem:[#allocation2 + $0x1b0] sm:$0xff] %vm171_vm0, %v269_v35  ;;  %v2240_v0 = vld [vmem:[#allocation2 + $0x49] sm:$0xff]  ;;  %v1049_v10 = vmul.f32 %v2227_v53, %v2238_v63  ;;  %v2259_v22 = vld [vmem:[#allocation2 + $0x51] sm:$0xff]  ;;  %v680_v28 = vadd.f32 %v648_v61, %v580_v17  ;;  %v1050_v29 = vmul.f32 %v2227_v53, %v2257_v21 }
  0x3d   : > { %303 = vst.msk [vmem:[#allocation2 + $0x1c8] sm:$0xff] %vm171_vm0, %v270_v36  ;;  %304 = vst.msk [vmem:[#allocation2 + $0x1d0] sm:$0xff] %vm171_vm0, %v271_v39  ;;  %v1149_v18 = vmul.f32 %v2233_v59, %v2240_v0  ;;  %v2265_v27 = vld [vmem:[#allocation2 + $0x67] sm:$0xff]  ;;  %v1150_v30 = vmul.f32 %v2233_v59, %v2259_v22  ;;  %v650_v31 = vmul.f32 %v2231_v58, %v2211_v42  ;;  %v2289_v54 = vld [vmem:[#allocation2 + $0x6f] sm:$0xff] }
  0x3e   : > { %305 = vst.msk [vmem:[#allocation2 + $0x1e8] sm:$0xff] %vm171_vm0, %v272_v40  ;;  %306 = vst.msk [vmem:[#allocation2 + $0x1f0] sm:$0xff] %vm171_vm0, %v273_v41  ;;  %v2273_v32 = vld [vmem:[#allocation2 + $0x68] sm:$0xff]  ;;  %v581_v35 = vadd.f32 %v549_v12, %v481_v23  ;;  %v582_v36 = vadd.f32 %v550_v26, %v482_v16  ;;  %v750_v39 = vmul.f32 %v2238_v63, %v2213_v43  ;;  %v2294_v61 = vld [vmem:[#allocation2 + $0x70] sm:$0xff] }
  0x3f   : > { %307 = vst.msk [vmem:[#allocation2 + $0x208] sm:$0xff] %vm171_vm0, %v274_v44  ;;  %308 = vst.msk [vmem:[#allocation2 + $0x210] sm:$0xff] %vm171_vm0, %v275_v45  ;;  %v2275_v34 = vld [vmem:[#allocation2 + $0x69] sm:$0xff]  ;;  %v850_v40 = vmul.f32 %v2240_v0, %v2220_v47  ;;  %v780_v41 = vadd.f32 %v748_v62, %v680_v28  ;;  %v951_v44 = vmul.f32 %v2222_v48, %v2265_v27  ;;  %v2300_v6 = vld [vmem:[#allocation2 + $0x71] sm:$0xff] }
  0x40   : > { %v351_v45 = vmul.f32 %v613_v9, %v2193_v33  ;;  %v451_v46 = vmul.f32 %v713_v13, %v2201_v37  ;;  %v681_v49 = vadd.f32 %v649_v19, %v581_v35  ;;  %v682_v50 = vadd.f32 %v650_v31, %v582_v36  ;;  %v2327_v35 = vld [vmem:[#allocation2 + $0x88] sm:$0xff] }
  0x41   : > { %v1051_v51 = vmul.f32 %v2227_v53, %v2273_v32  ;;  %v1151_v52 = vmul.f32 %v2233_v59, %v2275_v34  ;;  %v880_v55 = vadd.f32 %v848_v4, %v780_v41  ;;  %v551_v57 = vmul.f32 %v813_v14, %v2203_v38 }
  0x42   : > { %v483_v56 = vadd.f32 %v451_v46, %v351_v45  ;;  %v651_v60 = vmul.f32 %v2251_v15, %v2211_v42  ;;  %v781_v62 = vadd.f32 %v749_v20, %v681_v49  ;;  %v782_v1 = vadd.f32 %v750_v39, %v682_v50  ;;  %v2314_v20 = vld [vmem:[#allocation2 + $0x87] sm:$0xff] }
  0x43   : > { %v751_v2 = vmul.f32 %v2257_v21, %v2213_v43  ;;  %v851_v3 = vmul.f32 %v2259_v22, %v2220_v47  ;;  %v981_v7 = vadd.f32 %v949_v5, %v880_v55  ;;  %v952_v8 = vmul.f32 %v2222_v48, %v2289_v54 }
  0x44   : > { %v583_v4 = vadd.f32 %v551_v57, %v483_v56  ;;  %v352_v9 = vmul.f32 %v2231_v58, %v2193_v33  ;;  %v881_v11 = vadd.f32 %v849_v24, %v781_v62  ;;  %v882_v12 = vadd.f32 %v850_v40, %v782_v1  ;;  %v2319_v58 = vld [vmem:[%s3171_s2] ss:$0 sm:$0xff] }
  0x45   : > { %v1052_v13 = vmul.f32 %v2227_v53, %v2294_v61  ;;  %v452_v14 = vmul.f32 %v2238_v63, %v2201_v37  ;;  %v1081_v16 = vadd.f32 %v1049_v10, %v981_v7  ;;  %v1152_v5 = vmul.f32 %v2233_v59, %v2300_v6 }
  0x46   : > { %v683_v17 = vadd.f32 %v651_v60, %v583_v4  ;;  %v552_v19 = vmul.f32 %v2240_v0, %v2203_v38  ;;  %v982_v23 = vadd.f32 %v950_v25, %v881_v11  ;;  %v983_v24 = vadd.f32 %v951_v44, %v882_v12 }
  0x47   : > { %v484_v26 = vadd.f32 %v452_v14, %v352_v9  ;;  %v652_v63 = vmul.f32 %v2265_v27, %v2211_v42  ;;  %v1181_v10 = vadd.f32 %v1149_v18, %v1081_v16  ;;  %v752_v31 = vmul.f32 %v2273_v32, %v2213_v43  ;;  %v2334_v18 = vld [vmem:[#allocation2 + $0x89] sm:$0xff]  ;;  %v2367_v16 = vld [vmem:[#allocation2 + $0x91] sm:$0xff] }
  0x48   : > { %v783_v28 = vadd.f32 %v751_v2, %v683_v17  ;;  %v852_v0 = vmul.f32 %v2275_v34, %v2220_v47  ;;  %v1082_v36 = vadd.f32 %v1050_v29, %v982_v23  ;;  %v1083_v39 = vadd.f32 %v1051_v51, %v983_v24  ;;  %v2361_v9 = vld [vmem:[#allocation2 + $0x90] sm:$0xff] }
  0x49   : > { %v584_v40 = vadd.f32 %v552_v19, %v484_v26  ;;  %v953_v25 = vmul.f32 %v2222_v48, %v2314_v20  ;;  %v2332_v41 = vadd.f32 %v2319_v58, %v1181_v10  ;;  %v353_v45 = vmul.f32 %v2251_v15, %v2193_v33 }
  0x4a   : > { %v883_v44 = vadd.f32 %v851_v3, %v783_v28  ;;  %v453_v46 = vmul.f32 %v2257_v21, %v2201_v37  ;;  %v1182_v49 = vadd.f32 %v1150_v30, %v1082_v36  ;;  %v1183_v50 = vadd.f32 %v1151_v52, %v1083_v39  ;;  %v2353_v52 = vld [vmem:[#allocation2 + $0x8f] sm:$0xff] }
  0x4b   : > { %v684_v29 = vadd.f32 %v652_v63, %v584_v40  ;;  %v1053_v51 = vmul.f32 %v2227_v53, %v2327_v35  ;;  %v1702_v55 = vmul.f32 -1.442695, %v2332_v41  ;;  %v553_v60 = vmul.f32 %v2259_v22, %v2203_v38  ;;  %v2378_v63 = vld [vmem:[#allocation2 + $0xa7] sm:$0xff] }
  0x4c   : > { %v984_v56 = vadd.f32 %v952_v8, %v883_v44  ;;  %v485_v57 = vadd.f32 %v453_v46, %v353_v45  ;;  %v2346_v62 = vadd.f32 %v2319_v58, %v1182_v49  ;;  %v2349_v15 = vadd.f32 %v2319_v58, %v1183_v50  ;;  %v2389_v40 = vld [vmem:[#allocation2 + $0xa8] sm:$0xff] }
  0x4d   : > { %v784_v21 = vadd.f32 %v752_v31, %v684_v29  ;;  %v1153_v30 = vmul.f32 %v2233_v59, %v2334_v18  ;;  %1811 = vpow2.f32 %v1702_v55  ;;  %v653_v3 = vmul.f32 %v2289_v54, %v2211_v42 }
  0x4e   : > { %v1084_v1 = vadd.f32 %v1052_v13, %v984_v56  ;;  %v585_v2 = vadd.f32 %v553_v60, %v485_v57  ;;  %v1703_v22 = vmul.f32 -1.442695, %v2346_v62  ;;  %v1704_v7 = vmul.f32 -1.442695, %v2349_v15  ;;  %v2408_v60 = vld [vmem:[#allocation2 + $0xaf] sm:$0xff] }
  0x4f   : > { %v884_v4 = vadd.f32 %v852_v0, %v784_v21  ;;  %v753_v8 = vmul.f32 %v2294_v61, %v2213_v43  ;;  %v853_v14 = vmul.f32 %v2300_v6, %v2220_v47  ;;  %v954_v13 = vmul.f32 %v2222_v48, %v2353_v52 }
  0x50   : > { %v1184_v11 = vadd.f32 %v1152_v5, %v1084_v1  ;;  %v685_v12 = vadd.f32 %v653_v3, %v585_v2  ;;  %1813 = vpow2.f32 %v1703_v22  ;;  %v354_v19 = vmul.f32 %v2265_v27, %v2193_v33  ;;  %v2414_v1 = vld [vmem:[#allocation2 + $0xb0] sm:$0xff] }
  0x51   : > { %v985_v17 = vadd.f32 %v953_v25, %v884_v4  ;;  %v454_v23 = vmul.f32 %v2273_v32, %v2201_v37  ;;  %1815 = vpow2.f32 %v1704_v7  ;;  %v1054_v26 = vmul.f32 %v2227_v53, %v2361_v9  ;;  %v2391_v25 = vld [vmem:[#allocation2 + $0xa9] sm:$0xff]  ;;  %v2421_v4 = vld [vmem:[#allocation2 + $0xb1] sm:$0xff] }
  0x52   : > { %v2374_v5 = vadd.f32 %v2319_v58, %v1184_v11  ;;  %v785_v24 = vadd.f32 %v753_v8, %v685_v12  ;;  %v1154_v28 = vmul.f32 %v2233_v59, %v2367_v16  ;;  %v554_v27 = vmul.f32 %v2275_v34, %v2203_v38 }
  0x53   : > { %v1085_v10 = vadd.f32 %v1053_v51, %v985_v17  ;;  %v486_v31 = vadd.f32 %v454_v23, %v354_v19  ;;  %v654_v36 = vmul.f32 %v2314_v20, %v2211_v42  ;;  %v754_v39 = vmul.f32 %v2327_v35, %v2213_v43 }
  0x54   : > { %v1705_v32 = vmul.f32 -1.442695, %v2374_v5  ;;  %v885_v0 = vadd.f32 %v853_v14, %v785_v24  ;;  %v854_v46 = vmul.f32 %v2334_v18, %v2220_v47  ;;  %v955_v34 = vmul.f32 %v2222_v48, %v2378_v63 }
  0x55   : > { %v1185_v44 = vadd.f32 %v1153_v30, %v1085_v10  ;;  %v586_v45 = vadd.f32 %v554_v27, %v486_v31  ;;  %v355_v50 = vmul.f32 %v2289_v54, %v2193_v33  ;;  %v455_v29 = vmul.f32 %v2294_v61, %v2201_v37 }
  0x56   : > { %1817 = vpow2.f32 %v1705_v32  ;;  %v986_v49 = vadd.f32 %v954_v13, %v885_v0  ;;  %v1055_v56 = vmul.f32 %v2227_v53, %v2389_v40  ;;  %v1155_v57 = vmul.f32 %v2233_v59, %v2391_v25  ;;  %v2440_v32 = vld [vmem:[#allocation2 + $0xc7] sm:$0xff] }
  0x57   : > { %v2402_v51 = vadd.f32 %v2319_v58, %v1185_v44  ;;  %v686_v55 = vadd.f32 %v654_v36, %v586_v45  ;;  %v487_v30 = vadd.f32 %v455_v29, %v355_v50  ;;  %v555_v54 = vmul.f32 %v2300_v6, %v2203_v38 }
  0x58   : > { %v1086_v21 = vadd.f32 %v1054_v26, %v986_v49  ;;  %v655_v61 = vmul.f32 %v2353_v52, %v2211_v42  ;;  %v755_v22 = vmul.f32 %v2361_v9, %v2213_v43  ;;  %v855_v7 = vmul.f32 %v2367_v16, %v2220_v47  ;;  %v2447_v49 = vld [vmem:[#allocation2 + $0xc8] sm:$0xff] }
  0x59   : > { %v1706_v2 = vmul.f32 -1.442695, %v2402_v51  ;;  %v786_v3 = vadd.f32 %v754_v39, %v686_v55  ;;  %v587_v11 = vadd.f32 %v555_v54, %v487_v30  ;;  %v956_v6 = vmul.f32 %v2222_v48, %v2408_v60 }
  0x5a   : > { %v1186_v8 = vadd.f32 %v1154_v28, %v1086_v21  ;;  %v356_v12 = vmul.f32 %v2314_v20, %v2193_v33  ;;  %v1812_v14 = vpop.eup %1811  ;;  %v1056_v17 = vmul.f32 %v2227_v53, %v2414_v1  ;;  %v456_v19 = vmul.f32 %v2327_v35, %v2201_v37  ;;  %v2451_v21 = vld [vmem:[#allocation2 + $0xc9] sm:$0xff] }
  0x5b   : > { %1819 = vpow2.f32 %v1706_v2  ;;  %v886_v13 = vadd.f32 %v854_v46, %v786_v3  ;;  %v1348_v23 = vadd.f32 1.0, %v1812_v14  ;;  %v687_v26 = vadd.f32 %v655_v61, %v587_v11 }
  0x5c   : > { %v2432_v24 = vadd.f32 %v2319_v58, %v1186_v8  ;;  %v1156_v10 = vmul.f32 %v2233_v59, %v2421_v4  ;;  %v488_v31 = vadd.f32 %v456_v19, %v356_v12  ;;  %v556_v20 = vmul.f32 %v2334_v18, %v2203_v38 }
  0x5d   : > { %v987_v28 = vadd.f32 %v955_v34, %v886_v13  ;;  %v656_v27 = vmul.f32 %v2378_v63, %v2211_v42  ;;  %v1814_v0 = vpop.eup %1813  ;;  %1821 = vrcp.f32 %v1348_v23  ;;  %v787_v36 = vadd.f32 %v755_v22, %v687_v26 }
  0x5e   : > { %v1707_v35 = vmul.f32 -1.442695, %v2432_v24  ;;  %v756_v39 = vmul.f32 %v2389_v40, %v2213_v43  ;;  %v1816_v44 = vpop.eup %1815  ;;  %v1349_v45 = vadd.f32 1.0, %v1814_v0  ;;  %v588_v34 = vadd.f32 %v556_v20, %v488_v31 }
  0x5f   : > { %v1087_v46 = vadd.f32 %v1055_v56, %v987_v28  ;;  %v856_v18 = vmul.f32 %v2391_v25, %v2220_v47  ;;  %v1350_v50 = vadd.f32 1.0, %v1816_v44  ;;  %v887_v29 = vadd.f32 %v855_v7, %v787_v36  ;;  %v2475_v28 = vld [vmem:[#allocation2 + $0xd0] sm:$0xff] }
  0x60   : > { %1823 = vpow2.f32 %v1707_v35  ;;  %v957_v55 = vmul.f32 %v2222_v48, %v2440_v32  ;;  %v688_v54 = vadd.f32 %v656_v27, %v588_v34  ;;  %v357_v56 = vmul.f32 %v2353_v52, %v2193_v33  ;;  %v2466_v52 = vld [vmem:[#allocation2 + $0xcf] sm:$0xff] }
  0x61   : > { %1825 = vrcp.f32 %v1349_v45  ;;  %v1187_v30 = vadd.f32 %v1155_v57, %v1087_v46  ;;  %v988_v61 = vadd.f32 %v956_v6, %v887_v29  ;;  %v1057_v2 = vmul.f32 %v2227_v53, %v2447_v49 }
  0x62   : > { %1827 = vrcp.f32 %v1350_v50  ;;  %v457_v3 = vmul.f32 %v2361_v9, %v2201_v37  ;;  %v788_v8 = vadd.f32 %v756_v39, %v688_v54  ;;  %v1157_v57 = vmul.f32 %v2233_v59, %v2451_v21  ;;  %v2494_v50 = vld [vmem:[#allocation2 + $0xe7] sm:$0xff] }
  0x63   : > { %v1818_v22 = vpop.eup %1817  ;;  %v2460_v7 = vadd.f32 %v2319_v58, %v1187_v30  ;;  %v557_v11 = vmul.f32 %v2367_v16, %v2203_v38  ;;  %v1088_v12 = vadd.f32 %v1056_v17, %v988_v61  ;;  %v657_v13 = vmul.f32 %v2408_v60, %v2211_v42  ;;  %v2477_v16 = vld [vmem:[#allocation2 + $0xd1] sm:$0xff] }
  0x64   : > { %v1351_v6 = vadd.f32 1.0, %v1818_v22  ;;  %v489_v14 = vadd.f32 %v457_v3, %v357_v56  ;;  %v888_v19 = vadd.f32 %v856_v18, %v788_v8  ;;  %v757_v23 = vmul.f32 %v2414_v1, %v2213_v43 }
  0x65   : > { %v1708_v9 = vmul.f32 -1.442695, %v2460_v7  ;;  %v857_v26 = vmul.f32 %v2421_v4, %v2220_v47  ;;  %v1188_v17 = vadd.f32 %v1156_v10, %v1088_v12  ;;  %v958_v20 = vmul.f32 %v2222_v48, %v2466_v52 }
  0x66   : > { %1829 = vrcp.f32 %v1351_v6  ;;  %v589_v31 = vadd.f32 %v557_v11, %v489_v14  ;;  %v989_v27 = vadd.f32 %v957_v55, %v888_v19  ;;  %v358_v0 = vmul.f32 %v2378_v63, %v2193_v33 }
  0x67   : > { %1831 = vpow2.f32 %v1708_v9  ;;  %v458_v35 = vmul.f32 %v2389_v40, %v2201_v37  ;;  %v2486_v39 = vadd.f32 %v2319_v58, %v1188_v17  ;;  %v1058_v10 = vmul.f32 %v2227_v53, %v2475_v28 }
  0x68   : > { %v1820_v36 = vpop.eup %1819  ;;  %v689_v44 = vadd.f32 %v657_v13, %v589_v31  ;;  %v1158_v45 = vmul.f32 %v2233_v59, %v2477_v16  ;;  %v1089_v34 = vadd.f32 %v1057_v2, %v989_v27  ;;  %v558_v63 = vmul.f32 %v2391_v25, %v2203_v38  ;;  %v2523_v27 = vld [vmem:[#allocation2 + $0xe8] sm:$0xff] }
  0x69   : > { %v1352_v46 = vadd.f32 1.0, %v1820_v36  ;;  %v490_v18 = vadd.f32 %v458_v35, %v358_v0  ;;  %v1709_v40 = vmul.f32 -1.442695, %v2486_v39  ;;  %v658_v55 = vmul.f32 %v2440_v32, %v2211_v42 }
  0x6a   : > { %v789_v29 = vadd.f32 %v757_v23, %v689_v44  ;;  %v758_v30 = vmul.f32 %v2447_v49, %v2213_v43  ;;  %v1822_v54 = vpop.eup %1821  ;;  %v1189_v56 = vadd.f32 %v1157_v57, %v1089_v34  ;;  %v858_v2 = vmul.f32 %v2451_v21, %v2220_v47 }
  0x6b   : > { %1833 = vrcp.f32 %v1352_v46  ;;  %v590_v61 = vadd.f32 %v558_v63, %v490_v18  ;;  %v1444_v25 = vmul.f32 %v1822_v54, %v2332_v41  ;;  %v959_v22 = vmul.f32 %v2222_v48, %v2494_v50 }
  0x6c   : > { %1835 = vpow2.f32 %v1709_v40  ;;  %v889_v3 = vadd.f32 %v857_v26, %v789_v29  ;;  %v2513_v57 = vadd.f32 %v2319_v58, %v1189_v56  ;;  %v359_v6 = vmul.f32 %v2408_v60, %v2193_v33  ;;  %v2540_v29 = vld [vmem:[#allocation2 + $0xef] sm:$0xff] }
  0x6d   : > { %v1824_v8 = vpop.eup %1823  ;;  %v690_v11 = vadd.f32 %v658_v55, %v590_v61  ;;  %v459_v41 = vmul.f32 %v2414_v1, %v2201_v37  ;;  %v1770_v14 = vpack.c.bf16 %v1444_v25, %v1444_v25  ;;  %v559_v19 = vmul.f32 %v2421_v4, %v2203_v38 }
  0x6e   : > { %v1826_v12 = vpop.eup %1825  ;;  %v1353_v13 = vadd.f32 1.0, %v1824_v8  ;;  %v990_v9 = vadd.f32 %v958_v20, %v889_v3  ;;  %v1710_v17 = vmul.f32 -1.442695, %v2513_v57  ;;  %v2528_v20 = vld [vmem:[#allocation2 + $0xe9] sm:$0xff]  ;;  %v659_v4 = vmul.f32 %v2466_v52, %v2211_v42 }
  0x6f   : > { %v1828_v23 = vpop.eup %1827  ;;  %v1445_v26 = vmul.f32 %v1826_v12, %v2346_v62  ;;  %v790_v31 = vadd.f32 %v758_v30, %v690_v11  ;;  %v491_v60 = vadd.f32 %v459_v41, %v359_v6  ;;  %1605 = vst.msk [vmem:[%s2510_s30] sm:$0xf] %vm1604_vm1, %v1770_v14  ;;  %v1059_v34 = vmul.f32 %v2227_v53, %v2523_v27  ;;  %v2552_v3 = vld [vmem:[#allocation2 + $0xf0] sm:$0xff] }
  0x70   : > { %v1446_v1 = vmul.f32 %v1828_v23, %v2349_v15  ;;  %1837 = vrcp.f32 %v1353_v13  ;;  %v1090_v0 = vadd.f32 %v1058_v10, %v990_v9  ;;  %v1159_v10 = vmul.f32 %v2233_v59, %v2528_v20  ;;  %v2561_v12 = vld [vmem:[#allocation2 + $0xf1] sm:$0xff] }
  0x71   : > { %v1771_v62 = vpack.c.bf16 %v1445_v26, %v1445_v26  ;;  %1839 = vpow2.f32 %v1710_v17  ;;  %v890_v35 = vadd.f32 %v858_v2, %v790_v31  ;;  %v591_v36 = vadd.f32 %v559_v19, %v491_v60  ;;  %v2573_v31 = vld [vmem:[#allocation2 + $0x107] sm:$0xff] }
  0x72   : > { %v1772_v44 = vpack.c.bf16 %v1446_v1, %v1446_v1  ;;  %v1190_v46 = vadd.f32 %v1158_v45, %v1090_v0  ;;  %v759_v40 = vmul.f32 %v2475_v28, %v2213_v43  ;;  %v859_v54 = vmul.f32 %v2477_v16, %v2220_v47 }
  0x73   : > { %v1830_v18 = vpop.eup %1829  ;;  %1606 = vst.msk [vmem:[%s2510_s30 + $0x4] sm:$0xf] %vm1604_vm1, %v1771_v62  ;;  %v991_v15 = vadd.f32 %v959_v22, %v890_v35  ;;  %v691_v63 = vadd.f32 %v659_v4, %v591_v36  ;;  %v360_v56 = vmul.f32 %v2440_v32, %v2193_v33  ;;  %v460_v22 = vmul.f32 %v2447_v49, %v2201_v37  ;;  %v2579_v4 = vld [vmem:[#allocation2 + $0x108] sm:$0xff] }
  0x74   : > { %v1832_v55 = vpop.eup %1831  ;;  %1607 = vst.msk [vmem:[%s2510_s30 + $0x8] sm:$0xf] %vm1604_vm1, %v1772_v44  ;;  %v1447_v45 = vmul.f32 %v1830_v18, %v2374_v5  ;;  %v2546_v30 = vadd.f32 %v2319_v58, %v1190_v46  ;;  %v960_v11 = vmul.f32 %v2222_v48, %v2540_v29  ;;  %v560_v6 = vmul.f32 %v2451_v21, %v2203_v38  ;;  %v2584_v46 = vld [vmem:[#allocation2 + $0x109] sm:$0xff] }
  0x75   : > { %v1354_v61 = vadd.f32 1.0, %v1832_v55  ;;  %v1091_v2 = vadd.f32 %v1059_v34, %v991_v15  ;;  %v791_v25 = vadd.f32 %v759_v40, %v691_v63  ;;  %v492_v14 = vadd.f32 %v460_v22, %v360_v56 }
  0x76   : > { %v1773_v8 = vpack.c.bf16 %v1447_v45, %v1447_v45  ;;  %v1711_v5 = vmul.f32 -1.442695, %v2546_v30  ;;  %v1060_v49 = vmul.f32 %v2227_v53, %v2552_v3  ;;  %v660_v9 = vmul.f32 %v2494_v50, %v2211_v42 }
  0x77   : > { %1841 = vrcp.f32 %v1354_v61  ;;  %v1191_v32 = vadd.f32 %v1159_v10, %v1091_v2  ;;  %v891_v41 = vadd.f32 %v859_v54, %v791_v25  ;;  %v592_v17 = vadd.f32 %v560_v6, %v492_v14  ;;  %v2615_v14 = vld [vmem:[#allocation2 + $0x111] sm:$0xff] }
  0x78   : > { %v1834_v13 = vpop.eup %1833  ;;  %1608 = vst.msk [vmem:[%s2510_s30 + $0xc] sm:$0xf] %vm1604_vm1, %v1773_v8  ;;  %1843 = vpow2.f32 %v1711_v5  ;;  %v1160_v1 = vmul.f32 %v2233_v59, %v2561_v12  ;;  %v760_v0 = vmul.f32 %v2523_v27, %v2213_v43  ;;  %v860_v34 = vmul.f32 %v2528_v20, %v2220_v47  ;;  %v2606_v8 = vld [vmem:[#allocation2 + $0x10f] sm:$0xff] }
  0x79   : > { %v1836_v19 = vpop.eup %1835  ;;  %v1448_v23 = vmul.f32 %v1834_v13, %v2402_v51  ;;  %v2571_v21 = vadd.f32 %v2319_v58, %v1191_v32  ;;  %v992_v26 = vadd.f32 %v960_v11, %v891_v41  ;;  %v361_v51 = vmul.f32 %v2466_v52, %v2193_v33  ;;  %v2608_v5 = vld [vmem:[#allocation2 + $0x110] sm:$0xff] }
  0x7a   : > { %v1355_v60 = vadd.f32 1.0, %v1836_v19  ;;  %v692_v44 = vadd.f32 %v660_v9, %v592_v17  ;;  %v961_v18 = vmul.f32 %v2222_v48, %v2573_v31  ;;  %v461_v15 = vmul.f32 %v2475_v28, %v2201_v37 }
  0x7b   : > { %v1774_v62 = vpack.c.bf16 %v1448_v23, %v1448_v23  ;;  %v1712_v35 = vmul.f32 -1.442695, %v2571_v21  ;;  %v1092_v36 = vadd.f32 %v1060_v49, %v992_v26  ;;  %v1061_v40 = vmul.f32 %v2227_v53, %v2579_v4 }
  0x7c   : > { %1845 = vrcp.f32 %v1355_v60  ;;  %v792_v63 = vadd.f32 %v760_v0, %v692_v44  ;;  %v1161_v54 = vmul.f32 %v2233_v59, %v2584_v46  ;;  %v493_v56 = vadd.f32 %v461_v15, %v361_v51 }
  0x7d   : > { %v1838_v10 = vpop.eup %1837  ;;  %1609 = vst.msk [vmem:[%s2510_s30 + $0x10] sm:$0xf] %vm1604_vm1, %v1774_v62  ;;  %1847 = vpow2.f32 %v1712_v35  ;;  %v1192_v52 = vadd.f32 %v1160_v1, %v1092_v36  ;;  %v561_v61 = vmul.f32 %v2477_v16, %v2203_v38  ;;  %v661_v22 = vmul.f32 %v2540_v29, %v2211_v42  ;;  %v2635_v62 = vld [vmem:[#allocation2 + $0x127] sm:$0xff] }
  0x7e   : > { %v1840_v55 = vpop.eup %1839  ;;  %v1449_v45 = vmul.f32 %v1838_v10, %v2432_v24  ;;  %v892_v25 = vadd.f32 %v860_v34, %v792_v63  ;;  %v761_v6 = vmul.f32 %v2552_v3, %v2213_v43  ;;  %v362_v16 = vmul.f32 %v2494_v50, %v2193_v33  ;;  %v2644_v63 = vld [vmem:[#allocation2 + $0x129] sm:$0xff] }
  0x7f   : > { %v1356_v28 = vadd.f32 1.0, %v1840_v55  ;;  %v2602_v2 = vadd.f32 %v2319_v58, %v1192_v52  ;;  %v593_v11 = vadd.f32 %v561_v61, %v493_v56  ;;  %v462_v13 = vmul.f32 %v2523_v27, %v2201_v37  ;;  %v2642_v52 = vld [vmem:[#allocation2 + $0x128] sm:$0xff] }
  0x80   : > { %v1775_v24 = vpack.c.bf16 %v1449_v45, %v1449_v45  ;;  %v993_v41 = vadd.f32 %v961_v18, %v892_v25  ;;  %v861_v9 = vmul.f32 %v2561_v12, %v2220_v47  ;;  %v962_v19 = vmul.f32 %v2222_v48, %v2606_v8 }
  0x81   : > { %1849 = vrcp.f32 %v1356_v28  ;;  %v1713_v32 = vmul.f32 -1.442695, %v2602_v2  ;;  %v693_v49 = vadd.f32 %v661_v22, %v593_v11  ;;  %v1062_v50 = vmul.f32 %v2227_v53, %v2608_v5 }
  0x82   : > { %1610 = vst.msk [vmem:[%s2510_s30 + $0x14] sm:$0xf] %vm1604_vm1, %v1775_v24  ;;  %v1093_v23 = vadd.f32 %v1061_v40, %v993_v41  ;;  %v494_v26 = vadd.f32 %v462_v13, %v362_v16  ;;  %v562_v17 = vmul.f32 %v2528_v20, %v2203_v38  ;;  %v1162_v1 = vmul.f32 %v2233_v59, %v2615_v14 }
  0x83   : > { %1851 = vpow2.f32 %v1713_v32  ;;  %v793_v27 = vadd.f32 %v761_v6, %v693_v49  ;;  %v662_v0 = vmul.f32 %v2573_v31, %v2211_v42  ;;  %v762_v51 = vmul.f32 %v2579_v4, %v2213_v43 }
  0x84   : > { %v1842_v60 = vpop.eup %1841  ;;  %v1193_v44 = vadd.f32 %v1161_v54, %v1093_v23  ;;  %v594_v34 = vadd.f32 %v562_v17, %v494_v26  ;;  %v363_v20 = vmul.f32 %v2540_v29, %v2193_v33  ;;  %v862_v10 = vmul.f32 %v2584_v46, %v2220_v47 }
  0x85   : > { %v1844_v35 = vpop.eup %1843  ;;  %v1450_v36 = vmul.f32 %v1842_v60, %v2460_v7  ;;  %v893_v15 = vadd.f32 %v861_v9, %v793_v27  ;;  %v463_v40 = vmul.f32 %v2552_v3, %v2201_v37  ;;  %v963_v29 = vmul.f32 %v2222_v48, %v2635_v62  ;;  %v2667_v9 = vld [vmem:[#allocation2 + $0x12f] sm:$0xff] }
  0x86   : > { %v1357_v18 = vadd.f32 1.0, %v1844_v35  ;;  %v2649_v7 = vadd.f32 %v2319_v58, %v1193_v44  ;;  %v694_v45 = vadd.f32 %v662_v0, %v594_v34  ;;  %v563_v61 = vmul.f32 %v2561_v12, %v2203_v38  ;;  %v2675_v27 = vld [vmem:[#allocation2 + $0x131] sm:$0xff] }
  0x87   : > { %v1776_v55 = vpack.c.bf16 %v1450_v36, %v1450_v36  ;;  %v994_v54 = vadd.f32 %v962_v19, %v893_v15  ;;  %v495_v56 = vadd.f32 %v463_v40, %v363_v20  ;;  %v1063_v22 = vmul.f32 %v2227_v53, %v2642_v52  ;;  %v2669_v19 = vld [vmem:[#allocation2 + $0x130] sm:$0xff] }
  0x88   : > { %1853 = vrcp.f32 %v1357_v18  ;;  %v1714_v25 = vmul.f32 -1.442695, %v2649_v7  ;;  %v794_v3 = vadd.f32 %v762_v51, %v694_v45  ;;  %v1163_v24 = vmul.f32 %v2233_v59, %v2644_v63 }
  0x89   : > { %v1846_v28 = vpop.eup %1845  ;;  %1611 = vst.msk [vmem:[%s2510_s30 + $0x18] sm:$0xf] %vm1604_vm1, %v1776_v55  ;;  %v1094_v16 = vadd.f32 %v1062_v50, %v994_v54  ;;  %v595_v32 = vadd.f32 %v563_v61, %v495_v56  ;;  %v663_v12 = vmul.f32 %v2606_v8, %v2211_v42  ;;  %v763_v49 = vmul.f32 %v2608_v5, %v2213_v43  ;;  %v2696_v56 = vld [vmem:[#allocation2 + $0x147] sm:$0xff] }
  0x8a   : > { %v1848_v11 = vpop.eup %1847  ;;  %v1451_v6 = vmul.f32 %v1846_v28, %v2486_v39  ;;  %1855 = vpow2.f32 %v1714_v25  ;;  %v894_v13 = vadd.f32 %v862_v10, %v794_v3  ;;  %v364_v39 = vmul.f32 %v2573_v31, %v2193_v33  ;;  %v2698_v61 = vld [vmem:[#allocation2 + $0x148] sm:$0xff] }
  0x8b   : > { %v1358_v41 = vadd.f32 1.0, %v1848_v11  ;;  %v1194_v26 = vadd.f32 %v1162_v1, %v1094_v16  ;;  %v695_v17 = vadd.f32 %v663_v12, %v595_v32  ;;  %v863_v60 = vmul.f32 %v2615_v14, %v2220_v47 }
  0x8c   : > { %v1777_v23 = vpack.c.bf16 %v1451_v6, %v1451_v6  ;;  %v995_v50 = vadd.f32 %v963_v29, %v894_v13  ;;  %v464_v0 = vmul.f32 %v2579_v4, %v2201_v37  ;;  %v964_v31 = vmul.f32 %v2222_v48, %v2667_v9 }
  0x8d   : > { %1857 = vrcp.f32 %v1358_v41  ;;  %v2682_v35 = vadd.f32 %v2319_v58, %v1194_v26  ;;  %v795_v1 = vadd.f32 %v763_v49, %v695_v17  ;;  %v1064_v36 = vmul.f32 %v2227_v53, %v2669_v19 }
  0x8e   : > { %v1850_v51 = vpop.eup %1849  ;;  %1612 = vst.msk [vmem:[%s2510_s30 + $0x1c] sm:$0xf] %vm1604_vm1, %v1777_v23  ;;  %v1095_v34 = vadd.f32 %v1063_v22, %v995_v50  ;;  %v496_v20 = vadd.f32 %v464_v0, %v364_v39  ;;  %v564_v4 = vmul.f32 %v2584_v46, %v2203_v38  ;;  %v1164_v40 = vmul.f32 %v2233_v59, %v2675_v27 }
  0x8f   : > { %v1452_v44 = vmul.f32 %v1850_v51, %v2513_v57  ;;  %v1715_v15 = vmul.f32 -1.442695, %v2682_v35  ;;  %v895_v10 = vadd.f32 %v863_v60, %v795_v1  ;;  %v664_v55 = vmul.f32 %v2635_v62, %v2211_v42  ;;  %v2729_v51 = vld [vmem:[#allocation2 + $0x14f] sm:$0xff] }
  0x90   : > { %v1852_v18 = vpop.eup %1851  ;;  %v1195_v54 = vadd.f32 %v1163_v24, %v1095_v34  ;;  %v596_v57 = vadd.f32 %v564_v4, %v496_v20  ;;  %v764_v28 = vmul.f32 %v2642_v52, %v2213_v43  ;;  %v365_v25 = vmul.f32 %v2606_v8, %v2193_v33  ;;  %v2709_v24 = vld [vmem:[#allocation2 + $0x149] sm:$0xff] }
  0x91   : > { %v1778_v45 = vpack.c.bf16 %v1452_v44, %v1452_v44  ;;  %v1359_v29 = vadd.f32 1.0, %v1852_v18  ;;  %1859 = vpow2.f32 %v1715_v15  ;;  %v996_v46 = vadd.f32 %v964_v31, %v895_v10  ;;  %v2740_v18 = vld [vmem:[#allocation2 + $0x150] sm:$0xff] }
  0x92   : > { %v2707_v3 = vadd.f32 %v2319_v58, %v1195_v54  ;;  %v696_v22 = vadd.f32 %v664_v55, %v596_v57  ;;  %v465_v11 = vmul.f32 %v2608_v5, %v2201_v37  ;;  %v864_v16 = vmul.f32 %v2644_v63, %v2220_v47 }
  0x93   : > { %1613 = vst.msk [vmem:[%s2510_s30 + $0x20] sm:$0xf] %vm1604_vm1, %v1778_v45  ;;  %1861 = vrcp.f32 %v1359_v29  ;;  %v1096_v6 = vadd.f32 %v1064_v36, %v996_v46  ;;  %v965_v32 = vmul.f32 %v2222_v48, %v2696_v56  ;;  %v1065_v8 = vmul.f32 %v2227_v53, %v2698_v61 }
  0x94   : > { %v1716_v41 = vmul.f32 -1.442695, %v2707_v3  ;;  %v796_v13 = vadd.f32 %v764_v28, %v696_v22  ;;  %v497_v49 = vadd.f32 %v465_v11, %v365_v25  ;;  %v565_v23 = vmul.f32 %v2615_v14, %v2203_v38  ;;  %v2756_v25 = vld [vmem:[#allocation2 + $0x167] sm:$0xff] }
  0x95   : > { %v1854_v12 = vpop.eup %1853  ;;  %v1196_v26 = vadd.f32 %v1164_v40, %v1096_v6  ;;  %v1165_v17 = vmul.f32 %v2233_v59, %v2709_v24  ;;  %v665_v39 = vmul.f32 %v2667_v9, %v2211_v42  ;;  %v765_v0 = vmul.f32 %v2669_v19, %v2213_v43 }
  0x96   : > { %v1453_v5 = vmul.f32 %v1854_v12, %v2546_v30  ;;  %1863 = vpow2.f32 %v1716_v41  ;;  %v896_v50 = vadd.f32 %v864_v16, %v796_v13  ;;  %v597_v60 = vadd.f32 %v565_v23, %v497_v49 }
  0x97   : > { %v1856_v1 = vpop.eup %1855  ;;  %v2732_v30 = vadd.f32 %v2319_v58, %v1196_v26  ;;  %v366_v31 = vmul.f32 %v2635_v62, %v2193_v33  ;;  %v466_v36 = vmul.f32 %v2642_v52, %v2201_v37  ;;  %v865_v4 = vmul.f32 %v2675_v27, %v2220_v47  ;;  %v2747_v62 = vld [vmem:[#allocation2 + $0x151] sm:$0xff] }
  0x98   : > { %v1779_v14 = vpack.c.bf16 %v1453_v5, %v1453_v5  ;;  %v1360_v44 = vadd.f32 1.0, %v1856_v1  ;;  %v997_v34 = vadd.f32 %v965_v32, %v896_v50  ;;  %v697_v20 = vadd.f32 %v665_v39, %v597_v60  ;;  %v2762_v32 = vld [vmem:[#allocation2 + $0x168] sm:$0xff] }
  0x99   : > { %v1717_v10 = vmul.f32 -1.442695, %v2732_v30  ;;  %v966_v40 = vmul.f32 %v2222_v48, %v2729_v51  ;;  %v498_v55 = vadd.f32 %v466_v36, %v366_v31  ;;  %v566_v52 = vmul.f32 %v2644_v63, %v2203_v38 }
  0x9a   : > { %v1858_v15 = vpop.eup %1857  ;;  %1614 = vst.msk [vmem:[%s2510_s30 + $0x24] sm:$0xf] %vm1604_vm1, %v1779_v14  ;;  %1865 = vrcp.f32 %v1360_v44  ;;  %v1097_v29 = vadd.f32 %v1065_v8, %v997_v34  ;;  %v797_v54 = vadd.f32 %v765_v0, %v697_v20  ;;  %v1066_v57 = vmul.f32 %v2227_v53, %v2740_v18 }
  0x9b   : > { %v1454_v45 = vmul.f32 %v1858_v15, %v2571_v21  ;;  %1867 = vpow2.f32 %v1717_v10  ;;  %v598_v46 = vadd.f32 %v566_v52, %v498_v55  ;;  %v666_v28 = vmul.f32 %v2696_v56, %v2211_v42 }
  0x9c   : > { %v1197_v11 = vadd.f32 %v1165_v17, %v1097_v29  ;;  %v897_v6 = vadd.f32 %v865_v4, %v797_v54  ;;  %v1166_v21 = vmul.f32 %v2233_v59, %v2747_v62  ;;  %v766_v16 = vmul.f32 %v2698_v61, %v2213_v43  ;;  %v2791_v4 = vld [vmem:[#allocation2 + $0x170] sm:$0xff] }
  0x9d   : > { %v1780_v22 = vpack.c.bf16 %v1454_v45, %v1454_v45  ;;  %v698_v63 = vadd.f32 %v666_v28, %v598_v46  ;;  %v367_v8 = vmul.f32 %v2667_v9, %v2193_v33  ;;  %v467_v12 = vmul.f32 %v2669_v19, %v2201_v37  ;;  %v2777_v9 = vld [vmem:[#allocation2 + $0x169] sm:$0xff] }
  0x9e   : > { %v1860_v41 = vpop.eup %1859  ;;  %v2771_v13 = vadd.f32 %v2319_v58, %v1197_v11  ;;  %v998_v49 = vadd.f32 %v966_v40, %v897_v6  ;;  %v866_v23 = vmul.f32 %v2709_v24, %v2220_v47  ;;  %v967_v5 = vmul.f32 %v2222_v48, %v2756_v25 }
  0x9f   : > { %1615 = vst.msk [vmem:[%s2510_s30 + $0x28] sm:$0xf] %vm1604_vm1, %v1780_v22  ;;  %v1361_v17 = vadd.f32 1.0, %v1860_v41  ;;  %v798_v39 = vadd.f32 %v766_v16, %v698_v63  ;;  %v499_v50 = vadd.f32 %v467_v12, %v367_v8  ;;  %v567_v19 = vmul.f32 %v2675_v27, %v2203_v38 }
  0xa0   : > { %v1862_v26 = vpop.eup %1861  ;;  %v1718_v0 = vmul.f32 -1.442695, %v2771_v13  ;;  %v1098_v1 = vadd.f32 %v1066_v57, %v998_v49  ;;  %v1067_v14 = vmul.f32 %v2227_v53, %v2762_v32  ;;  %v667_v44 = vmul.f32 %v2729_v51, %v2211_v42  ;;  %v2804_v57 = vld [vmem:[#allocation2 + $0x171] sm:$0xff] }
  0xa1   : > { %v1455_v60 = vmul.f32 %v1862_v26, %v2602_v2  ;;  %1869 = vrcp.f32 %v1361_v17  ;;  %v898_v31 = vadd.f32 %v866_v23, %v798_v39  ;;  %v599_v36 = vadd.f32 %v567_v19, %v499_v50  ;;  %v2789_v2 = vld [vmem:[#allocation2 + $0x16f] sm:$0xff]  ;;  %v2822_v17 = vld [vmem:[#allocation2 + $0x187] sm:$0xff] }
  0xa2   : > { %1871 = vpow2.f32 %v1718_v0  ;;  %v1198_v20 = vadd.f32 %v1166_v21, %v1098_v1  ;;  %v1167_v27 = vmul.f32 %v2233_v59, %v2777_v9  ;;  %v767_v55 = vmul.f32 %v2740_v18, %v2213_v43  ;;  %v2827_v19 = vld [vmem:[#allocation2 + $0x188] sm:$0xff] }
  0xa3   : > { %v1781_v34 = vpack.c.bf16 %v1455_v60, %v1455_v60  ;;  %v1864_v15 = vpop.eup %1863  ;;  %v999_v10 = vadd.f32 %v967_v5, %v898_v31  ;;  %v699_v40 = vadd.f32 %v667_v44, %v599_v36  ;;  %v368_v52 = vmul.f32 %v2696_v56, %v2193_v33 }
  0xa4   : > { %v1362_v45 = vadd.f32 1.0, %v1864_v15  ;;  %v2800_v29 = vadd.f32 %v2319_v58, %v1198_v20  ;;  %v867_v54 = vmul.f32 %v2747_v62, %v2220_v47  ;;  %v468_v46 = vmul.f32 %v2698_v61, %v2201_v37 }
  0xa5   : > { %1616 = vst.msk [vmem:[%s2510_s30 + $0x2c] sm:$0xf] %vm1604_vm1, %v1781_v34  ;;  %v1099_v28 = vadd.f32 %v1067_v14, %v999_v10  ;;  %v799_v22 = vadd.f32 %v767_v55, %v699_v40  ;;  %v968_v11 = vmul.f32 %v2222_v48, %v2789_v2  ;;  %v1068_v56 = vmul.f32 %v2227_v53, %v2791_v4  ;;  %v2833_v14 = vld [vmem:[#allocation2 + $0x189] sm:$0xff] }
  0xa6   : > { %1873 = vrcp.f32 %v1362_v45  ;;  %v1719_v6 = vmul.f32 -1.442695, %v2800_v29  ;;  %v500_v21 = vadd.f32 %v468_v46, %v368_v52  ;;  %v568_v63 = vmul.f32 %v2709_v24, %v2203_v38  ;;  %v2850_v40 = vld [vmem:[#allocation2 + $0x18f] sm:$0xff] }
  0xa7   : > { %v1866_v16 = vpop.eup %1865  ;;  %v1199_v8 = vadd.f32 %v1167_v27, %v1099_v28  ;;  %v899_v12 = vadd.f32 %v867_v54, %v799_v22  ;;  %v1168_v61 = vmul.f32 %v2233_v59, %v2804_v57  ;;  %v668_v41 = vmul.f32 %v2756_v25, %v2211_v42  ;;  %v2860_v22 = vld [vmem:[%s3171_s2] ss:$0 sm:$0xff] }
  0xa8   : > { %v1868_v49 = vpop.eup %1867  ;;  %v1456_v23 = vmul.f32 %v1866_v16, %v2649_v7  ;;  %1875 = vpow2.f32 %v1719_v6  ;;  %v600_v5 = vadd.f32 %v568_v63, %v500_v21  ;;  %v768_v26 = vmul.f32 %v2762_v32, %v2213_v43  ;;  %v2867_v6 = vld [vmem:[#allocation2 + $0x190] sm:$0xff] }
  0xa9   : > { %v1363_v24 = vadd.f32 1.0, %v1868_v49  ;;  %v2825_v39 = vadd.f32 %v2319_v58, %v1199_v8  ;;  %v1000_v50 = vadd.f32 %v968_v11, %v899_v12  ;;  %v369_v60 = vmul.f32 %v2729_v51, %v2193_v33  ;;  %v2873_v8 = vld [vmem:[#allocation2 + $0x191] sm:$0xff] }
  0xaa   : > { %v1782_v0 = vpack.c.bf16 %v1456_v23, %v1456_v23  ;;  %v700_v7 = vadd.f32 %v668_v41, %v600_v5  ;;  %v868_v1 = vmul.f32 %v2777_v9, %v2220_v47  ;;  %v469_v31 = vmul.f32 %v2740_v18, %v2201_v37 }
  0xab   : > { %1877 = vrcp.f32 %v1363_v24  ;;  %v1720_v58 = vmul.f32 -1.442695, %v2825_v39  ;;  %v1100_v36 = vadd.f32 %v1068_v56, %v1000_v50  ;;  %v969_v44 = vmul.f32 %v2222_v48, %v2822_v17 }
  0xac   : > { %1617 = vst.msk [vmem:[%s2510_s30 + $0x30] sm:$0xf] %vm1604_vm1, %v1782_v0  ;;  %v800_v51 = vadd.f32 %v768_v26, %v700_v7  ;;  %v1069_v34 = vmul.f32 %v2227_v53, %v2827_v19  ;;  %v501_v20 = vadd.f32 %v469_v31, %v369_v60  ;;  %v569_v27 = vmul.f32 %v2747_v62, %v2203_v38  ;;  %v2889_v31 = vld [vmem:[#allocation2 + $0x1a7] sm:$0xff] }
  0xad   : > { %1879 = vpow2.f32 %v1720_v58  ;;  %v1200_v15 = vadd.f32 %v1168_v61, %v1100_v36  ;;  %v1169_v18 = vmul.f32 %v2233_v59, %v2833_v14  ;;  %v669_v10 = vmul.f32 %v2789_v2, %v2211_v42 }
  0xae   : > { %v1870_v55 = vpop.eup %1869  ;;  %v900_v52 = vadd.f32 %v868_v1, %v800_v51  ;;  %v601_v45 = vadd.f32 %v569_v27, %v501_v20  ;;  %v769_v54 = vmul.f32 %v2791_v4, %v2213_v43  ;;  %v370_v46 = vmul.f32 %v2756_v25, %v2193_v33  ;;  %v2893_v51 = vld [vmem:[#allocation2 + $0x1a8] sm:$0xff] }
  0xaf   : > { %v1872_v62 = vpop.eup %1871  ;;  %v1457_v28 = vmul.f32 %v1870_v55, %v2682_v35  ;;  %v2863_v11 = vadd.f32 %v2860_v22, %v1200_v15  ;;  %v869_v56 = vmul.f32 %v2804_v57, %v2220_v47  ;;  %v470_v25 = vmul.f32 %v2762_v32, %v2201_v37 }
  0xb0   : > { %v1364_v21 = vadd.f32 1.0, %v1872_v62  ;;  %v1001_v63 = vadd.f32 %v969_v44, %v900_v52  ;;  %v701_v35 = vadd.f32 %v669_v10, %v601_v45  ;;  %v970_v16 = vmul.f32 %v2222_v48, %v2850_v40  ;;  %v2904_v52 = vld [vmem:[#allocation2 + $0x1a9] sm:$0xff] }
  0xb1   : > { %v1783_v12 = vpack.c.bf16 %v1457_v28, %v1457_v28  ;;  %v1721_v61 = vmul.f32 -1.442695, %v2863_v11  ;;  %v502_v41 = vadd.f32 %v470_v25, %v370_v46  ;;  %v570_v49 = vmul.f32 %v2777_v9, %v2203_v38 }
  0xb2   : > { %1881 = vrcp.f32 %v1364_v21  ;;  %v1101_v23 = vadd.f32 %v1069_v34, %v1001_v63  ;;  %v801_v5 = vadd.f32 %v769_v54, %v701_v35  ;;  %v1070_v32 = vmul.f32 %v2227_v53, %v2867_v6 }
  0xb3   : > { %v1874_v26 = vpop.eup %1873  ;;  %1618 = vst.msk [vmem:[%s2510_s30 + $0x34] sm:$0xf] %vm1604_vm1, %v1783_v12  ;;  %1883 = vpow2.f32 %v1721_v61  ;;  %v1170_v24 = vmul.f32 %v2233_v59, %v2873_v8  ;;  %v602_v50 = vadd.f32 %v570_v49, %v502_v41  ;;  %v670_v60 = vmul.f32 %v2822_v17, %v2211_v42  ;;  %v2920_v12 = vld [vmem:[#allocation2 + $0x1af] sm:$0xff] }
  0xb4   : > { %v1458_v0 = vmul.f32 %v1874_v26, %v2707_v3  ;;  %v1201_v9 = vadd.f32 %v1169_v18, %v1101_v23  ;;  %v901_v7 = vadd.f32 %v869_v56, %v801_v5  ;;  %v770_v1 = vmul.f32 %v2827_v19, %v2213_v43  ;;  %v2922_v23 = vld [vmem:[#allocation2 + $0x1b0] sm:$0xff] }
  0xb5   : > { %v1876_v58 = vpop.eup %1875  ;;  %v702_v36 = vadd.f32 %v670_v60, %v602_v50  ;;  %v870_v44 = vmul.f32 %v2833_v14, %v2220_v47  ;;  %v371_v34 = vmul.f32 %v2789_v2, %v2193_v33  ;;  %v471_v3 = vmul.f32 %v2791_v4, %v2201_v37  ;;  %v2929_v26 = vld [vmem:[#allocation2 + $0x1b1] sm:$0xff] }
  0xb6   : > { %v1784_v20 = vpack.c.bf16 %v1458_v0, %v1458_v0  ;;  %v1365_v27 = vadd.f32 1.0, %v1876_v58  ;;  %v2900_v15 = vadd.f32 %v2860_v22, %v1201_v9  ;;  %v1002_v18 = vadd.f32 %v970_v16, %v901_v7 }
  0xb7   : > { %v802_v10 = vadd.f32 %v770_v1, %v702_v36  ;;  %v971_v55 = vmul.f32 %v2222_v48, %v2889_v31  ;;  %v503_v45 = vadd.f32 %v471_v3, %v371_v34  ;;  %v571_v54 = vmul.f32 %v2804_v57, %v2203_v38 }
  0xb8   : > { %v1878_v2 = vpop.eup %1877  ;;  %1619 = vst.msk [vmem:[%s2510_s30 + $0x38] sm:$0xf] %vm1604_vm1, %v1784_v20  ;;  %1885 = vrcp.f32 %v1365_v27  ;;  %v1722_v4 = vmul.f32 -1.442695, %v2900_v15  ;;  %v1102_v46 = vadd.f32 %v1070_v32, %v1002_v18  ;;  %v1071_v62 = vmul.f32 %v2227_v53, %v2893_v51 }
  0xb9   : > { %v1459_v28 = vmul.f32 %v1878_v2, %v2732_v30  ;;  %v902_v56 = vadd.f32 %v870_v44, %v802_v10  ;;  %v603_v25 = vadd.f32 %v571_v54, %v503_v45  ;;  %v671_v21 = vmul.f32 %v2850_v40, %v2211_v42  ;;  %v2956_v2 = vld [vmem:[#allocation2 + $0x1c8] sm:$0xff] }
  0xba   : > { %v1880_v63 = vpop.eup %1879  ;;  %1887 = vpow2.f32 %v1722_v4  ;;  %v1202_v57 = vadd.f32 %v1170_v24, %v1102_v46  ;;  %v1171_v35 = vmul.f32 %v2233_v59, %v2904_v52  ;;  %v771_v16 = vmul.f32 %v2867_v6, %v2213_v43 }
  0xbb   : > { %v1785_v61 = vpack.c.bf16 %v1459_v28, %v1459_v28  ;;  %v1366_v41 = vadd.f32 1.0, %v1880_v63  ;;  %v1003_v30 = vadd.f32 %v971_v55, %v902_v56  ;;  %v703_v49 = vadd.f32 %v671_v21, %v603_v25  ;;  %v2951_v55 = vld [vmem:[#allocation2 + $0x1c7] sm:$0xff] }
  0xbc   : > { %v2925_v5 = vadd.f32 %v2860_v22, %v1202_v57  ;;  %v871_v32 = vmul.f32 %v2873_v8, %v2220_v47  ;;  %v372_v24 = vmul.f32 %v2822_v17, %v2193_v33  ;;  %v472_v50 = vmul.f32 %v2827_v19, %v2201_v37  ;;  %v2962_v28 = vld [vmem:[#allocation2 + $0x1c9] sm:$0xff] }
  0xbd   : > { %1620 = vst.msk [vmem:[%s2510_s30 + $0x3c] sm:$0xf] %vm1604_vm1, %v1785_v61  ;;  %1889 = vrcp.f32 %v1366_v41  ;;  %v1103_v60 = vadd.f32 %v1071_v62, %v1003_v30  ;;  %v803_v0 = vadd.f32 %v771_v16, %v703_v49  ;;  %v972_v9 = vmul.f32 %v2222_v48, %v2920_v12 }
  0xbe   : > { %v1723_v7 = vmul.f32 -1.442695, %v2925_v5  ;;  %v1072_v1 = vmul.f32 %v2227_v53, %v2922_v23  ;;  %v504_v58 = vadd.f32 %v472_v50, %v372_v24  ;;  %v572_v17 = vmul.f32 %v2833_v14, %v2203_v38 }
  0xbf   : > { %v1882_v36 = vpop.eup %1881  ;;  %v1203_v44 = vadd.f32 %v1171_v35, %v1103_v60  ;;  %v903_v19 = vadd.f32 %v871_v32, %v803_v0  ;;  %v1172_v34 = vmul.f32 %v2233_v59, %v2929_v26  ;;  %v672_v3 = vmul.f32 %v2889_v31, %v2211_v42  ;;  %v2982_v60 = vld [vmem:[#allocation2 + $0x1cf] sm:$0xff] }
  0xc0   : > { %v1884_v20 = vpop.eup %1883  ;;  %v1460_v27 = vmul.f32 %v1882_v36, %v2771_v13  ;;  %1891 = vpow2.f32 %v1723_v7  ;;  %v604_v18 = vadd.f32 %v572_v17, %v504_v58  ;;  %v772_v10 = vmul.f32 %v2893_v51, %v2213_v43  ;;  %v2989_v7 = vld [vmem:[#allocation2 + $0x1d0] sm:$0xff] }
  0xc1   : > { %v1367_v14 = vadd.f32 1.0, %v1884_v20  ;;  %v2954_v45 = vadd.f32 %v2860_v22, %v1203_v44  ;;  %v1004_v54 = vadd.f32 %v972_v9, %v903_v19  ;;  %v373_v4 = vmul.f32 %v2850_v40, %v2193_v33 }
  0xc2   : > { %v1786_v46 = vpack.c.bf16 %v1460_v27, %v1460_v27  ;;  %v704_v13 = vadd.f32 %v672_v3, %v604_v18  ;;  %v872_v62 = vmul.f32 %v2904_v52, %v2220_v47  ;;  %v473_v56 = vmul.f32 %v2867_v6, %v2201_v37  ;;  %v2998_v3 = vld [vmem:[#allocation2 + $0x1d1] sm:$0xff] }
  0xc3   : > { %1893 = vrcp.f32 %v1367_v14  ;;  %v1724_v25 = vmul.f32 -1.442695, %v2954_v45  ;;  %v1104_v21 = vadd.f32 %v1072_v1, %v1004_v54  ;;  %v973_v63 = vmul.f32 %v2222_v48, %v2951_v55 }
  0xc4   : > { %1621 = vst.msk [vmem:[%s2510_s30 + $0x40] sm:$0xf] %vm1604_vm1, %v1786_v46  ;;  %v804_v40 = vadd.f32 %v772_v10, %v704_v13  ;;  %v1073_v57 = vmul.f32 %v2227_v53, %v2956_v2  ;;  %v505_v35 = vadd.f32 %v473_v56, %v373_v4  ;;  %v573_v16 = vmul.f32 %v2873_v8, %v2203_v38  ;;  %v3013_v56 = vld [vmem:[#allocation2 + $0x1e7] sm:$0xff] }
  0xc5   : > { %v1886_v61 = vpop.eup %1885  ;;  %1895 = vpow2.f32 %v1724_v25  ;;  %v1204_v6 = vadd.f32 %v1172_v34, %v1104_v21  ;;  %v1173_v41 = vmul.f32 %v2233_v59, %v2962_v28  ;;  %v673_v30 = vmul.f32 %v2920_v12, %v2211_v42 }
  0xc6   : > { %v1461_v49 = vmul.f32 %v1886_v61, %v2800_v29  ;;  %v904_v32 = vadd.f32 %v872_v62, %v804_v40  ;;  %v605_v24 = vadd.f32 %v573_v16, %v505_v35  ;;  %v773_v50 = vmul.f32 %v2922_v23, %v2213_v43 }
  0xc7   : > { %v1888_v0 = vpop.eup %1887  ;;  %v2985_v8 = vadd.f32 %v2860_v22, %v1204_v6  ;;  %v873_v9 = vmul.f32 %v2929_v26, %v2220_v47  ;;  %v374_v29 = vmul.f32 %v2889_v31, %v2193_v33  ;;  %v474_v1 = vmul.f32 %v2893_v51, %v2201_v37 }
  0xc8   : > { %v1787_v58 = vpack.c.bf16 %v1461_v49, %v1461_v49  ;;  %v1368_v17 = vadd.f32 1.0, %v1888_v0  ;;  %v1005_v36 = vadd.f32 %v973_v63, %v904_v32  ;;  %v705_v44 = vadd.f32 %v673_v30, %v605_v24  ;;  %v3030_v49 = vld [vmem:[#allocation2 + $0x1e9] sm:$0xff] }
  0xc9   : > { %v1725_v19 = vmul.f32 -1.442695, %v2985_v8  ;;  %v974_v34 = vmul.f32 %v2222_v48, %v2982_v60  ;;  %v506_v20 = vadd.f32 %v474_v1, %v374_v29  ;;  %v574_v27 = vmul.f32 %v2904_v52, %v2203_v38 }
  0xca   : > { %v1890_v18 = vpop.eup %1889  ;;  %1622 = vst.msk [vmem:[%s2510_s30 + $0x44] sm:$0xf] %vm1604_vm1, %v1787_v58  ;;  %1897 = vrcp.f32 %v1368_v17  ;;  %v1105_v31 = vadd.f32 %v1073_v57, %v1005_v36  ;;  %v805_v51 = vadd.f32 %v773_v50, %v705_v44  ;;  %v1074_v10 = vmul.f32 %v2227_v53, %v2989_v7 }
  0xcb   : > { %v1462_v14 = vmul.f32 %v1890_v18, %v2825_v39  ;;  %1899 = vpow2.f32 %v1725_v19  ;;  %v606_v54 = vadd.f32 %v574_v27, %v506_v20  ;;  %v674_v4 = vmul.f32 %v2951_v55, %v2211_v42  ;;  %v3015_v39 = vld [vmem:[#allocation2 + $0x1e8] sm:$0xff]  ;;  %v3046_v18 = vld [vmem:[#allocation2 + $0x1f0] sm:$0xff] }
  0xcc   : > { %v1205_v46 = vadd.f32 %v1173_v41, %v1105_v31  ;;  %v905_v13 = vadd.f32 %v873_v9, %v805_v51  ;;  %v1174_v52 = vmul.f32 %v2233_v59, %v2998_v3  ;;  %v774_v62 = vmul.f32 %v2956_v2, %v2213_v43  ;;  %v3044_v19 = vld [vmem:[#allocation2 + $0x1ef] sm:$0xff] }
  0xcd   : > { %v1892_v25 = vpop.eup %1891  ;;  %v1788_v21 = vpack.c.bf16 %v1462_v14, %v1462_v14  ;;  %v706_v63 = vadd.f32 %v674_v4, %v606_v54  ;;  %v375_v40 = vmul.f32 %v2920_v12, %v2193_v33  ;;  %v475_v57 = vmul.f32 %v2922_v23, %v2201_v37 }
  0xce   : > { %v1369_v35 = vadd.f32 1.0, %v1892_v25  ;;  %v3022_v16 = vadd.f32 %v2860_v22, %v1205_v46  ;;  %v1006_v61 = vadd.f32 %v974_v34, %v905_v13  ;;  %v874_v6 = vmul.f32 %v2962_v28, %v2220_v47 }
  0xcf   : > { %1623 = vst.msk [vmem:[%s2510_s30 + $0x48] sm:$0xf] %vm1604_vm1, %v1788_v21  ;;  %v806_v41 = vadd.f32 %v774_v62, %v706_v63  ;;  %v975_v30 = vmul.f32 %v2222_v48, %v3013_v56  ;;  %v507_v12 = vadd.f32 %v475_v57, %v375_v40  ;;  %v575_v23 = vmul.f32 %v2929_v26, %v2203_v38 }
  0xd0   : > { %v1894_v32 = vpop.eup %1893  ;;  %1901 = vrcp.f32 %v1369_v35  ;;  %v1726_v24 = vmul.f32 -1.442695, %v3022_v16  ;;  %v1106_v50 = vadd.f32 %v1074_v10, %v1006_v61  ;;  %v1075_v0 = vmul.f32 %v2227_v53, %v3015_v39  ;;  %v3053_v10 = vld [vmem:[#allocation2 + $0x1f1] sm:$0xff] }
  0xd1   : > { %v1463_v9 = vmul.f32 %v1894_v32, %v2863_v11  ;;  %v906_v29 = vadd.f32 %v874_v6, %v806_v41  ;;  %v607_v1 = vadd.f32 %v575_v23, %v507_v12  ;;  %v675_v58 = vmul.f32 %v2982_v60, %v2211_v42  ;;  %v1041_v32 = vld [vmem:[#allocation2 + $0x208] sm:$0xff] }
  0xd2   : > { %v1896_v17 = vpop.eup %1895  ;;  %1903 = vpow2.f32 %v1726_v24  ;;  %v1206_v36 = vadd.f32 %v1174_v52, %v1106_v50  ;;  %v1175_v26 = vmul.f32 %v2233_v59, %v3030_v49  ;;  %v775_v44 = vmul.f32 %v2989_v7, %v2213_v43 }
  0xd3   : > { %v1789_v34 = vpack.c.bf16 %v1463_v9, %v1463_v9  ;;  %v1370_v20 = vadd.f32 1.0, %v1896_v17  ;;  %v1007_v11 = vadd.f32 %v975_v30, %v906_v29  ;;  %v707_v27 = vadd.f32 %v675_v58, %v607_v1  ;;  %v941_v30 = vld [vmem:[#allocation2 + $0x207] sm:$0xff] }
  0xd4   : > { %v3049_v31 = vadd.f32 %v2860_v22, %v1206_v36  ;;  %v875_v51 = vmul.f32 %v2998_v3, %v2220_v47  ;;  %v376_v14 = vmul.f32 %v2951_v55, %v2193_v33  ;;  %v476_v54 = vmul.f32 %v2956_v2, %v2201_v37  ;;  %v1141_v9 = vld [vmem:[#allocation2 + $0x209] sm:$0xff] }
  0xd5   : > { %1624 = vst.msk [vmem:[%s2510_s30 + $0x4c] sm:$0xf] %vm1604_vm1, %v1789_v34  ;;  %1905 = vrcp.f32 %v1370_v20  ;;  %v1107_v4 = vadd.f32 %v1075_v0, %v1007_v11  ;;  %v807_v46 = vadd.f32 %v775_v44, %v707_v27  ;;  %v976_v13 = vmul.f32 %v2222_v48, %v3044_v19 }
  0xd6   : > { %v1727_v52 = vmul.f32 -1.442695, %v3049_v31  ;;  %v1076_v62 = vmul.f32 %v2227_v53, %v3046_v18  ;;  %v508_v25 = vadd.f32 %v476_v54, %v376_v14  ;;  %v576_v55 = vmul.f32 %v2962_v28, %v2203_v38 }
  0xd7   : > { %v1898_v21 = vpop.eup %1897  ;;  %v1207_v63 = vadd.f32 %v1175_v26, %v1107_v4  ;;  %v907_v2 = vadd.f32 %v875_v51, %v807_v46  ;;  %v1176_v40 = vmul.f32 %v2233_v59, %v3053_v10  ;;  %v676_v57 = vmul.f32 %v3013_v56, %v2211_v42 }
  0xd8   : > { %v1900_v35 = vpop.eup %1899  ;;  %v1464_v61 = vmul.f32 %v1898_v21, %v2900_v15  ;;  %1907 = vpow2.f32 %v1727_v52  ;;  %v608_v6 = vadd.f32 %v576_v55, %v508_v25  ;;  %v776_v41 = vmul.f32 %v3015_v39, %v2213_v43 }
  0xd9   : > { %v1371_v28 = vadd.f32 1.0, %v1900_v35  ;;  %v3076_v12 = vadd.f32 %v2860_v22, %v1207_v63  ;;  %v1008_v23 = vadd.f32 %v976_v13, %v907_v2  ;;  %v377_v24 = vmul.f32 %v2982_v60, %v2193_v33  ;;  %v942_v13 = vld [vmem:[#allocation2 + $0x20f] sm:$0xff] }
  0xda   : > { %v1790_v50 = vpack.c.bf16 %v1464_v61, %v1464_v61  ;;  %v708_v0 = vadd.f32 %v676_v57, %v608_v6  ;;  %v876_v15 = vmul.f32 %v3030_v49, %v2220_v47  ;;  %v477_v29 = vmul.f32 %v2989_v7, %v2201_v37  ;;  %v1042_v63 = vld [vmem:[#allocation2 + $0x210] sm:$0xff] }
  0xdb   : > { %1909 = vrcp.f32 %v1371_v28  ;;  %v1728_v1 = vmul.f32 -1.442695, %v3076_v12  ;;  %v1108_v58 = vadd.f32 %v1076_v62, %v1008_v23  ;;  %v977_v17 = vmul.f32 %v2222_v48, %v941_v30 }
  0xdc   : > { %1625 = vst.msk [vmem:[%s2510_s30 + $0x50] sm:$0xf] %vm1604_vm1, %v1790_v50  ;;  %v808_v36 = vadd.f32 %v776_v41, %v708_v0  ;;  %v1077_v60 = vmul.f32 %v2227_v53, %v1041_v32  ;;  %v509_v26 = vadd.f32 %v477_v29, %v377_v24  ;;  %v577_v44 = vmul.f32 %v2998_v3, %v2203_v38  ;;  %v943_v24 = vld [vmem:[#allocation2 + $0x227] sm:$0xff] }
  0xdd   : > { %v1902_v34 = vpop.eup %1901  ;;  %1911 = vpow2.f32 %v1728_v1  ;;  %v1208_v20 = vadd.f32 %v1176_v40, %v1108_v58  ;;  %v1177_v7 = vmul.f32 %v2233_v59, %v1141_v9  ;;  %v677_v11 = vmul.f32 %v3044_v19, %v2211_v42  ;;  %v1142_v1 = vld [vmem:[#allocation2 + $0x211] sm:$0xff] }
  0xde   : > { %v1465_v27 = vmul.f32 %v1902_v34, %v2925_v5  ;;  %v908_v51 = vadd.f32 %v876_v15, %v808_v36  ;;  %v609_v14 = vadd.f32 %v577_v44, %v509_v26  ;;  %v777_v54 = vmul.f32 %v3046_v18, %v2213_v43 }
  0xdf   : > { %v1904_v4 = vpop.eup %1903  ;;  %v3098_v46 = vadd.f32 %v2860_v22, %v1208_v20  ;;  %v877_v3 = vmul.f32 %v3053_v10, %v2220_v47  ;;  %v378_v52 = vmul.f32 %v3013_v56, %v2193_v33  ;;  %v478_v5 = vmul.f32 %v3015_v39, %v2201_v37 }
  0xe0   : > { %v1791_v62 = vpack.c.bf16 %v1465_v27, %v1465_v27  ;;  %v1372_v25 = vadd.f32 1.0, %v1904_v4  ;;  %v1009_v55 = vadd.f32 %v977_v17, %v908_v51  ;;  %v709_v21 = vadd.f32 %v677_v11, %v609_v14  ;;  %v1143_v51 = vld [vmem:[#allocation2 + $0x229] sm:$0xff] }
  0xe1   : > { %v1729_v2 = vmul.f32 -1.442695, %v3098_v46  ;;  %v510_v40 = vadd.f32 %v478_v5, %v378_v52  ;;  %v578_v57 = vmul.f32 %v3030_v49, %v2203_v38  ;;  %v678_v35 = vmul.f32 %v941_v30, %v2211_v42 }
  0xe2   : > { %v1906_v61 = vpop.eup %1905  ;;  %1626 = vst.msk [vmem:[%s2510_s30 + $0x54] sm:$0xf] %vm1604_vm1, %v1791_v62  ;;  %1913 = vrcp.f32 %v1372_v25  ;;  %v1109_v56 = vadd.f32 %v1077_v60, %v1009_v55  ;;  %v809_v6 = vadd.f32 %v777_v54, %v709_v21  ;;  %v978_v39 = vmul.f32 %v2222_v48, %v942_v13 }
  0xe3   : > { %v1466_v41 = vmul.f32 %v1906_v61, %v2954_v45  ;;  %1915 = vpow2.f32 %v1729_v2  ;;  %v1078_v28 = vmul.f32 %v2227_v53, %v1042_v63  ;;  %v610_v23 = vadd.f32 %v578_v57, %v510_v40 }
  0xe4   : > { %v1209_v50 = vadd.f32 %v1177_v7, %v1109_v56  ;;  %v909_v49 = vadd.f32 %v877_v3, %v809_v6  ;;  %v778_v30 = vmul.f32 %v1041_v32, %v2213_v43  ;;  %v878_v0 = vmul.f32 %v1141_v9, %v2220_v47  ;;  %v1043_v9 = vld [vmem:[#allocation2 + $0x228] sm:$0xff]  ;;  %v1144_v6 = vld [vmem:[#allocation2 + $0x231] sm:$0xff] }
  0xe5   : > { %v1908_v15 = vpop.eup %1907  ;;  %v1792_v29 = vpack.c.bf16 %v1466_v41, %v1466_v41  ;;  %v710_v58 = vadd.f32 %v678_v35, %v610_v23  ;;  %v379_v17 = vmul.f32 %v3044_v19, %v2193_v33  ;;  %v479_v45 = vmul.f32 %v3046_v18, %v2201_v37 }
  0xe6   : > { %v1373_v36 = vadd.f32 1.0, %v1908_v15  ;;  %v3122_v60 = vadd.f32 %v2860_v22, %v1209_v50  ;;  %v1010_v26 = vadd.f32 %v978_v39, %v909_v49  ;;  %v979_v44 = vmul.f32 %v2222_v48, %v943_v24 }
  0xe7   : > { %1627 = vst.msk [vmem:[%s2510_s30 + $0x58] sm:$0xf] %vm1604_vm1, %v1792_v29  ;;  %v810_v32 = vadd.f32 %v778_v30, %v710_v58  ;;  %v511_v34 = vadd.f32 %v479_v45, %v379_v17  ;;  %v579_v20 = vmul.f32 %v3053_v10, %v2203_v38  ;;  %v679_v33 = vmul.f32 %v942_v13, %v2211_v42  ;;  %v944_v10 = vld [vmem:[#allocation2 + $0x22f] sm:$0xff] }
  0xe8   : > { %v1910_v19 = vpop.eup %1909  ;;  %1917 = vrcp.f32 %v1373_v36  ;;  %v1730_v37 = vmul.f32 -1.442695, %v3122_v60  ;;  %v1110_v18 = vadd.f32 %v1078_v28, %v1010_v26  ;;  %v1178_v7 = vmul.f32 %v2233_v59, %v1142_v1 }
  0xe9   : > { %v1467_v11 = vmul.f32 %v1910_v19, %v2985_v8  ;;  %v910_v27 = vadd.f32 %v878_v0, %v810_v32  ;;  %v611_v14 = vadd.f32 %v579_v20, %v511_v34  ;;  %v1079_v38 = vmul.f32 %v2227_v53, %v1043_v9 }
  0xea   : > { %v1912_v54 = vpop.eup %1911  ;;  %1919 = vpow2.f32 %v1730_v37  ;;  %v1210_v4 = vadd.f32 %v1178_v7, %v1110_v18  ;;  %v779_v42 = vmul.f32 %v1042_v63, %v2213_v43  ;;  %v1179_v8 = vmul.f32 %v2233_v59, %v1143_v51  ;;  %v1044_v43 = vld [vmem:[#allocation2 + $0x230] sm:$0xff] }
  0xeb   : > { %v1793_v3 = vpack.c.bf16 %v1467_v11, %v1467_v11  ;;  %v1374_v13 = vadd.f32 1.0, %v1912_v54  ;;  %v1011_v52 = vadd.f32 %v979_v44, %v910_v27  ;;  %v711_v5 = vadd.f32 %v679_v33, %v611_v14 }
  0xec   : > { %v1249_v62 = vadd.f32 %v2860_v22, %v1210_v4  ;;  %v879_v25 = vmul.f32 %v1142_v1, %v2220_v47  ;;  %v980_v2 = vmul.f32 %v2222_v48, %v944_v10  ;;  %v1080_v28 = vmul.f32 %v2227_v53, %v1044_v43 }
  0xed   : > { %1628 = vst.msk [vmem:[%s2510_s30 + $0x5c] sm:$0xf] %vm1604_vm1, %v1793_v3  ;;  %1921 = vrcp.f32 %v1374_v13  ;;  %v1111_v55 = vadd.f32 %v1079_v38, %v1011_v52  ;;  %v811_v21 = vadd.f32 %v779_v42, %v711_v5  ;;  %v1180_v50 = vmul.f32 %v2233_v59, %v1144_v6 }
  0xee   : > { %v1731_v40 = vmul.f32 -1.442695, %v1249_v62 }
  0xef   : > { %v1914_v63 = vpop.eup %1913  ;;  %v1211_v57 = vadd.f32 %v1179_v8, %v1111_v55  ;;  %v911_v35 = vadd.f32 %v879_v25, %v811_v21 }
  0xf0   : > { %v1916_v61 = vpop.eup %1915  ;;  %v1468_v56 = vmul.f32 %v1914_v63, %v3022_v16  ;;  %1923 = vpow2.f32 %v1731_v40 }
  0xf1   : > { %v1375_v39 = vadd.f32 1.0, %v1916_v61  ;;  %v1250_v47 = vadd.f32 %v2860_v22, %v1211_v57  ;;  %v1012_v41 = vadd.f32 %v980_v2, %v911_v35 }
  0xf2   : > { %v1794_v23 = vpack.c.bf16 %v1468_v56, %v1468_v56 }
  0xf3   : > { %1925 = vrcp.f32 %v1375_v39  ;;  %v1732_v48 = vmul.f32 -1.442695, %v1250_v47  ;;  %v1112_v24 = vadd.f32 %v1080_v28, %v1012_v41 }
  0xf4   : > { %1629 = vst.msk [vmem:[%s2510_s30 + $0x60] sm:$0xf] %vm1604_vm1, %v1794_v23 }
  0xf5   : > { %v1918_v49 = vpop.eup %1917  ;;  %1927 = vpow2.f32 %v1732_v48  ;;  %v1212_v16 = vadd.f32 %v1180_v50, %v1112_v24 }
  0xf6   : > { %v1469_v30 = vmul.f32 %v1918_v49, %v3049_v31 }
  0xf7   : > { %v1920_v0 = vpop.eup %1919  ;;  %v1251_v15 = vadd.f32 %v2860_v22, %v1212_v16 }
  0xf8   : > { %v1795_v29 = vpack.c.bf16 %v1469_v30, %v1469_v30  ;;  %v1376_v53 = vadd.f32 1.0, %v1920_v0 }
  0xf9   : > { %v1733_v1 = vmul.f32 -1.442695, %v1251_v15 }
  0xfa   : > { %v1922_v58 = vpop.eup %1921  ;;  %1630 = vst.msk [vmem:[%s2510_s30 + $0x64] sm:$0xf] %vm1604_vm1, %v1795_v29  ;;  %1929 = vrcp.f32 %v1376_v53 }
  0xfb   : > { %v1470_v59 = vmul.f32 %v1922_v58, %v3076_v12  ;;  %1931 = vpow2.f32 %v1733_v1 }
  0xfd   : > { %v1924_v17 = vpop.eup %1923  ;;  %v1796_v45 = vpack.c.bf16 %v1470_v59, %v1470_v59 }
  0xfe   : > { %v1377_v36 = vadd.f32 1.0, %v1924_v17 }
  0xff   : > { %1631 = vst.msk [vmem:[%s2510_s30 + $0x68] sm:$0xf] %vm1604_vm1, %v1796_v45 }
 0x100   : > { %v1926_v31 = vpop.eup %1925  ;;  %1933 = vrcp.f32 %v1377_v36 }
 0x101   : > { %v1471_v22 = vmul.f32 %v1926_v31, %v3098_v46 }
 0x102   : > { %v1928_v26 = vpop.eup %1927 }
 0x103   : > { %v1797_v44 = vpack.c.bf16 %v1471_v22, %v1471_v22  ;;  %v1378_v32 = vadd.f32 1.0, %v1928_v26 }
 0x105   : > { %1632 = vst.msk [vmem:[%s2510_s30 + $0x6c] sm:$0xf] %vm1604_vm1, %v1797_v44  ;;  %1935 = vrcp.f32 %v1378_v32 }
 0x107   : > { %v1930_v12 = vpop.eup %1929 }
 0x108   : > { %v1932_v9 = vpop.eup %1931  ;;  %v1472_v34 = vmul.f32 %v1930_v12, %v3122_v60 }
 0x109   : > { %v1379_v20 = vadd.f32 1.0, %v1932_v9 }
 0x10a   : > { %v1798_v33 = vpack.c.bf16 %v1472_v34, %v1472_v34 }
 0x10b   : > { %1937 = vrcp.f32 %v1379_v20 }
 0x10c   : > { %1633 = vst.msk [vmem:[%s2510_s30 + $0x70] sm:$0xf] %vm1604_vm1, %v1798_v33 }
 0x10d   : > { %v1934_v19 = vpop.eup %1933 }
 0x10e   : > { %v1473_v46 = vmul.f32 %v1934_v19, %v1249_v62 }
 0x110   : > { %v1799_v37 = vpack.c.bf16 %v1473_v46, %v1473_v46 }
 0x112   : > { %v1936_v18 = vpop.eup %1935  ;;  %1634 = vst.msk [vmem:[%s2510_s30 + $0x74] sm:$0xf] %vm1604_vm1, %v1799_v37 }
 0x113   : > { %v1474_v7 = vmul.f32 %v1936_v18, %v1250_v47 }
 0x115   : > { %v1800_v11 = vpack.c.bf16 %v1474_v7, %v1474_v7 }
 0x117   : > { %1635 = vst.msk [vmem:[%s2510_s30 + $0x78] sm:$0xf] %vm1604_vm1, %v1800_v11 }
 0x118   : > { %v1938_v27 = vpop.eup %1937 }
 0x119   : > { %v1475_v51 = vmul.f32 %v1938_v27, %v1251_v15 }
 0x11b   : > { %v1801_v14 = vpack.c.bf16 %v1475_v51, %v1475_v51 }
 0x11d   : > { %1636 = vst.msk [vmem:[%s2510_s30 + $0x7c] sm:$0xf] %vm1604_vm1, %v1801_v14 }
 0x11e PF: > { %s13_s12 = sadd.s32 1, %s1946_s12  }
 0x11f   : > { %p10_p4 = scmp.ge.s32.totalorder %s13_s12, 4  }
 0x121   :  { %12 = sbr.rel (!%p10_p4) target bundleno = 1 (0x1), region = 64 }

</bundles_post_ra>
